<compile_context>
chip_gen: v5e
topology: v5e:2x2
jax: 0.10.0
libtpu: 0.0.40
codegen_flags: <defaults>
</compile_context>

<pallas_src>
import jax
import jax.numpy as jnp
from jax.experimental import pallas as pl
from jax.experimental.pallas import tpu as pltpu


def _round_up(x, m):
    return ((x + m - 1) // m) * m


def _make_kernel(H, W, strip_h, cin_pad, cout_pad, dilations, pad):
    """Kernel body for fixed static shapes/dilations.

    Refs:
      x_ref  : (H+2p, W+2p, cin_pad)   one zero-padded image (wrapper pads)
      w_ref  : (n_taps, cin_pad, cout_pad)  tap-major packed weights (both convs)
      b_ref  : (1, cout_pad)           b0 + b1 (f32)
      out_ref: (strip_h*W, cout_pad)   lane-dense output strip
      acc_ref: (strip_h*W, cout_pad)   f32 VMEM accumulator scratch
    """

    def kernel(x_ref, w_ref, b_ref, out_ref, acc_ref):
        # First output row of this strip (element offset into the padded slab).
        r0 = pl.multiple_of(pl.program_id(1) * strip_h, strip_h)

        t = 0
        for d in dilations:
            for kh in range(3):
                for kw in range(3):
                    hs = pad + (kh - 1) * d          # static, >= 0
                    ws = pad + (kw - 1) * d          # static, >= 0
                    tap = x_ref[pl.ds(r0 + hs, strip_h), ws:ws + W, :]
                    tap = tap.reshape(strip_h * W, cin_pad)
                    contrib = jnp.dot(tap, w_ref[t],
                                      preferred_element_type=jnp.float32)
                    if t == 0:
                        # First tap initializes the accumulator: no zero-fill
                        # broadcast store, and fresh per grid step (safe with
                        # per-core scratch under megacore).
                        acc_ref[...] = contrib
                    else:
                        acc_ref[...] += contrib
                    t += 1

        out_ref[...] = (acc_ref[...] + b_ref[...]).astype(out_ref.dtype)

    return kernel


def make_classifier_forward(weights_oihw, biases, dilation_series, padding_series,
                            *, compute_dtype=jnp.float32, strip_h=None,
                            vmem_limit_bytes=32 * 1024 * 1024):
    """Builds the Classifier_Module forward.  Weight repack happens ONCE here."""
    assert len(weights_oihw) >= 2 and len(dilation_series) >= 2
    # Standard ASPP usage: padding == dilation -> output spatial == input spatial.
    for d, p in zip(dilation_series[:2], padding_series[:2]):
        assert int(d) == int(p), "kernel assumes padding == dilation"

    dils = (int(dilation_series[0]), int(dilation_series[1]))
    pad = max(dils)
    n_taps = 9 * len(dils)

    cout, cin = weights_oihw[0].shape[0], weights_oihw[0].shape[1]
    # Lane-dense layout: pad channel dims to multiples of 128 so every MXU
    # operand load and the output store is a full 128-lane vreg (no masked
    # vst.msk / strided relayouts).  No-op for production Cin=2048.
    cin_pad = _round_up(cin, 128)
    cout_pad = _round_up(cout, 128)

    # ---- one-time weight/bias repack (constant w.r.t. x; hoisted out of the
    #      per-call path).  Tap order: (conv, kh, kw). ----
    taps = []
    for ci in range(2):
        w = jnp.asarray(weights_oihw[ci])                      # OIHW (cout,cin,3,3)
        for kh in range(3):
            for kw in range(3):
                wt = jnp.transpose(w[:, :, kh, kw], (1, 0))    # (cin, cout)
                wt = jnp.pad(wt, ((0, cin_pad - cin), (0, cout_pad - cout)))
                taps.append(wt)
    w_packed = jnp.stack(taps, axis=0).astype(compute_dtype)   # (n_taps,cin_pad,cout_pad)
    b_packed = (jnp.asarray(biases[0]) + jnp.asarray(biases[1])).reshape(1, cout)
    b_packed = jnp.pad(b_packed, ((0, 0), (0, cout_pad - cout))).astype(jnp.float32)

    def forward(x_nchw):
        B, cin_x, H, W = x_nchw.shape
        assert cin_x == cin

        # H-row strip size: >= 2 strips when H allows it (feeds v7x's second
        # TensorCore at batch 1-2) and keeps the M dim (sh*W) sublane-aligned.
        # Re-derive for production shapes against the per-generation VMEM
        # budget (~48 MiB usable on v7x vs ~100 MiB on v5e/v6e).
        if strip_h is not None:
            sh = strip_h
        else:
            divisors = [d for d in range(1, H + 1) if H % d == 0]
            good = [d for d in divisors if d < H and (d * W) % 8 == 0]
            sh = max(good) if good else H
        assert H % sh == 0
        assert (sh * W) % 8 == 0 or sh == H
        n_strips = H // sh
        Hp, Wp = H + 2 * pad, W + 2 * pad

        # Per-call layout glue (drop if the surrounding pipeline is NHWC).
        x_nhwc = jnp.transpose(x_nchw, (0, 2, 3, 1))            # (B,H,W,cin)
        # One fused pad: spatial zero halo + channel lane padding.  The kernel
        # then reads taps straight out of the block -- no in-kernel zero-fill
        # and no interior copy (store bytes matter most on v5e's single vst).
        x_pad = jnp.pad(
            x_nhwc, ((0, 0), (pad, pad), (pad, pad), (0, cin_pad - cin))
        ).astype(compute_dtype)

        kernel = _make_kernel(H, W, sh, cin_pad, cout_pad, dils, pad)

        out_flat = pl.pallas_call(
            kernel,
            out_shape=jax.ShapeDtypeStruct((B, H * W, cout_pad), x_nchw.dtype),
            grid_spec=pltpu.PrefetchScalarGridSpec(
                num_scalar_prefetch=0,
                grid=(B, n_strips),
                in_specs=[
                    # Full padded image per batch element; constant in the strip
                    # index, so it is DMA'd only when the batch index changes.
                    pl.BlockSpec((None, Hp, Wp, cin_pad), lambda b, s: (b, 0, 0, 0)),
                    # Grid-invariant weight / bias (never re-DMA'd).  For v7x
                    # production shapes, single-buffer these
                    # (pipeline_mode=pl.Buffered(1)) to avoid double-buffering
                    # the large constant weight.
                    pl.BlockSpec((n_taps, cin_pad, cout_pad), lambda b, s: (0, 0, 0)),
                    pl.BlockSpec((1, cout_pad), lambda b, s: (0, 0)),
                ],
                out_specs=pl.BlockSpec((None, sh * W, cout_pad),
                                       lambda b, s: (b, s, 0)),
                scratch_shapes=[pltpu.VMEM((sh * W, cout_pad), jnp.float32)],
            ),
            compiler_params=pltpu.CompilerParams(
                dimension_semantics=("parallel", "parallel"),
                vmem_limit_bytes=vmem_limit_bytes,
            ),
        )(x_pad, w_packed, b_packed)

        out_nhwc = out_flat.reshape(B, H, W, cout_pad)[:, :, :, :cout]
        return jnp.transpose(out_nhwc, (0, 3, 1, 2))            # back to NCHW

    return forward


def _reference_forward(x_nchw, weights_oihw, biases, dilations, paddings):
    """Pure-JAX reference mirroring the PyTorch forward exactly."""
    def conv(i):
        d, p = dilations[i], paddings[i]
        y = jax.lax.conv_general_dilated(
            x_nchw, weights_oihw[i],
            window_strides=(1, 1),
            padding=[(p, p), (p, p)],
            rhs_dilation=(d, d),
            dimension_numbers=("NCHW", "OIHW", "NCHW"))
        return y + biases[i].reshape(1, -1, 1, 1)

    out = conv(0)
    for i in range(len(weights_oihw) - 1):
        out = out + conv(i + 1)
        return out        # matches PyTorch: returns inside first iteration
    return out


if __name__ == "__main__":
    # Small, deterministic configuration.
    B, inplanes, H, W = 2, 4, 16, 16
    num_classes = 6
    dilation_series = [2, 4]
    padding_series = [2, 4]

    key = jax.random.PRNGKey(0)
    kx, kw0, kw1, kb0, kb1 = jax.random.split(key, 5)

    x = jax.random.normal(kx, (B, inplanes, H, W), dtype=jnp.float32)

    # weight.data.normal_(0, 0.01) in __init__; biases small deterministic values.
    weights = [
        0.01 * jax.random.normal(kw0, (num_classes, inplanes, 3, 3), jnp.float32),
        0.01 * jax.random.normal(kw1, (num_classes, inplanes, 3, 3), jnp.float32),
    ]
    biases = [
        0.1 * jax.random.normal(kb0, (num_classes,), jnp.float32),
        0.1 * jax.random.normal(kb1, (num_classes,), jnp.float32),
    ]

    ref = _reference_forward(x, weights, biases, dilation_series, padding_series)

    # f32 MXU inputs: strict reference check.
    fwd_f32 = make_classifier_forward(weights, biases, dilation_series,
                                      padding_series, compute_dtype=jnp.float32)
    out = jax.block_until_ready(fwd_f32(x))
    assert out.shape == (B, num_classes, H, W), out.shape
    assert jnp.allclose(out, ref, atol=1e-5, rtol=1e-5), float(jnp.abs(out - ref).max())

    # bf16 MXU inputs (production setting): f32 accumulate, looser tolerance is
    # expected precision, not a bug.
    fwd_bf16 = make_classifier_forward(weights, biases, dilation_series,
                                       padding_series, compute_dtype=jnp.bfloat16)
    out_bf16 = jax.block_until_ready(fwd_bf16(x))
    assert out_bf16.shape == (B, num_classes, H, W), out_bf16.shape
    assert jnp.allclose(out_bf16, ref, atol=2e-2, rtol=2e-2), \
        float(jnp.abs(out_bf16 - ref).max())

    print("KERNEL_OK")
</pallas_src>

<mosaic_0001>
module attributes {stable_mosaic.version = 11 : i64} {
  func.func @kernel(%arg0: i32, %arg1: i32, %arg2: memref<1x24x24x128xf32, #tpu.memory_space<vmem>>, %arg3: memref<18x128x128xf32, #tpu.memory_space<vmem>>, %arg4: memref<1x128xf32, #tpu.memory_space<vmem>>, %arg5: memref<1x128x128xf32, #tpu.memory_space<vmem>>, %arg6: memref<128x128xf32, #tpu.memory_space<vmem>>) attributes {dimension_semantics = [#tpu.dimension_semantics<parallel>, #tpu.dimension_semantics<parallel>], iteration_bounds = array<i64: 2, 2>, scalar_prefetch = 0 : i64, scratch_operands = 1 : i64, tpu.core_type = #tpu.core_type<tc>, window_params = [{transform_indices = @transform_0, window_bounds = array<i64: 1, 24, 24, 128>}, {pipeline_mode = #tpu.pipeline_mode<synchronous>, transform_indices = @transform_1, window_bounds = array<i64: 18, 128, 128>}, {pipeline_mode = #tpu.pipeline_mode<synchronous>, transform_indices = @transform_2, window_bounds = array<i64: 1, 128>}, {transform_indices = @transform_3, window_bounds = array<i64: 1, 128, 128>}]} {
    %c8_i32 = arith.constant 8 : i32
    %0 = arith.muli %arg1, %c8_i32 : i32
    %1 = tpu.assume_multiple %0, 8 : i32
    %c2_i32 = arith.constant 2 : i32
    %2 = arith.addi %1, %c2_i32 : i32
    %c0 = arith.constant 0 : index
    %3 = arith.index_cast %2 : i32 to index
    %c2 = arith.constant 2 : index
    %c0_0 = arith.constant 0 : index
    %4 = vector.load %arg2[%c0, %3, %c2, %c0_0] : memref<1x24x24x128xf32, #tpu.memory_space<vmem>>, vector<1x8x16x128xf32>
    %5 = vector.shape_cast %4 : vector<1x8x16x128xf32> to vector<8x16x128xf32>
    %6 = vector.shape_cast %5 : vector<8x16x128xf32> to vector<128x128xf32>
    %c0_1 = arith.constant 0 : index
    %c0_2 = arith.constant 0 : index
    %c0_3 = arith.constant 0 : index
    %7 = vector.load %arg3[%c0_1, %c0_2, %c0_3] : memref<18x128x128xf32, #tpu.memory_space<vmem>>, vector<1x128x128xf32>
    %8 = vector.shape_cast %7 : vector<1x128x128xf32> to vector<128x128xf32>
    %cst = arith.constant dense<0.000000e+00> : vector<128x128xf32>
    %9 = tpu.matmul %6, %8, %cst {dimension_numbers = #tpu.dot_dimension_numbers<[1], [0], [0], [1], [0, 0, 1, 1], [], []>} : vector<128x128xf32>, vector<128x128xf32>, vector<128x128xf32> -> vector<128x128xf32>
    %c0_4 = arith.constant 0 : index
    %c0_5 = arith.constant 0 : index
    %10 = vector.load %arg6[%c0_4, %c0_5] : memref<128x128xf32, #tpu.memory_space<vmem>>, vector<128x128xf32>
    tpu.vector_store %arg6[%c0_4, %c0_5], %9 {strides = array<i32>} : memref<128x128xf32, #tpu.memory_space<vmem>>, vector<128x128xf32>,
    %c2_i32_6 = arith.constant 2 : i32
    %11 = arith.addi %1, %c2_i32_6 : i32
    %c0_7 = arith.constant 0 : index
    %12 = arith.index_cast %11 : i32 to index
    %c4 = arith.constant 4 : index
    %c0_8 = arith.constant 0 : index
    %13 = vector.load %arg2[%c0_7, %12, %c4, %c0_8] : memref<1x24x24x128xf32, #tpu.memory_space<vmem>>, vector<1x8x16x128xf32>
    %14 = vector.shape_cast %13 : vector<1x8x16x128xf32> to vector<8x16x128xf32>
    %15 = vector.shape_cast %14 : vector<8x16x128xf32> to vector<128x128xf32>
    %c1 = arith.constant 1 : index
    %c0_9 = arith.constant 0 : index
    %c0_10 = arith.constant 0 : index
    %16 = vector.load %arg3[%c1, %c0_9, %c0_10] : memref<18x128x128xf32, #tpu.memory_space<vmem>>, vector<1x128x128xf32>
    %17 = vector.shape_cast %16 : vector<1x128x128xf32> to vector<128x128xf32>
    %cst_11 = arith.constant dense<0.000000e+00> : vector<128x128xf32>
    %18 = tpu.matmul %15, %17, %cst_11 {dimension_numbers = #tpu.dot_dimension_numbers<[1], [0], [0], [1], [0, 0, 1, 1], [], []>} : vector<128x128xf32>, vector<128x128xf32>, vector<128x128xf32> -> vector<128x128xf32>
    %c0_12 = arith.constant 0 : index
    %c0_13 = arith.constant 0 : index
    %19 = vector.load %arg6[%c0_12, %c0_13] : memref<128x128xf32, #tpu.memory_space<vmem>>, vector<128x128xf32>
    %20 = arith.addf %19, %18 : vector<128x128xf32>
    %c0_14 = arith.constant 0 : index
    %c0_15 = arith.constant 0 : index
    %21 = vector.load %arg6[%c0_14, %c0_15] : memref<128x128xf32, #tpu.memory_space<vmem>>, vector<128x128xf32>
    tpu.vector_store %arg6[%c0_14, %c0_15], %20 {strides = array<i32>} : memref<128x128xf32, #tpu.memory_space<vmem>>, vector<128x128xf32>,
    %c2_i32_16 = arith.constant 2 : i32
    %22 = arith.addi %1, %c2_i32_16 : i32
    %c0_17 = arith.constant 0 : index
    %23 = arith.index_cast %22 : i32 to index
    %c6 = arith.constant 6 : index
    %c0_18 = arith.constant 0 : index
    %24 = vector.load %arg2[%c0_17, %23, %c6, %c0_18] : memref<1x24x24x128xf32, #tpu.memory_space<vmem>>, vector<1x8x16x128xf32>
    %25 = vector.shape_cast %24 : vector<1x8x16x128xf32> to vector<8x16x128xf32>
    %26 = vector.shape_cast %25 : vector<8x16x128xf32> to vector<128x128xf32>
    %c2_19 = arith.constant 2 : index
    %c0_20 = arith.constant 0 : index
    %c0_21 = arith.constant 0 : index
    %27 = vector.load %arg3[%c2_19, %c0_20, %c0_21] : memref<18x128x128xf32, #tpu.memory_space<vmem>>, vector<1x128x128xf32>
    %28 = vector.shape_cast %27 : vector<1x128x128xf32> to vector<128x128xf32>
    %cst_22 = arith.constant dense<0.000000e+00> : vector<128x128xf32>
    %29 = tpu.matmul %26, %28, %cst_22 {dimension_numbers = #tpu.dot_dimension_numbers<[1], [0], [0], [1], [0, 0, 1, 1], [], []>} : vector<128x128xf32>, vector<128x128xf32>, vector<128x128xf32> -> vector<128x128xf32>
    %c0_23 = arith.constant 0 : index
    %c0_24 = arith.constant 0 : index
    %30 = vector.load %arg6[%c0_23, %c0_24] : memref<128x128xf32, #tpu.memory_space<vmem>>, vector<128x128xf32>
    %31 = arith.addf %30, %29 : vector<128x128xf32>
    %c0_25 = arith.constant 0 : index
    %c0_26 = arith.constant 0 : index
    %32 = vector.load %arg6[%c0_25, %c0_26] : memref<128x128xf32, #tpu.memory_space<vmem>>, vector<128x128xf32>
    tpu.vector_store %arg6[%c0_25, %c0_26], %31 {strides = array<i32>} : memref<128x128xf32, #tpu.memory_space<vmem>>, vector<128x128xf32>,
    %c4_i32 = arith.constant 4 : i32
    %33 = arith.addi %1, %c4_i32 : i32
    %c0_27 = arith.constant 0 : index
    %34 = arith.index_cast %33 : i32 to index
    %c2_28 = arith.constant 2 : index
    %c0_29 = arith.constant 0 : index
    %35 = vector.load %arg2[%c0_27, %34, %c2_28, %c0_29] : memref<1x24x24x128xf32, #tpu.memory_space<vmem>>, vector<1x8x16x128xf32>
    %36 = vector.shape_cast %35 : vector<1x8x16x128xf32> to vector<8x16x128xf32>
    %37 = vector.shape_cast %36 : vector<8x16x128xf32> to vector<128x128xf32>
    %c3 = arith.constant 3 : index
    %c0_30 = arith.constant 0 : index
    %c0_31 = arith.constant 0 : index
    %38 = vector.load %arg3[%c3, %c0_30, %c0_31] : memref<18x128x128xf32, #tpu.memory_space<vmem>>, vector<1x128x128xf32>
    %39 = vector.shape_cast %38 : vector<1x128x128xf32> to vector<128x128xf32>
    %cst_32 = arith.constant dense<0.000000e+00> : vector<128x128xf32>
    %40 = tpu.matmul %37, %39, %cst_32 {dimension_numbers = #tpu.dot_dimension_numbers<[1], [0], [0], [1], [0, 0, 1, 1], [], []>} : vector<128x128xf32>, vector<128x128xf32>, vector<128x128xf32> -> vector<128x128xf32>
    %c0_33 = arith.constant 0 : index
    %c0_34 = arith.constant 0 : index
    %41 = vector.load %arg6[%c0_33, %c0_34] : memref<128x128xf32, #tpu.memory_space<vmem>>, vector<128x128xf32>
    %42 = arith.addf %41, %40 : vector<128x128xf32>
    %c0_35 = arith.constant 0 : index
    %c0_36 = arith.constant 0 : index
    %43 = vector.load %arg6[%c0_35, %c0_36] : memref<128x128xf32, #tpu.memory_space<vmem>>, vector<128x128xf32>
    tpu.vector_store %arg6[%c0_35, %c0_36], %42 {strides = array<i32>} : memref<128x128xf32, #tpu.memory_space<vmem>>, vector<128x128xf32>,
    %c4_i32_37 = arith.constant 4 : i32
    %44 = arith.addi %1, %c4_i32_37 : i32
    %c0_38 = arith.constant 0 : index
    %45 = arith.index_cast %44 : i32 to index
    %c4_39 = arith.constant 4 : index
    %c0_40 = arith.constant 0 : index
    %46 = vector.load %arg2[%c0_38, %45, %c4_39, %c0_40] : memref<1x24x24x128xf32, #tpu.memory_space<vmem>>, vector<1x8x16x128xf32>
    %47 = vector.shape_cast %46 : vector<1x8x16x128xf32> to vector<8x16x128xf32>
    %48 = vector.shape_cast %47 : vector<8x16x128xf32> to vector<128x128xf32>
    %c4_41 = arith.constant 4 : index
    %c0_42 = arith.constant 0 : index
    %c0_43 = arith.constant 0 : index
    %49 = vector.load %arg3[%c4_41, %c0_42, %c0_43] : memref<18x128x128xf32, #tpu.memory_space<vmem>>, vector<1x128x128xf32>
    %50 = vector.shape_cast %49 : vector<1x128x128xf32> to vector<128x128xf32>
    %cst_44 = arith.constant dense<0.000000e+00> : vector<128x128xf32>
    %51 = tpu.matmul %48, %50, %cst_44 {dimension_numbers = #tpu.dot_dimension_numbers<[1], [0], [0], [1], [0, 0, 1, 1], [], []>} : vector<128x128xf32>, vector<128x128xf32>, vector<128x128xf32> -> vector<128x128xf32>
    %c0_45 = arith.constant 0 : index
    %c0_46 = arith.constant 0 : index
    %52 = vector.load %arg6[%c0_45, %c0_46] : memref<128x128xf32, #tpu.memory_space<vmem>>, vector<128x128xf32>
    %53 = arith.addf %52, %51 : vector<128x128xf32>
    %c0_47 = arith.constant 0 : index
    %c0_48 = arith.constant 0 : index
    %54 = vector.load %arg6[%c0_47, %c0_48] : memref<128x128xf32, #tpu.memory_space<vmem>>, vector<128x128xf32>
    tpu.vector_store %arg6[%c0_47, %c0_48], %53 {strides = array<i32>} : memref<128x128xf32, #tpu.memory_space<vmem>>, vector<128x128xf32>,
    %c4_i32_49 = arith.constant 4 : i32
    %55 = arith.addi %1, %c4_i32_49 : i32
    %c0_50 = arith.constant 0 : index
    %56 = arith.index_cast %55 : i32 to index
    %c6_51 = arith.constant 6 : index
    %c0_52 = arith.constant 0 : index
    %57 = vector.load %arg2[%c0_50, %56, %c6_51, %c0_52] : memref<1x24x24x128xf32, #tpu.memory_space<vmem>>, vector<1x8x16x128xf32>
    %58 = vector.shape_cast %57 : vector<1x8x16x128xf32> to vector<8x16x128xf32>
    %59 = vector.shape_cast %58 : vector<8x16x128xf32> to vector<128x128xf32>
    %c5 = arith.constant 5 : index
    %c0_53 = arith.constant 0 : index
    %c0_54 = arith.constant 0 : index
    %60 = vector.load %arg3[%c5, %c0_53, %c0_54] : memref<18x128x128xf32, #tpu.memory_space<vmem>>, vector<1x128x128xf32>
    %61 = vector.shape_cast %60 : vector<1x128x128xf32> to vector<128x128xf32>
    %cst_55 = arith.constant dense<0.000000e+00> : vector<128x128xf32>
    %62 = tpu.matmul %59, %61, %cst_55 {dimension_numbers = #tpu.dot_dimension_numbers<[1], [0], [0], [1], [0, 0, 1, 1], [], []>} : vector<128x128xf32>, vector<128x128xf32>, vector<128x128xf32> -> vector<128x128xf32>
    %c0_56 = arith.constant 0 : index
    %c0_57 = arith.constant 0 : index
    %63 = vector.load %arg6[%c0_56, %c0_57] : memref<128x128xf32, #tpu.memory_space<vmem>>, vector<128x128xf32>
    %64 = arith.addf %63, %62 : vector<128x128xf32>
    %c0_58 = arith.constant 0 : index
    %c0_59 = arith.constant 0 : index
    %65 = vector.load %arg6[%c0_58, %c0_59] : memref<128x128xf32, #tpu.memory_space<vmem>>, vector<128x128xf32>
    tpu.vector_store %arg6[%c0_58, %c0_59], %64 {strides = array<i32>} : memref<128x128xf32, #tpu.memory_space<vmem>>, vector<128x128xf32>,
    %c6_i32 = arith.constant 6 : i32
    %66 = arith.addi %1, %c6_i32 : i32
    %c0_60 = arith.constant 0 : index
    %67 = arith.index_cast %66 : i32 to index
    %c2_61 = arith.constant 2 : index
    %c0_62 = arith.constant 0 : index
    %68 = vector.load %arg2[%c0_60, %67, %c2_61, %c0_62] : memref<1x24x24x128xf32, #tpu.memory_space<vmem>>, vector<1x8x16x128xf32>
    %69 = vector.shape_cast %68 : vector<1x8x16x128xf32> to vector<8x16x128xf32>
    %70 = vector.shape_cast %69 : vector<8x16x128xf32> to vector<128x128xf32>
    %c6_63 = arith.constant 6 : index
    %c0_64 = arith.constant 0 : index
    %c0_65 = arith.constant 0 : index
    %71 = vector.load %arg3[%c6_63, %c0_64, %c0_65] : memref<18x128x128xf32, #tpu.memory_space<vmem>>, vector<1x128x128xf32>
    %72 = vector.shape_cast %71 : vector<1x128x128xf32> to vector<128x128xf32>
    %cst_66 = arith.constant dense<0.000000e+00> : vector<128x128xf32>
    %73 = tpu.matmul %70, %72, %cst_66 {dimension_numbers = #tpu.dot_dimension_numbers<[1], [0], [0], [1], [0, 0, 1, 1], [], []>} : vector<128x128xf32>, vector<128x128xf32>, vector<128x128xf32> -> vector<128x128xf32>
    %c0_67 = arith.constant 0 : index
    %c0_68 = arith.constant 0 : index
    %74 = vector.load %arg6[%c0_67, %c0_68] : memref<128x128xf32, #tpu.memory_space<vmem>>, vector<128x128xf32>
    %75 = arith.addf %74, %73 : vector<128x128xf32>
    %c0_69 = arith.constant 0 : index
    %c0_70 = arith.constant 0 : index
    %76 = vector.load %arg6[%c0_69, %c0_70] : memref<128x128xf32, #tpu.memory_space<vmem>>, vector<128x128xf32>
    tpu.vector_store %arg6[%c0_69, %c0_70], %75 {strides = array<i32>} : memref<128x128xf32, #tpu.memory_space<vmem>>, vector<128x128xf32>,
    %c6_i32_71 = arith.constant 6 : i32
    %77 = arith.addi %1, %c6_i32_71 : i32
    %c0_72 = arith.constant 0 : index
    %78 = arith.index_cast %77 : i32 to index
    %c4_73 = arith.constant 4 : index
    %c0_74 = arith.constant 0 : index
    %79 = vector.load %arg2[%c0_72, %78, %c4_73, %c0_74] : memref<1x24x24x128xf32, #tpu.memory_space<vmem>>, vector<1x8x16x128xf32>
    %80 = vector.shape_cast %79 : vector<1x8x16x128xf32> to vector<8x16x128xf32>
    %81 = vector.shape_cast %80 : vector<8x16x128xf32> to vector<128x128xf32>
    %c7 = arith.constant 7 : index
    %c0_75 = arith.constant 0 : index
    %c0_76 = arith.constant 0 : index
    %82 = vector.load %arg3[%c7, %c0_75, %c0_76] : memref<18x128x128xf32, #tpu.memory_space<vmem>>, vector<1x128x128xf32>
    %83 = vector.shape_cast %82 : vector<1x128x128xf32> to vector<128x128xf32>
    %cst_77 = arith.constant dense<0.000000e+00> : vector<128x128xf32>
    %84 = tpu.matmul %81, %83, %cst_77 {dimension_numbers = #tpu.dot_dimension_numbers<[1], [0], [0], [1], [0, 0, 1, 1], [], []>} : vector<128x128xf32>, vector<128x128xf32>, vector<128x128xf32> -> vector<128x128xf32>
    %c0_78 = arith.constant 0 : index
    %c0_79 = arith.constant 0 : index
    %85 = vector.load %arg6[%c0_78, %c0_79] : memref<128x128xf32, #tpu.memory_space<vmem>>, vector<128x128xf32>
    %86 = arith.addf %85, %84 : vector<128x128xf32>
    %c0_80 = arith.constant 0 : index
    %c0_81 = arith.constant 0 : index
    %87 = vector.load %arg6[%c0_80, %c0_81] : memref<128x128xf32, #tpu.memory_space<vmem>>, vector<128x128xf32>
    tpu.vector_store %arg6[%c0_80, %c0_81], %86 {strides = array<i32>} : memref<128x128xf32, #tpu.memory_space<vmem>>, vector<128x128xf32>,
    %c6_i32_82 = arith.constant 6 : i32
    %88 = arith.addi %1, %c6_i32_82 : i32
    %c0_83 = arith.constant 0 : index
    %89 = arith.index_cast %88 : i32 to index
    %c6_84 = arith.constant 6 : index
    %c0_85 = arith.constant 0 : index
    %90 = vector.load %arg2[%c0_83, %89, %c6_84, %c0_85] : memref<1x24x24x128xf32, #tpu.memory_space<vmem>>, vector<1x8x16x128xf32>
    %91 = vector.shape_cast %90 : vector<1x8x16x128xf32> to vector<8x16x128xf32>
    %92 = vector.shape_cast %91 : vector<8x16x128xf32> to vector<128x128xf32>
    %c8 = arith.constant 8 : index
    %c0_86 = arith.constant 0 : index
    %c0_87 = arith.constant 0 : index
    %93 = vector.load %arg3[%c8, %c0_86, %c0_87] : memref<18x128x128xf32, #tpu.memory_space<vmem>>, vector<1x128x128xf32>
    %94 = vector.shape_cast %93 : vector<1x128x128xf32> to vector<128x128xf32>
    %cst_88 = arith.constant dense<0.000000e+00> : vector<128x128xf32>
    %95 = tpu.matmul %92, %94, %cst_88 {dimension_numbers = #tpu.dot_dimension_numbers<[1], [0], [0], [1], [0, 0, 1, 1], [], []>} : vector<128x128xf32>, vector<128x128xf32>, vector<128x128xf32> -> vector<128x128xf32>
    %c0_89 = arith.constant 0 : index
    %c0_90 = arith.constant 0 : index
    %96 = vector.load %arg6[%c0_89, %c0_90] : memref<128x128xf32, #tpu.memory_space<vmem>>, vector<128x128xf32>
    %97 = arith.addf %96, %95 : vector<128x128xf32>
    %c0_91 = arith.constant 0 : index
    %c0_92 = arith.constant 0 : index
    %98 = vector.load %arg6[%c0_91, %c0_92] : memref<128x128xf32, #tpu.memory_space<vmem>>, vector<128x128xf32>
    tpu.vector_store %arg6[%c0_91, %c0_92], %97 {strides = array<i32>} : memref<128x128xf32, #tpu.memory_space<vmem>>, vector<128x128xf32>,
    %c0_i32 = arith.constant 0 : i32
    %99 = arith.addi %1, %c0_i32 : i32
    %c0_93 = arith.constant 0 : index
    %100 = arith.index_cast %99 : i32 to index
    %c0_94 = arith.constant 0 : index
    %c0_95 = arith.constant 0 : index
    %101 = vector.load %arg2[%c0_93, %100, %c0_94, %c0_95] : memref<1x24x24x128xf32, #tpu.memory_space<vmem>>, vector<1x8x16x128xf32>
    %102 = vector.shape_cast %101 : vector<1x8x16x128xf32> to vector<8x16x128xf32>
    %103 = vector.shape_cast %102 : vector<8x16x128xf32> to vector<128x128xf32>
    %c9 = arith.constant 9 : index
    %c0_96 = arith.constant 0 : index
    %c0_97 = arith.constant 0 : index
    %104 = vector.load %arg3[%c9, %c0_96, %c0_97] : memref<18x128x128xf32, #tpu.memory_space<vmem>>, vector<1x128x128xf32>
    %105 = vector.shape_cast %104 : vector<1x128x128xf32> to vector<128x128xf32>
    %cst_98 = arith.constant dense<0.000000e+00> : vector<128x128xf32>
    %106 = tpu.matmul %103, %105, %cst_98 {dimension_numbers = #tpu.dot_dimension_numbers<[1], [0], [0], [1], [0, 0, 1, 1], [], []>} : vector<128x128xf32>, vector<128x128xf32>, vector<128x128xf32> -> vector<128x128xf32>
    %c0_99 = arith.constant 0 : index
    %c0_100 = arith.constant 0 : index
    %107 = vector.load %arg6[%c0_99, %c0_100] : memref<128x128xf32, #tpu.memory_space<vmem>>, vector<128x128xf32>
    %108 = arith.addf %107, %106 : vector<128x128xf32>
    %c0_101 = arith.constant 0 : index
    %c0_102 = arith.constant 0 : index
    %109 = vector.load %arg6[%c0_101, %c0_102] : memref<128x128xf32, #tpu.memory_space<vmem>>, vector<128x128xf32>
    tpu.vector_store %arg6[%c0_101, %c0_102], %108 {strides = array<i32>} : memref<128x128xf32, #tpu.memory_space<vmem>>, vector<128x128xf32>,
    %c0_i32_103 = arith.constant 0 : i32
    %110 = arith.addi %1, %c0_i32_103 : i32
    %c0_104 = arith.constant 0 : index
    %111 = arith.index_cast %110 : i32 to index
    %c4_105 = arith.constant 4 : index
    %c0_106 = arith.constant 0 : index
    %112 = vector.load %arg2[%c0_104, %111, %c4_105, %c0_106] : memref<1x24x24x128xf32, #tpu.memory_space<vmem>>, vector<1x8x16x128xf32>
    %113 = vector.shape_cast %112 : vector<1x8x16x128xf32> to vector<8x16x128xf32>
    %114 = vector.shape_cast %113 : vector<8x16x128xf32> to vector<128x128xf32>
    %c10 = arith.constant 10 : index
    %c0_107 = arith.constant 0 : index
    %c0_108 = arith.constant 0 : index
    %115 = vector.load %arg3[%c10, %c0_107, %c0_108] : memref<18x128x128xf32, #tpu.memory_space<vmem>>, vector<1x128x128xf32>
    %116 = vector.shape_cast %115 : vector<1x128x128xf32> to vector<128x128xf32>
    %cst_109 = arith.constant dense<0.000000e+00> : vector<128x128xf32>
    %117 = tpu.matmul %114, %116, %cst_109 {dimension_numbers = #tpu.dot_dimension_numbers<[1], [0], [0], [1], [0, 0, 1, 1], [], []>} : vector<128x128xf32>, vector<128x128xf32>, vector<128x128xf32> -> vector<128x128xf32>
    %c0_110 = arith.constant 0 : index
    %c0_111 = arith.constant 0 : index
    %118 = vector.load %arg6[%c0_110, %c0_111] : memref<128x128xf32, #tpu.memory_space<vmem>>, vector<128x128xf32>
    %119 = arith.addf %118, %117 : vector<128x128xf32>
    %c0_112 = arith.constant 0 : index
    %c0_113 = arith.constant 0 : index
    %120 = vector.load %arg6[%c0_112, %c0_113] : memref<128x128xf32, #tpu.memory_space<vmem>>, vector<128x128xf32>
    tpu.vector_store %arg6[%c0_112, %c0_113], %119 {strides = array<i32>} : memref<128x128xf32, #tpu.memory_space<vmem>>, vector<128x128xf32>,
    %c0_i32_114 = arith.constant 0 : i32
    %121 = arith.addi %1, %c0_i32_114 : i32
    %c0_115 = arith.constant 0 : index
    %122 = arith.index_cast %121 : i32 to index
    %c8_116 = arith.constant 8 : index
    %c0_117 = arith.constant 0 : index
    %123 = vector.load %arg2[%c0_115, %122, %c8_116, %c0_117] : memref<1x24x24x128xf32, #tpu.memory_space<vmem>>, vector<1x8x16x128xf32>
    %124 = vector.shape_cast %123 : vector<1x8x16x128xf32> to vector<8x16x128xf32>
    %125 = vector.shape_cast %124 : vector<8x16x128xf32> to vector<128x128xf32>
    %c11 = arith.constant 11 : index
    %c0_118 = arith.constant 0 : index
    %c0_119 = arith.constant 0 : index
    %126 = vector.load %arg3[%c11, %c0_118, %c0_119] : memref<18x128x128xf32, #tpu.memory_space<vmem>>, vector<1x128x128xf32>
    %127 = vector.shape_cast %126 : vector<1x128x128xf32> to vector<128x128xf32>
    %cst_120 = arith.constant dense<0.000000e+00> : vector<128x128xf32>
    %128 = tpu.matmul %125, %127, %cst_120 {dimension_numbers = #tpu.dot_dimension_numbers<[1], [0], [0], [1], [0, 0, 1, 1], [], []>} : vector<128x128xf32>, vector<128x128xf32>, vector<128x128xf32> -> vector<128x128xf32>
    %c0_121 = arith.constant 0 : index
    %c0_122 = arith.constant 0 : index
    %129 = vector.load %arg6[%c0_121, %c0_122] : memref<128x128xf32, #tpu.memory_space<vmem>>, vector<128x128xf32>
    %130 = arith.addf %129, %128 : vector<128x128xf32>
    %c0_123 = arith.constant 0 : index
    %c0_124 = arith.constant 0 : index
    %131 = vector.load %arg6[%c0_123, %c0_124] : memref<128x128xf32, #tpu.memory_space<vmem>>, vector<128x128xf32>
    tpu.vector_store %arg6[%c0_123, %c0_124], %130 {strides = array<i32>} : memref<128x128xf32, #tpu.memory_space<vmem>>, vector<128x128xf32>,
    %c4_i32_125 = arith.constant 4 : i32
    %132 = arith.addi %1, %c4_i32_125 : i32
    %c0_126 = arith.constant 0 : index
    %133 = arith.index_cast %132 : i32 to index
    %c0_127 = arith.constant 0 : index
    %c0_128 = arith.constant 0 : index
    %134 = vector.load %arg2[%c0_126, %133, %c0_127, %c0_128] : memref<1x24x24x128xf32, #tpu.memory_space<vmem>>, vector<1x8x16x128xf32>
    %135 = vector.shape_cast %134 : vector<1x8x16x128xf32> to vector<8x16x128xf32>
    %136 = vector.shape_cast %135 : vector<8x16x128xf32> to vector<128x128xf32>
    %c12 = arith.constant 12 : index
    %c0_129 = arith.constant 0 : index
    %c0_130 = arith.constant 0 : index
    %137 = vector.load %arg3[%c12, %c0_129, %c0_130] : memref<18x128x128xf32, #tpu.memory_space<vmem>>, vector<1x128x128xf32>
    %138 = vector.shape_cast %137 : vector<1x128x128xf32> to vector<128x128xf32>
    %cst_131 = arith.constant dense<0.000000e+00> : vector<128x128xf32>
    %139 = tpu.matmul %136, %138, %cst_131 {dimension_numbers = #tpu.dot_dimension_numbers<[1], [0], [0], [1], [0, 0, 1, 1], [], []>} : vector<128x128xf32>, vector<128x128xf32>, vector<128x128xf32> -> vector<128x128xf32>
    %c0_132 = arith.constant 0 : index
    %c0_133 = arith.constant 0 : index
    %140 = vector.load %arg6[%c0_132, %c0_133] : memref<128x128xf32, #tpu.memory_space<vmem>>, vector<128x128xf32>
    %141 = arith.addf %140, %139 : vector<128x128xf32>
    %c0_134 = arith.constant 0 : index
    %c0_135 = arith.constant 0 : index
    %142 = vector.load %arg6[%c0_134, %c0_135] : memref<128x128xf32, #tpu.memory_space<vmem>>, vector<128x128xf32>
    tpu.vector_store %arg6[%c0_134, %c0_135], %141 {strides = array<i32>} : memref<128x128xf32, #tpu.memory_space<vmem>>, vector<128x128xf32>,
    %c4_i32_136 = arith.constant 4 : i32
    %143 = arith.addi %1, %c4_i32_136 : i32
    %c0_137 = arith.constant 0 : index
    %144 = arith.index_cast %143 : i32 to index
    %c4_138 = arith.constant 4 : index
    %c0_139 = arith.constant 0 : index
    %145 = vector.load %arg2[%c0_137, %144, %c4_138, %c0_139] : memref<1x24x24x128xf32, #tpu.memory_space<vmem>>, vector<1x8x16x128xf32>
    %146 = vector.shape_cast %145 : vector<1x8x16x128xf32> to vector<8x16x128xf32>
    %147 = vector.shape_cast %146 : vector<8x16x128xf32> to vector<128x128xf32>
    %c13 = arith.constant 13 : index
    %c0_140 = arith.constant 0 : index
    %c0_141 = arith.constant 0 : index
    %148 = vector.load %arg3[%c13, %c0_140, %c0_141] : memref<18x128x128xf32, #tpu.memory_space<vmem>>, vector<1x128x128xf32>
    %149 = vector.shape_cast %148 : vector<1x128x128xf32> to vector<128x128xf32>
    %cst_142 = arith.constant dense<0.000000e+00> : vector<128x128xf32>
    %150 = tpu.matmul %147, %149, %cst_142 {dimension_numbers = #tpu.dot_dimension_numbers<[1], [0], [0], [1], [0, 0, 1, 1], [], []>} : vector<128x128xf32>, vector<128x128xf32>, vector<128x128xf32> -> vector<128x128xf32>
    %c0_143 = arith.constant 0 : index
    %c0_144 = arith.constant 0 : index
    %151 = vector.load %arg6[%c0_143, %c0_144] : memref<128x128xf32, #tpu.memory_space<vmem>>, vector<128x128xf32>
    %152 = arith.addf %151, %150 : vector<128x128xf32>
    %c0_145 = arith.constant 0 : index
    %c0_146 = arith.constant 0 : index
    %153 = vector.load %arg6[%c0_145, %c0_146] : memref<128x128xf32, #tpu.memory_space<vmem>>, vector<128x128xf32>
    tpu.vector_store %arg6[%c0_145, %c0_146], %152 {strides = array<i32>} : memref<128x128xf32, #tpu.memory_space<vmem>>, vector<128x128xf32>,
    %c4_i32_147 = arith.constant 4 : i32
    %154 = arith.addi %1, %c4_i32_147 : i32
    %c0_148 = arith.constant 0 : index
    %155 = arith.index_cast %154 : i32 to index
    %c8_149 = arith.constant 8 : index
    %c0_150 = arith.constant 0 : index
    %156 = vector.load %arg2[%c0_148, %155, %c8_149, %c0_150] : memref<1x24x24x128xf32, #tpu.memory_space<vmem>>, vector<1x8x16x128xf32>
    %157 = vector.shape_cast %156 : vector<1x8x16x128xf32> to vector<8x16x128xf32>
    %158 = vector.shape_cast %157 : vector<8x16x128xf32> to vector<128x128xf32>
    %c14 = arith.constant 14 : index
    %c0_151 = arith.constant 0 : index
    %c0_152 = arith.constant 0 : index
    %159 = vector.load %arg3[%c14, %c0_151, %c0_152] : memref<18x128x128xf32, #tpu.memory_space<vmem>>, vector<1x128x128xf32>
    %160 = vector.shape_cast %159 : vector<1x128x128xf32> to vector<128x128xf32>
    %cst_153 = arith.constant dense<0.000000e+00> : vector<128x128xf32>
    %161 = tpu.matmul %158, %160, %cst_153 {dimension_numbers = #tpu.dot_dimension_numbers<[1], [0], [0], [1], [0, 0, 1, 1], [], []>} : vector<128x128xf32>, vector<128x128xf32>, vector<128x128xf32> -> vector<128x128xf32>
    %c0_154 = arith.constant 0 : index
    %c0_155 = arith.constant 0 : index
    %162 = vector.load %arg6[%c0_154, %c0_155] : memref<128x128xf32, #tpu.memory_space<vmem>>, vector<128x128xf32>
    %163 = arith.addf %162, %161 : vector<128x128xf32>
    %c0_156 = arith.constant 0 : index
    %c0_157 = arith.constant 0 : index
    %164 = vector.load %arg6[%c0_156, %c0_157] : memref<128x128xf32, #tpu.memory_space<vmem>>, vector<128x128xf32>
    tpu.vector_store %arg6[%c0_156, %c0_157], %163 {strides = array<i32>} : memref<128x128xf32, #tpu.memory_space<vmem>>, vector<128x128xf32>,
    %c8_i32_158 = arith.constant 8 : i32
    %165 = arith.addi %1, %c8_i32_158 : i32
    %c0_159 = arith.constant 0 : index
    %166 = arith.index_cast %165 : i32 to index
    %c0_160 = arith.constant 0 : index
    %c0_161 = arith.constant 0 : index
    %167 = vector.load %arg2[%c0_159, %166, %c0_160, %c0_161] : memref<1x24x24x128xf32, #tpu.memory_space<vmem>>, vector<1x8x16x128xf32>
    %168 = vector.shape_cast %167 : vector<1x8x16x128xf32> to vector<8x16x128xf32>
    %169 = vector.shape_cast %168 : vector<8x16x128xf32> to vector<128x128xf32>
    %c15 = arith.constant 15 : index
    %c0_162 = arith.constant 0 : index
    %c0_163 = arith.constant 0 : index
    %170 = vector.load %arg3[%c15, %c0_162, %c0_163] : memref<18x128x128xf32, #tpu.memory_space<vmem>>, vector<1x128x128xf32>
    %171 = vector.shape_cast %170 : vector<1x128x128xf32> to vector<128x128xf32>
    %cst_164 = arith.constant dense<0.000000e+00> : vector<128x128xf32>
    %172 = tpu.matmul %169, %171, %cst_164 {dimension_numbers = #tpu.dot_dimension_numbers<[1], [0], [0], [1], [0, 0, 1, 1], [], []>} : vector<128x128xf32>, vector<128x128xf32>, vector<128x128xf32> -> vector<128x128xf32>
    %c0_165 = arith.constant 0 : index
    %c0_166 = arith.constant 0 : index
    %173 = vector.load %arg6[%c0_165, %c0_166] : memref<128x128xf32, #tpu.memory_space<vmem>>, vector<128x128xf32>
    %174 = arith.addf %173, %172 : vector<128x128xf32>
    %c0_167 = arith.constant 0 : index
    %c0_168 = arith.constant 0 : index
    %175 = vector.load %arg6[%c0_167, %c0_168] : memref<128x128xf32, #tpu.memory_space<vmem>>, vector<128x128xf32>
    tpu.vector_store %arg6[%c0_167, %c0_168], %174 {strides = array<i32>} : memref<128x128xf32, #tpu.memory_space<vmem>>, vector<128x128xf32>,
    %c8_i32_169 = arith.constant 8 : i32
    %176 = arith.addi %1, %c8_i32_169 : i32
    %c0_170 = arith.constant 0 : index
    %177 = arith.index_cast %176 : i32 to index
    %c4_171 = arith.constant 4 : index
    %c0_172 = arith.constant 0 : index
    %178 = vector.load %arg2[%c0_170, %177, %c4_171, %c0_172] : memref<1x24x24x128xf32, #tpu.memory_space<vmem>>, vector<1x8x16x128xf32>
    %179 = vector.shape_cast %178 : vector<1x8x16x128xf32> to vector<8x16x128xf32>
    %180 = vector.shape_cast %179 : vector<8x16x128xf32> to vector<128x128xf32>
    %c16 = arith.constant 16 : index
    %c0_173 = arith.constant 0 : index
    %c0_174 = arith.constant 0 : index
    %181 = vector.load %arg3[%c16, %c0_173, %c0_174] : memref<18x128x128xf32, #tpu.memory_space<vmem>>, vector<1x128x128xf32>
    %182 = vector.shape_cast %181 : vector<1x128x128xf32> to vector<128x128xf32>
    %cst_175 = arith.constant dense<0.000000e+00> : vector<128x128xf32>
    %183 = tpu.matmul %180, %182, %cst_175 {dimension_numbers = #tpu.dot_dimension_numbers<[1], [0], [0], [1], [0, 0, 1, 1], [], []>} : vector<128x128xf32>, vector<128x128xf32>, vector<128x128xf32> -> vector<128x128xf32>
    %c0_176 = arith.constant 0 : index
    %c0_177 = arith.constant 0 : index
    %184 = vector.load %arg6[%c0_176, %c0_177] : memref<128x128xf32, #tpu.memory_space<vmem>>, vector<128x128xf32>
    %185 = arith.addf %184, %183 : vector<128x128xf32>
    %c0_178 = arith.constant 0 : index
    %c0_179 = arith.constant 0 : index
    %186 = vector.load %arg6[%c0_178, %c0_179] : memref<128x128xf32, #tpu.memory_space<vmem>>, vector<128x128xf32>
    tpu.vector_store %arg6[%c0_178, %c0_179], %185 {strides = array<i32>} : memref<128x128xf32, #tpu.memory_space<vmem>>, vector<128x128xf32>,
    %c8_i32_180 = arith.constant 8 : i32
    %187 = arith.addi %1, %c8_i32_180 : i32
    %c0_181 = arith.constant 0 : index
    %188 = arith.index_cast %187 : i32 to index
    %c8_182 = arith.constant 8 : index
    %c0_183 = arith.constant 0 : index
    %189 = vector.load %arg2[%c0_181, %188, %c8_182, %c0_183] : memref<1x24x24x128xf32, #tpu.memory_space<vmem>>, vector<1x8x16x128xf32>
    %190 = vector.shape_cast %189 : vector<1x8x16x128xf32> to vector<8x16x128xf32>
    %191 = vector.shape_cast %190 : vector<8x16x128xf32> to vector<128x128xf32>
    %c17 = arith.constant 17 : index
    %c0_184 = arith.constant 0 : index
    %c0_185 = arith.constant 0 : index
    %192 = vector.load %arg3[%c17, %c0_184, %c0_185] : memref<18x128x128xf32, #tpu.memory_space<vmem>>, vector<1x128x128xf32>
    %193 = vector.shape_cast %192 : vector<1x128x128xf32> to vector<128x128xf32>
    %cst_186 = arith.constant dense<0.000000e+00> : vector<128x128xf32>
    %194 = tpu.matmul %191, %193, %cst_186 {dimension_numbers = #tpu.dot_dimension_numbers<[1], [0], [0], [1], [0, 0, 1, 1], [], []>} : vector<128x128xf32>, vector<128x128xf32>, vector<128x128xf32> -> vector<128x128xf32>
    %c0_187 = arith.constant 0 : index
    %c0_188 = arith.constant 0 : index
    %195 = vector.load %arg6[%c0_187, %c0_188] : memref<128x128xf32, #tpu.memory_space<vmem>>, vector<128x128xf32>
    %196 = arith.addf %195, %194 : vector<128x128xf32>
    %c0_189 = arith.constant 0 : index
    %c0_190 = arith.constant 0 : index
    %197 = vector.load %arg6[%c0_189, %c0_190] : memref<128x128xf32, #tpu.memory_space<vmem>>, vector<128x128xf32>
    tpu.vector_store %arg6[%c0_189, %c0_190], %196 {strides = array<i32>} : memref<128x128xf32, #tpu.memory_space<vmem>>, vector<128x128xf32>,
    %c0_191 = arith.constant 0 : index
    %c0_192 = arith.constant 0 : index
    %198 = vector.load %arg6[%c0_191, %c0_192] : memref<128x128xf32, #tpu.memory_space<vmem>>, vector<128x128xf32>
    %c0_193 = arith.constant 0 : index
    %c0_194 = arith.constant 0 : index
    %199 = vector.load %arg4[%c0_193, %c0_194] : memref<1x128xf32, #tpu.memory_space<vmem>>, vector<1x128xf32>
    %200 = vector.broadcast %199 : vector<1x128xf32> to vector<128x128xf32>
    %201 = arith.addf %198, %200 : vector<128x128xf32>
    %c0_195 = arith.constant 0 : index
    %c0_196 = arith.constant 0 : index
    %c0_197 = arith.constant 0 : index
    %202 = vector.load %arg5[%c0_195, %c0_196, %c0_197] : memref<1x128x128xf32, #tpu.memory_space<vmem>>, vector<1x128x128xf32>
    %203 = vector.shape_cast %202 : vector<1x128x128xf32> to vector<128x128xf32>
    %204 = vector.shape_cast %201 : vector<128x128xf32> to vector<1x128x128xf32>
    tpu.vector_store %arg5[%c0_195, %c0_196, %c0_197], %204 {strides = array<i32>} : memref<1x128x128xf32, #tpu.memory_space<vmem>>, vector<1x128x128xf32>,
    return
  }
  func.func @transform_0(%arg0: i32, %arg1: i32) -> (i32, i32, i32, i32) {
    %c0_i32 = arith.constant 0 : i32
    %c0_i32_0 = arith.constant 0 : i32
    %c0_i32_1 = arith.constant 0 : i32
    %c0_i32_2 = arith.constant 0 : i32
    return %arg0, %c0_i32, %c0_i32_0, %c0_i32_1 : i32, i32, i32, i32
  }
  func.func @transform_1(%arg0: i32, %arg1: i32) -> (i32, i32, i32) {
    %c0_i32 = arith.constant 0 : i32
    %c0_i32_0 = arith.constant 0 : i32
    %c0_i32_1 = arith.constant 0 : i32
    %c0_i32_2 = arith.constant 0 : i32
    return %c0_i32, %c0_i32_0, %c0_i32_1 : i32, i32, i32
  }
  func.func @transform_2(%arg0: i32, %arg1: i32) -> (i32, i32) {
    %c0_i32 = arith.constant 0 : i32
    %c0_i32_0 = arith.constant 0 : i32
    %c0_i32_1 = arith.constant 0 : i32
    return %c0_i32, %c0_i32_0 : i32, i32
  }
  func.func @transform_3(%arg0: i32, %arg1: i32) -> (i32, i32, i32) {
    %c0_i32 = arith.constant 0 : i32
    %c0_i32_0 = arith.constant 0 : i32
    return %arg0, %arg1, %c0_i32 : i32, i32, i32
  }
}

</mosaic_0001>

<bundles_post_ra>
// kernel: tpu_custom_call.1
= control target key start
LH: loop header
LB: loop body
LE: loop exit
PB: predicated region body
PF: predicated region fallthrough
CT: control target
= control target key end

     0   :  { %s4712_s0 = inlined_call_operand.hbm [shape: f32[2,24,24,128], index: 0, kind: input, shape index: {}]   ;;  %s4713_s1 = inlined_call_operand.hbm [shape: f32[18,128,128], index: 1, kind: input, shape index: {}]   ;;  %s4714_s2 = inlined_call_operand.hbm [shape: f32[1,128], index: 2, kind: input, shape index: {}]   ;;  %s4715_s3 = inlined_call_operand.hbm [shape: f32[2,256,128], index: 3, kind: output, shape index: {}]  }
   0x1   :  { %4728 = sst [smem:[#allocation27_spill]] %s4713_s1 }
   0x2   :  { %4729 = sst [smem:[#allocation28_spill]] %s4714_s2 }
   0x3   :  { %8 = vsyncpa [#allocation4], 0 }
   0x4   :  { %10 = vsyncpa [#allocation4 + $0x1], 0 }
   0x5   :  { %11 = vsyncpa [#allocation7], 0 }
   0x6   :  { %12 = vsyncpa [#allocation5], 0 }
   0x7   :  { %14 = vsyncpa [#allocation5 + $0x1], 0  ;;  %s3715_s12 = smov 0   ;;  %s3717_s13 = smov 0  }
   0x8   :  { %s3719_s14 = smov 0   ;;  %s3721_s15 = smov 0  }
   0x9   :  { %s3723_s16 = smov 0   ;;  %s3725_s17 = smov 0  }
   0xa   :  { %s3727_s18 = smov 0   ;;  %s3729_s19 = smov 0  }
   0xb   :  { %s3731_s20 = smov 0   ;;  %s3733_s21 = smov 0  }
   0xc   :  { %s3735_s22 = smov 0  }
   0xd LB: > { %4730 = sst [smem:[#allocation13_spill]] %s3647_s12  ;;  %s3041_s23 = sadd.s32 4294967295, %s3687_s22   ;;  %s3687_s22 = sphi %s3735_s22, %s20_s22   ;;  %s3683_s21 = sphi %s3733_s21, %s4776_s21   ;;  %s3679_s20 = sphi %s3731_s20, %s4767_s20   ;;  %s3675_s19 = sphi %s3729_s19, %s4775_s19   ;;  %s3671_s18 = sphi %s3727_s18, %s4766_s18   ;;  %s3667_s17 = sphi %s3725_s17, %s4774_s17   ;;  %s3663_s16 = sphi %s3723_s16, %s4773_s16   ;;  %s3659_s15 = sphi %s3721_s15, %s4772_s15   ;;  %s3655_s14 = sphi %s3719_s14, %s4771_s14   ;;  %s3651_s13 = sphi %s3717_s13, %s4770_s13   ;;  %s3647_s12 = sphi %s3715_s12, %s4769_s12  }
   0xe   : > { %4731 = sst [smem:[#allocation14_spill]] %s3679_s20  ;;  %s3042_s24 = sadd.s32 4294967294, %s3687_s22  }
   0xf   : > { %p52_p0 = scmp.ne.s32.totalorder %s3663_s16, %s3659_s15  ;;  %p3771_p1 = scmp.eq.s32.totalorder %s3041_s23, 0 }
  0x10   : > { %p119_p2 = scmp.ne.s32.totalorder %s3655_s14, %s3651_s13  ;;  %p120_p3 = scmp.eq.s32.totalorder %s3041_s23, 3 }
  0x11   : > { %p3779_p4 = por %p3771_p1, %p52_p0  ;;  %p125_p5 = scmp.ne.s32.totalorder %s3651_s13, %s3647_s12 }
  0x12   : > { %p3785_p6 = por %p120_p3, %p119_p2  ;;  %p126_p7 = scmp.eq.s32.totalorder %s3042_s24, 3 }
  0x13   : > { %p3043_p8 = scmp.ge.s32.totalorder %s3687_s22, 1  ;;  %p133_p9 = scmp.lt.s32.totalorder %s3687_s22, 5 }
  0x14   : > { %s4734_s27 = scalar_select %p3785_p6, 1, 0 }
  0x15   : > { %p3791_p10 = por %p126_p7, %p125_p5  ;;  %p3795_p11 = pnand %p3043_p8, %p133_p9 }
  0x16   : > { %4735 = sst [smem:[#allocation15_spill]] %s4734_s27  ;;  %s3689_s6 = smov [#allocation6]  }
  0x17   : > { %s4736_s28 = scalar_select %p3791_p10, 1, 0 }
  0x18   : > { %s4739_s1 = sld [smem:[#allocation27_spill]]  ;;  %p3355_p12 = pneg %p3795_p11 }
  0x19   : > { %4737 = sst [smem:[#allocation16_spill]] %s4736_s28  ;;  %s146_s7 = sshll.u32 %s3689_s6, 4  ;;  %s147_s7 = int_to_ptr.vmem [resolvable:$true] %s146_s7 }
  0x1a   : > { %p3356_p13 = pnand %p3355_p12, %p3771_p1  ;;  %s4740_s2 = sld [smem:[#allocation28_spill]] }
  0x1b   : > { %s4716_s11 = smov 128   ;;  %s4717_s15 = smov 8  }
  0x1c   : > { %s3692_s23 = smov [#allocation8]   ;;  %s29_s30 = sadd.s32 1, %s3679_s20 }
  0x1d   : > { %s161_s24 = sshll.u32 %s3692_s23, 4  ;;  %p30_p0 = scmp.ge.s32.totalorder %s29_s30, 2  ;;  %s162_s24 = int_to_ptr.vmem [resolvable:$true] %s161_s24 }
  0x1e   : > { %s144_s5 = sshll.u32 %s4739_s1, 4  ;;  %s32_s4 = sadd.s32 1, %s3683_s21  ;;  %s145_s5 = int_to_ptr.hbm [resolvable:$true] %s144_s5 }
  0x1f   : > { %3358 = dma.hbm_to_vmem [thread:$0]  (!%p3356_p13), %s145_s5, 36864, %s147_s7, [#allocation7], %s4716_s11, %s4716_s11, %s4717_s15  }
  0x20   : > { %s159_s10 = sshll.u32 %s4740_s2, 4  ;;  %p46_p2 = scmp.ne.s32.totalorder %s3667_s17, %s3663_s16  ;;  %s160_s10 = int_to_ptr.hbm [resolvable:$true] %s159_s10 }
  0x21   : > { %3361 = dma.hbm_to_vmem [thread:$0]  (!%p3356_p13), %s160_s10, 16, %s162_s24, [#allocation7]  }
  0x22   : > { %s4778_s30 = smov (%p30_p0, %s29_s30), 0  ;;  %s4780_s4 = smov (!%p30_p0, %s32_s4), %s3683_s21 }
  0x23   : > { %4741 = sst [smem:[#allocation17_spill]] %s4778_s30  ;;  %s39_s6 = sadd.s32 1, %s3667_s17 }
  0x24   : > { %p47_p3 = scmp.eq.s32.totalorder %s3687_s22, 0  ;;  %p34_p5 = scmp.ge.s32.totalorder %s4780_s4, 2 }
  0x25   : > { %s105_s5 = ssub.s32 %s3679_s20, %s4778_s30  ;;  %s109_s8 = sadd.s32 1, %s3655_s14 }
  0x26   : > { %p3823_p7 = por %p47_p3, %p46_p2  ;;  %s4782_s4 = smov (%p34_p5, %s4780_s4), 0 }
  0x27   : > { %4743 = sst [smem:[#allocation18_spill]] %s4782_s4  ;;  %p3372_p8 = scmp.lt.s32.totalorder %s3687_s22, 4 }
  0x28   : > { %s172_s9 = sand.u32 1, %s3667_s17   ;;  %s36_s10 = ssub.s32 %s3683_s21, %s4782_s4 }
  0x29   : > { %s3341_s23 = smul.u32 576, %s3683_s21  ;;  %p37_p9 = scmp.eq.s32.totalorder %s36_s10, 0 }
  0x2a   : > { %s106_s24 = sor.u32 %s105_s5, %s36_s10  ;;  %s3340_s11 = smul.u32 576, %s172_s9 }
  0x2b   : > { %p107_p12 = scmp.eq.s32.totalorder %s106_s24, 0  ;;  %s181_s20 = scalar_lea.hbm %s4712_s0, %s3341_s23 }
  0x2c   : > { %s3836_s15 = scalar_select %p37_p9, %s3667_s17, %s39_s6  }
  0x2d   : > { %s3839_s1 = scalar_select %p107_p12, %s3655_s14, %s109_s8  }
  0x2e   : > { %s182_s28 = sshll.u32 %s181_s20, 4  ;;  %s176_s12 = scalar_lea.vmem [#allocation3], %s3340_s11  ;;  %s183_s28 = int_to_ptr.hbm [resolvable:$true] %s182_s28 }
  0x2f   : > { %s184_s27 = sshll.u32 %s176_s12, 4  ;;  %p3363_p13 = pnand %p3372_p8, %p3823_p7  ;;  %s185_s27 = int_to_ptr.vmem [resolvable:$true] %s184_s27 }
  0x30   : > { %s173_s4 = scalar_lea.sflag [#allocation4], %s172_s9  ;;  %s4744_s5 = smov 8  }
  0x31   : > { %s4745_s10 = smov 128   ;;  %196 = sbr.rel (%p3795_p11) target bundleno = 807 (0x327), region = 32 }
  0x32   : > { %3365 = dma.hbm_to_vmem [thread:$0]  (!%p3363_p13), %s183_s28, 9216, %s185_s27, %s173_s4, %s4745_s10, %s4745_s10, %s4744_s5  }
  0x36   : > { %s198_s2 = sand.u32 1, %s3663_s16  }
  0x37   : > { %s3854_s30 = smul.u32 576, %s198_s2  ;;  %s199_s12 = scalar_lea.sflag [#allocation4], %s198_s2 }
  0x39   : > { %s202_s20 = scalar_lea.vmem [#allocation3], %s3854_s30 }
  0x3a   : > { %3634 = dma.done.wait (%p3779_p4), %s199_s12, 9216  }
  0x3b   : > { %3636 = vsyncadd (%p3779_p4), %s199_s12, 4294958080 }
  0x3c   : > { %3638 = dma.done.wait (%p3771_p1), [#allocation7], 36880  }
  0x3d   : > { %3640 = vsyncadd (%p3771_p1), [#allocation7], 4294930416  ;;  %v272_v0 = vld [vmem:[#allocation6 + $0x78] sm:$0xff]  ;;  %v271_v2 = vld [vmem:[#allocation6 + $0x70] sm:$0xff]  ;;  %s3054_s25 = smul.u32 192, %s3671_s18  ;;  %s233_s27 = sand.u32 1, %s3651_s13  }
  0x3e   : > { %v386_v1 = vld [vmem:[#allocation6 + $0xf8] sm:$0xff]  ;;  %3308 = vmatpush.msra.mxu2 %v272_v0  ;;  %v385_v3 = vld [vmem:[#allocation6 + $0xf0] sm:$0xff]  ;;  %v270_v4 = vld [vmem:[#allocation6 + $0x68] sm:$0xff]  ;;  %273 = vmatpush.msra.mxu0 %v272_v0  ;;  %s3051_s28 = sshll.u32 %s233_s27, 7  ;;  %s3303_s11 = sshll.u32 %s3671_s18, 4 }
  0x3f   : > { %3324 = vmatpush.msra.mxu3 %v386_v1  ;;  %v384_v5 = vld [vmem:[#allocation6 + $0xe8] sm:$0xff]  ;;  %387 = vmatpush.msra.mxu1 %v386_v1  ;;  %v269_v6 = vld [vmem:[#allocation6 + $0x60] sm:$0xff]  ;;  %v268_v8 = vld [vmem:[#allocation6 + $0x58] sm:$0xff]  ;;  %s3868_s26 = scalar_lea.vmem %s202_s20, %s3054_s25 [#allocation3]  ;;  %s4610_s29 = scalar_lea.vmem [#allocation9], %s3051_s28 }
  0x40   : > { %3309 = vmatpush.msra.mxu2 %v271_v2  ;;  %v383_v7 = vld [vmem:[#allocation6 + $0xe0] sm:$0xff]  ;;  %274 = vmatpush.msra.mxu0 %v271_v2  ;;  %v382_v9 = vld [vmem:[#allocation6 + $0xd8] sm:$0xff]  ;;  %v267_v10 = vld [vmem:[#allocation6 + $0x50] sm:$0xff]  ;;  %s3304_s4 = sshll.u32 %s3675_s19, 5  ;;  %s2914_s23 = sshll.u32 %s4610_s29, 4  ;;  %s2915_s23 = int_to_ptr.vmem [resolvable:$true] %s2914_s23 }
  0x41   : > { %3325 = vmatpush.msra.mxu3 %v385_v3  ;;  %388 = vmatpush.msra.mxu1 %v385_v3  ;;  %v381_v11 = vld [vmem:[#allocation6 + $0xd0] sm:$0xff]  ;;  %v266_v12 = vld [vmem:[#allocation6 + $0x48] sm:$0xff]  ;;  %v265_v14 = vld [vmem:[#allocation6 + $0x40] sm:$0xff]  ;;  %s2911_s6 = sadd.s32 %s3304_s4, %s3303_s11  ;;  %s2900_s5 = scalar_lea.sflag [#allocation5], %s233_s27 }
  0x42   : > { %3310 = vmatpush.msra.mxu2 %v270_v4  ;;  %275 = vmatpush.msra.mxu0 %v270_v4  ;;  %v380_v13 = vld [vmem:[#allocation6 + $0xc8] sm:$0xff]  ;;  %v379_v15 = vld [vmem:[#allocation6 + $0xc0] sm:$0xff]  ;;  %v264_v16 = vld [vmem:[#allocation6 + $0x38] sm:$0xff]  ;;  %s3305_s7 = sshll.u32 %s2911_s6, 3  ;;  %s3581_s20 = scalar_lea.hbm %s4715_s3, 512 }
  0x43   : > { %3326 = vmatpush.msra.mxu3 %v384_v5  ;;  %389 = vmatpush.msra.mxu1 %v384_v5  ;;  %v378_v17 = vld [vmem:[#allocation6 + $0xb8] sm:$0xff]  ;;  %v263_v18 = vld [vmem:[#allocation6 + $0x30] sm:$0xff]  ;;  %v262_v20 = vld [vmem:[#allocation6 + $0x28] sm:$0xff]  ;;  %s2913_s19 = scalar_lea.hbm %s4715_s3, %s3305_s7 }
  0x44   : > { %3311 = vmatpush.msra.mxu2 %v269_v6  ;;  %276 = vmatpush.msra.mxu0 %v269_v6  ;;  %v377_v19 = vld [vmem:[#allocation6 + $0xb0] sm:$0xff]  ;;  %v376_v21 = vld [vmem:[#allocation6 + $0xa8] sm:$0xff]  ;;  %v261_v22 = vld [vmem:[#allocation6 + $0x20] sm:$0xff]  ;;  %s2916_s24 = sshll.u32 %s2913_s19, 4  ;;  %s2917_s24 = int_to_ptr.hbm [resolvable:$true] %s2916_s24 }
  0x45   : > { %3327 = vmatpush.msra.mxu3 %v383_v7  ;;  %390 = vmatpush.msra.mxu1 %v383_v7  ;;  %v375_v23 = vld [vmem:[#allocation6 + $0xa0] sm:$0xff]  ;;  %v260_v24 = vld [vmem:[#allocation6 + $0x18] sm:$0xff]  ;;  %v259_v26 = vld [vmem:[#allocation6 + $0x10] sm:$0xff]  ;;  %s3575_s10 = sshra.s32 %s2917_s24, 4  ;;  %s3576_s10 = int_to_ptr.hbm [resolvable:$true] %s3575_s10 }
  0x46   : > { %3312 = vmatpush.msra.mxu2 %v268_v8  ;;  %277 = vmatpush.msra.mxu0 %v268_v8  ;;  %v374_v25 = vld [vmem:[#allocation6 + $0x98] sm:$0xff]  ;;  %v373_v27 = vld [vmem:[#allocation6 + $0x90] sm:$0xff]  ;;  %v258_v28 = vld [vmem:[#allocation6 + $0x8] sm:$0xff]  ;;  %s3577_s2 = scalar_lea.hbm %s3576_s10, 128  ;;  %p3582_p0 = scmp.lt.s32.totalorder %s3576_s10, %s4715_s3 }
  0x47   : > { %3328 = vmatpush.msra.mxu3 %v382_v9  ;;  %391 = vmatpush.msra.mxu1 %v382_v9  ;;  %v372_v29 = vld [vmem:[#allocation6 + $0x88] sm:$0xff]  ;;  %v257_v30 = vld [vmem:[#allocation6] sm:$0xff]  ;;  %v3871_v32 = vld [vmem:[%s3868_s26 + $0x92] sm:$0xff]  ;;  %p3578_p1 = scmp.ne.s32.totalorder %s3576_s10, %s3577_s2  ;;  %p3583_p2 = scmp.lt.s32.totalorder %s3581_s20, %s3577_s2 }
  0x48   : > { %3313 = vmatpush.msra.mxu2 %v267_v10  ;;  %278 = vmatpush.msra.mxu0 %v267_v10  ;;  %v371_v31 = vld [vmem:[#allocation6 + $0x80] sm:$0xff]  ;;  %v3874_v33 = vld [vmem:[%s3868_s26 + $0x94] sm:$0xff]  ;;  %v530_v40 = vld [vmem:[#allocation6 + $0x168] sm:$0xff] }
  0x49   : > { %3329 = vmatpush.msra.mxu3 %v381_v11  ;;  %392 = vmatpush.msra.mxu1 %v381_v11  ;;  %v532_v34 = vld [vmem:[#allocation6 + $0x178] sm:$0xff]  ;;  %v531_v36 = vld [vmem:[#allocation6 + $0x170] sm:$0xff]  ;;  %v679_v41 = vld [vmem:[#allocation6 + $0x1e8] sm:$0xff]  ;;  %p3579_p4 = pnand %p3578_p1, %p3785_p6  ;;  %p3584_p3 = por %p3583_p2, %p3582_p0 }
  0x4a   : > { %3314 = vmatpush.msra.mxu2 %v266_v12  ;;  %279 = vmatpush.msra.mxu0 %v266_v12  ;;  %v681_v35 = vld [vmem:[#allocation6 + $0x1f8] sm:$0xff]  ;;  %v680_v37 = vld [vmem:[#allocation6 + $0x1f0] sm:$0xff]  ;;  %v529_v44 = vld [vmem:[#allocation6 + $0x160] sm:$0xff] }
  0x4b   : > { %3330 = vmatpush.msra.mxu3 %v380_v13  ;;  %393 = vmatpush.msra.mxu1 %v380_v13  ;;  %v3055_v38 = vld [vmem:[%s3868_s26 + $0x32] sm:$0xff]  ;;  %v678_v45 = vld [vmem:[#allocation6 + $0x1e0] sm:$0xff]  ;;  %v825_v52 = vld [vmem:[#allocation6 + $0x268] sm:$0xff]  ;;  %p3580_p11 = pneg %p3579_p4 }
  0x4c   : > { %3315 = vmatpush.msra.mxu2 %v265_v14  ;;  %280 = vmatpush.msra.mxu0 %v265_v14  ;;  %v3071_v39 = vld [vmem:[%s3868_s26 + $0x34] sm:$0xff]  ;;  %v3884_v47 = vld [vmem:[%s3868_s26 + $0x9c] sm:$0xff]  ;;  %v971_v56 = vld [vmem:[#allocation6 + $0x2e8] sm:$0xff] }
  0x4d   : > { %3331 = vmatpush.msra.mxu3 %v379_v15  ;;  %394 = vmatpush.msra.mxu1 %v379_v15  ;;  %v827_v42 = vld [vmem:[#allocation6 + $0x278] sm:$0xff]  ;;  %v826_v48 = vld [vmem:[#allocation6 + $0x270] sm:$0xff]  ;;  %v824_v58 = vld [vmem:[#allocation6 + $0x260] sm:$0xff]  ;;  %p3585_p5 = pnand %p3584_p3, %p3580_p11 }
  0x4e   : > { %3316 = vmatpush.msra.mxu2 %v264_v16  ;;  %281 = vmatpush.msra.mxu0 %v264_v16  ;;  %v973_v43 = vld [vmem:[#allocation6 + $0x2f8] sm:$0xff]  ;;  %v972_v50 = vld [vmem:[#allocation6 + $0x2f0] sm:$0xff]  ;;  %v526_v59 = vld [vmem:[#allocation6 + $0x148] sm:$0xff] }
  0x4f   : > { %3332 = vmatpush.msra.mxu3 %v378_v17  ;;  %395 = vmatpush.msra.mxu1 %v378_v17  ;;  %v3881_v46 = vld [vmem:[%s3868_s26 + $0x9a] sm:$0xff]  ;;  %v527_v53 = vld [vmem:[#allocation6 + $0x150] sm:$0xff]  ;;  %v675_v61 = vld [vmem:[#allocation6 + $0x1c8] sm:$0xff] }
  0x50   : > { %3317 = vmatpush.msra.mxu2 %v263_v18  ;;  %282 = vmatpush.msra.mxu0 %v263_v18  ;;  %v528_v49 = vld [vmem:[#allocation6 + $0x158] sm:$0xff]  ;;  %v676_v57 = vld [vmem:[#allocation6 + $0x1d0] sm:$0xff]  ;;  %v970_v60 = vld [vmem:[#allocation6 + $0x2e0] sm:$0xff] }
  0x51   : > { %3333 = vmatpush.msra.mxu3 %v377_v19  ;;  %396 = vmatpush.msra.mxu1 %v377_v19  ;;  %v677_v51 = vld [vmem:[#allocation6 + $0x1d8] sm:$0xff]  ;;  %v3891_v62 = vld [vmem:[%s3868_s26 + $0xaa] sm:$0xff]  ;;  %v525_v1 = vld [vmem:[#allocation6 + $0x140] sm:$0xff] }
  0x52   : > { %3318 = vmatpush.msra.mxu2 %v262_v20  ;;  %283 = vmatpush.msra.mxu0 %v262_v20  ;;  %v3056_v54 = vld [vmem:[%s3868_s26 + $0x3a] sm:$0xff]  ;;  %v3894_v63 = vld [vmem:[%s3868_s26 + $0xac] sm:$0xff] }
  0x53   : > { %3334 = vmatpush.msra.mxu3 %v376_v21  ;;  %397 = vmatpush.msra.mxu1 %v376_v21  ;;  %v3072_v55 = vld [vmem:[%s3868_s26 + $0x3c] sm:$0xff]  ;;  %v822_v4 = vld [vmem:[#allocation6 + $0x250] sm:$0xff]  ;;  %v821_v10 = vld [vmem:[#allocation6 + $0x248] sm:$0xff] }
  0x54   : > { %3319 = vmatpush.msra.mxu2 %v261_v22  ;;  %284 = vmatpush.msra.mxu0 %v261_v22  ;;  %v823_v0 = vld [vmem:[#allocation6 + $0x258] sm:$0xff]  ;;  %v674_v3 = vld [vmem:[#allocation6 + $0x1c0] sm:$0xff]  ;;  %v3057_v6 = vld [vmem:[%s3868_s26 + $0x4a] sm:$0xff] }
  0x55   : > { %3335 = vmatpush.msra.mxu3 %v375_v23  ;;  %398 = vmatpush.msra.mxu1 %v375_v23  ;;  %v969_v2 = vld [vmem:[#allocation6 + $0x2d8] sm:$0xff]  ;;  %v3073_v7 = vld [vmem:[%s3868_s26 + $0x4c] sm:$0xff]  ;;  %v820_v16 = vld [vmem:[#allocation6 + $0x240] sm:$0xff] }
  0x56   : > { %3320 = vmatpush.msra.mxu2 %v260_v24  ;;  %285 = vmatpush.msra.mxu0 %v260_v24  ;;  %v524_v5 = vld [vmem:[#allocation6 + $0x138] sm:$0xff]  ;;  %v968_v8 = vld [vmem:[#allocation6 + $0x2d0] sm:$0xff]  ;;  %v967_v12 = vld [vmem:[#allocation6 + $0x2c8] sm:$0xff] }
  0x57   : > { %3336 = vmatpush.msra.mxu3 %v374_v25  ;;  %399 = vmatpush.msra.mxu1 %v374_v25  ;;  %v673_v9 = vld [vmem:[#allocation6 + $0x1b8] sm:$0xff]  ;;  %v523_v11 = vld [vmem:[#allocation6 + $0x130] sm:$0xff]  ;;  %v522_v17 = vld [vmem:[#allocation6 + $0x128] sm:$0xff] }
  0x58   : > { %3321 = vmatpush.msra.mxu2 %v259_v26  ;;  %286 = vmatpush.msra.mxu0 %v259_v26  ;;  %v672_v13 = vld [vmem:[#allocation6 + $0x1b0] sm:$0xff]  ;;  %v966_v18 = vld [vmem:[#allocation6 + $0x2c0] sm:$0xff]  ;;  %v671_v19 = vld [vmem:[#allocation6 + $0x1a8] sm:$0xff] }
  0x59   : > { %3337 = vmatpush.msra.mxu3 %v373_v27  ;;  %400 = vmatpush.msra.mxu1 %v373_v27  ;;  %v3901_v14 = vld [vmem:[%s3868_s26 + $0xb2] sm:$0xff]  ;;  %v521_v21 = vld [vmem:[#allocation6 + $0x120] sm:$0xff] }
  0x5a   : > { %3322 = vmatpush.msra.mxu2 %v258_v28  ;;  %287 = vmatpush.msra.mxu0 %v258_v28  ;;  %v3904_v15 = vld [vmem:[%s3868_s26 + $0xb4] sm:$0xff]  ;;  %v670_v25 = vld [vmem:[#allocation6 + $0x1a0] sm:$0xff] }
  0x5b   : > { %3338 = vmatpush.msra.mxu3 %v372_v29  ;;  %401 = vmatpush.msra.mxu1 %v372_v29  ;;  %v819_v20 = vld [vmem:[#allocation6 + $0x238] sm:$0xff]  ;;  %v818_v26 = vld [vmem:[#allocation6 + $0x230] sm:$0xff] }
  0x5c   : > { %3323 = vmatpush.msra.mxu2 %v257_v30  ;;  %288 = vmatpush.msra.mxu0 %v257_v30  ;;  %v3058_v22 = vld [vmem:[%s3868_s26 + $0x52] sm:$0xff]  ;;  %v3911_v30 = vld [vmem:[%s3868_s26 + $0xc2] sm:$0xff] }
  0x5d   : > { %3339 = vmatpush.msra.mxu3 %v371_v31  ;;  %313 = vmatmul.f32.vlgmr.msra.gmra.mxu2 %v3871_v32  ;;  %v3074_v23 = vld [vmem:[%s3868_s26 + $0x54] sm:$0xff] }
  0x5e   : > { %427 = vmatmul.f32.vlgmr.msra.gmra.mxu3 %v3874_v33  ;;  %533 = vmatpush.msrb.mxu2 %v532_v34  ;;  %v965_v24 = vld [vmem:[#allocation6 + $0x2b8] sm:$0xff]  ;;  %v964_v28 = vld [vmem:[#allocation6 + $0x2b0] sm:$0xff]  ;;  %v817_v34 = vld [vmem:[#allocation6 + $0x228] sm:$0xff] }
  0x5f   : > { %682 = vmatpush.msrb.mxu3 %v681_v35  ;;  %402 = vmatpush.msra.mxu1 %v371_v31  ;;  %v520_v27 = vld [vmem:[#allocation6 + $0x118] sm:$0xff]  ;;  %v3914_v31 = vld [vmem:[%s3868_s26 + $0xc4] sm:$0xff]  ;;  %v519_v35 = vld [vmem:[#allocation6 + $0x110] sm:$0xff] }
  0x60   : > { %534 = vmatpush.msrb.mxu2 %v531_v36  ;;  %289 = vmatmul.f32.vlgmr.msra.gmra.mxu0 %v3055_v38  ;;  %v669_v29 = vld [vmem:[#allocation6 + $0x198] sm:$0xff]  ;;  %v963_v36 = vld [vmem:[#allocation6 + $0x2a8] sm:$0xff]  ;;  %v816_v38 = vld [vmem:[#allocation6 + $0x220] sm:$0xff] }
  0x61   : > { %683 = vmatpush.msrb.mxu3 %v680_v37  ;;  %403 = vmatmul.f32.vlgmr.msra.gmra.mxu1 %v3071_v39  ;;  %v668_v37 = vld [vmem:[#allocation6 + $0x190] sm:$0xff]  ;;  %v518_v39 = vld [vmem:[#allocation6 + $0x108] sm:$0xff] }
  0x62   : > { %535 = vmatpush.msrb.mxu2 %v530_v40  ;;  %828 = vmatpush.msrb.mxu0 %v827_v42  ;;  %v3919_v40 = vld [vmem:[%s3868_s26 + $0x62] sm:$0xff] }
  0x63   : > { %684 = vmatpush.msrb.mxu3 %v679_v41  ;;  %974 = vmatpush.msrb.mxu1 %v973_v43  ;;  %v3922_v41 = vld [vmem:[%s3868_s26 + $0x64] sm:$0xff] }
  0x64   : > { %536 = vmatpush.msrb.mxu2 %v529_v44  ;;  %829 = vmatpush.msrb.mxu0 %v826_v48  ;;  %v962_v42 = vld [vmem:[#allocation6 + $0x2a0] sm:$0xff]  ;;  %v667_v43 = vld [vmem:[#allocation6 + $0x188] sm:$0xff]  ;;  %v815_v44 = vld [vmem:[#allocation6 + $0x218] sm:$0xff] }
  0x65   : > { %685 = vmatpush.msrb.mxu3 %v678_v45  ;;  %316 = vmatmul.f32.gmra.mxu2 %v3881_v46  ;;  %v517_v45 = vld [vmem:[#allocation6 + $0x100] sm:$0xff]  ;;  %v961_v48 = vld [vmem:[#allocation6 + $0x298] sm:$0xff] }
  0x66   : > { %430 = vmatmul.f32.gmra.mxu3 %v3884_v47  ;;  %537 = vmatpush.msrb.mxu2 %v528_v49  ;;  %v666_v49 = vld [vmem:[#allocation6 + $0x180] sm:$0xff] }
  0x67   : > { %975 = vmatpush.msrb.mxu1 %v972_v50  ;;  %686 = vmatpush.msrb.mxu3 %v677_v51  ;;  %v3927_v50 = vld [vmem:[%s3868_s26 + $0xca] sm:$0xff] }
  0x68   : > { %830 = vmatpush.msrb.mxu0 %v825_v52  ;;  %538 = vmatpush.msrb.mxu2 %v527_v53  ;;  %v3930_v51 = vld [vmem:[%s3868_s26 + $0xcc] sm:$0xff] }
  0x69   : > { %292 = vmatmul.f32.gmra.mxu0 %v3056_v54  ;;  %406 = vmatmul.f32.gmra.mxu1 %v3072_v55  ;;  %v814_v52 = vld [vmem:[#allocation6 + $0x210] sm:$0xff]  ;;  %v1122_v54 = vld [vmem:[#allocation6 + $0x378] sm:$0xff] }
  0x6a   : > { %976 = vmatpush.msrb.mxu1 %v971_v56  ;;  %687 = vmatpush.msrb.mxu3 %v676_v57  ;;  %v960_v53 = vld [vmem:[#allocation6 + $0x290] sm:$0xff]  ;;  %v1268_v55 = vld [vmem:[#allocation6 + $0x3f8] sm:$0xff]  ;;  %v813_v56 = vld [vmem:[#allocation6 + $0x208] sm:$0xff] }
  0x6b   : > { %831 = vmatpush.msrb.mxu0 %v824_v58  ;;  %539 = vmatpush.msrb.mxu2 %v526_v59  ;;  %v959_v57 = vld [vmem:[#allocation6 + $0x288] sm:$0xff] }
  0x6c   : > { %977 = vmatpush.msrb.mxu1 %v970_v60  ;;  %688 = vmatpush.msrb.mxu3 %v675_v61  ;;  %v3935_v58 = vld [vmem:[%s3868_s26 + $0x6a] sm:$0xff]  ;;  %v812_v60 = vld [vmem:[#allocation6 + $0x200] sm:$0xff] }
  0x6d   : > { %319 = vmatmul.f32.gmra.mxu2 %v3891_v62  ;;  %832 = vmatpush.msrb.mxu0 %v823_v0  ;;  %v3938_v59 = vld [vmem:[%s3868_s26 + $0x6c] sm:$0xff]  ;;  %v958_v61 = vld [vmem:[#allocation6 + $0x280] sm:$0xff] }
  0x6e   : > { %433 = vmatmul.f32.gmra.mxu3 %v3894_v63  ;;  %540 = vmatpush.msrb.mxu2 %v525_v1  ;;  %v1121_v0 = vld [vmem:[#allocation6 + $0x370] sm:$0xff] }
  0x6f   : > { %978 = vmatpush.msrb.mxu1 %v969_v2  ;;  %689 = vmatpush.msrb.mxu3 %v674_v3  ;;  %v1267_v1 = vld [vmem:[#allocation6 + $0x3f0] sm:$0xff]  ;;  %v1414_v2 = vld [vmem:[#allocation6 + $0x478] sm:$0xff] }
  0x70   : > { %833 = vmatpush.msrb.mxu0 %v822_v4  ;;  %541 = vmatpush.msrb.mxu2 %v524_v5  ;;  %v1562_v3 = vld [vmem:[#allocation6 + $0x4f8] sm:$0xff] }
  0x71   : > { %295 = vmatmul.f32.gmra.mxu0 %v3057_v6  ;;  %409 = vmatmul.f32.gmra.mxu1 %v3073_v7  ;;  %v3943_v4 = vld [vmem:[%s3868_s26 + $0xda] sm:$0xff]  ;;  %v1120_v6 = vld [vmem:[#allocation6 + $0x368] sm:$0xff] }
  0x72   : > { %979 = vmatpush.msrb.mxu1 %v968_v8  ;;  %690 = vmatpush.msrb.mxu3 %v673_v9  ;;  %v3946_v5 = vld [vmem:[%s3868_s26 + $0xdc] sm:$0xff]  ;;  %v1266_v7 = vld [vmem:[#allocation6 + $0x3e8] sm:$0xff]  ;;  %v1413_v8 = vld [vmem:[#allocation6 + $0x470] sm:$0xff] }
  0x73   : > { %834 = vmatpush.msrb.mxu0 %v821_v10  ;;  %542 = vmatpush.msrb.mxu2 %v523_v11  ;;  %v3061_v9 = vld [vmem:[%s3868_s26 + $0x7a] sm:$0xff]  ;;  %v1561_v11 = vld [vmem:[#allocation6 + $0x4f0] sm:$0xff] }
  0x74   : > { %980 = vmatpush.msrb.mxu1 %v967_v12  ;;  %691 = vmatpush.msrb.mxu3 %v672_v13  ;;  %v3952_v10 = vld [vmem:[%s3868_s26 + $0x7c] sm:$0xff]  ;;  %v3959_v13 = vld [vmem:[%s3868_s26 + $0xe4] sm:$0xff] }
  0x75   : > { %322 = vmatmul.f32.gmra.mxu2 %v3901_v14  ;;  %835 = vmatpush.msrb.mxu0 %v820_v16  ;;  %v3956_v12 = vld [vmem:[%s3868_s26 + $0xe2] sm:$0xff] }
  0x76   : > { %436 = vmatmul.f32.gmra.mxu3 %v3904_v15  ;;  %543 = vmatpush.msrb.mxu2 %v522_v17  ;;  %v1119_v16 = vld [vmem:[#allocation6 + $0x360] sm:$0xff] }
  0x77   : > { %981 = vmatpush.msrb.mxu1 %v966_v18  ;;  %692 = vmatpush.msrb.mxu3 %v671_v19  ;;  %v1265_v17 = vld [vmem:[#allocation6 + $0x3e0] sm:$0xff]  ;;  %v1412_v18 = vld [vmem:[#allocation6 + $0x468] sm:$0xff] }
  0x78   : > { %836 = vmatpush.msrb.mxu0 %v819_v20  ;;  %544 = vmatpush.msrb.mxu2 %v521_v21  ;;  %v3062_v19 = vld [vmem:[%s3868_s26 + $0x82] sm:$0xff] }
  0x79   : > { %298 = vmatmul.f32.gmra.mxu0 %v3058_v22  ;;  %412 = vmatmul.f32.gmra.mxu1 %v3074_v23  ;;  %v3078_v20 = vld [vmem:[%s3868_s26 + $0x84] sm:$0xff]  ;;  %v3087_v22 = vld [vmem:[%s3868_s26 + $0x36] sm:$0xff] }
  0x7a   : > { %982 = vmatpush.msrb.mxu1 %v965_v24  ;;  %693 = vmatpush.msrb.mxu3 %v670_v25  ;;  %v1560_v21 = vld [vmem:[#allocation6 + $0x4e8] sm:$0xff]  ;;  %v1118_v23 = vld [vmem:[#allocation6 + $0x358] sm:$0xff]  ;;  %v1411_v25 = vld [vmem:[#allocation6 + $0x460] sm:$0xff] }
  0x7b   : > { %837 = vmatpush.msrb.mxu0 %v818_v26  ;;  %545 = vmatpush.msrb.mxu2 %v520_v27  ;;  %v1264_v24 = vld [vmem:[#allocation6 + $0x3d8] sm:$0xff]  ;;  %v3137_v26 = vld [vmem:[%s3868_s26 + $0x66] sm:$0xff] }
  0x7c   : > { %983 = vmatpush.msrb.mxu1 %v964_v28  ;;  %694 = vmatpush.msrb.mxu3 %v669_v29  ;;  %v1559_v27 = vld [vmem:[#allocation6 + $0x4e0] sm:$0xff]  ;;  %v1117_v29 = vld [vmem:[#allocation6 + $0x350] sm:$0xff] }
  0x7d   : > { %325 = vmatmul.f32.gmra.mxu2 %v3911_v30  ;;  %838 = vmatpush.msrb.mxu0 %v817_v34  ;;  %v3088_v28 = vld [vmem:[%s3868_s26 + $0x3e] sm:$0xff]  ;;  %v1263_v34 = vld [vmem:[#allocation6 + $0x3d0] sm:$0xff] }
  0x7e   : > { %439 = vmatmul.f32.gmra.mxu3 %v3914_v31  ;;  %546 = vmatpush.msrb.mxu2 %v519_v35  ;;  %v1410_v35 = vld [vmem:[#allocation6 + $0x458] sm:$0xff] }
  0x7f   : > { %984 = vmatpush.msrb.mxu1 %v963_v36  ;;  %695 = vmatpush.msrb.mxu3 %v668_v37  ;;  %v3138_v36 = vld [vmem:[%s3868_s26 + $0x6e] sm:$0xff]  ;;  %v1558_v37 = vld [vmem:[#allocation6 + $0x4d8] sm:$0xff] }
  0x80   : > { %839 = vmatpush.msrb.mxu0 %v816_v38  ;;  %547 = vmatpush.msrb.mxu2 %v518_v39  ;;  %v3089_v38 = vld [vmem:[%s3868_s26 + $0x4e] sm:$0xff] }
  0x81   : > { %301 = vmatmul.f32.gmra.mxu0 %v3919_v40  ;;  %415 = vmatmul.f32.gmra.mxu1 %v3922_v41  ;;  %v1116_v39 = vld [vmem:[#allocation6 + $0x348] sm:$0xff] }
  0x82   : > { %985 = vmatpush.msrb.mxu1 %v962_v42  ;;  %696 = vmatpush.msrb.mxu3 %v667_v43  ;;  %v3139_v42 = vld [vmem:[%s3868_s26 + $0x7e] sm:$0xff]  ;;  %v1557_v43 = vld [vmem:[#allocation6 + $0x4d0] sm:$0xff] }
  0x83   : > { %840 = vmatpush.msrb.mxu0 %v815_v44  ;;  %548 = vmatpush.msrb.mxu2 %v517_v45  ;;  %v3090_v44 = vld [vmem:[%s3868_s26 + $0x56] sm:$0xff]  ;;  %v1115_v45 = vld [vmem:[#allocation6 + $0x340] sm:$0xff] }
  0x84   : > { %986 = vmatpush.msrb.mxu1 %v961_v48  ;;  %697 = vmatpush.msrb.mxu3 %v666_v49  ;;  %v1261_v48 = vld [vmem:[#allocation6 + $0x3c0] sm:$0xff]  ;;  %v1408_v49 = vld [vmem:[#allocation6 + $0x448] sm:$0xff] }
  0x85   : > { %328 = vmatmul.f32.gmra.mxu2 %v3927_v50  ;;  %841 = vmatpush.msrb.mxu0 %v814_v52  ;;  %v3140_v52 = vld [vmem:[%s3868_s26 + $0x86] sm:$0xff] }
  0x86   : > { %442 = vmatmul.f32.gmra.mxu3 %v3930_v51  ;;  %987 = vmatpush.msrb.mxu1 %v960_v53  ;;  %v1556_v53 = vld [vmem:[#allocation6 + $0x4c8] sm:$0xff] }
  0x87   : > { %1123 = vmatpush.msra.mxu2 %v1122_v54  ;;  %1269 = vmatpush.msra.mxu3 %v1268_v55  ;;  %v1114_v54 = vld [vmem:[#allocation6 + $0x338] sm:$0xff] }
  0x88   : > { %842 = vmatpush.msrb.mxu0 %v813_v56  ;;  %988 = vmatpush.msrb.mxu1 %v959_v57  ;;  %v1260_v55 = vld [vmem:[#allocation6 + $0x3b8] sm:$0xff]  ;;  %v1407_v56 = vld [vmem:[#allocation6 + $0x440] sm:$0xff] }
  0x89   : > { %304 = vmatmul.f32.gmra.mxu0 %v3935_v58  ;;  %418 = vmatmul.f32.gmra.mxu1 %v3938_v59  ;;  %v3980_v57 = vld [vmem:[%s3868_s26 + $0x96] sm:$0xff] }
  0x8a   : > { %843 = vmatpush.msrb.mxu0 %v812_v60  ;;  %989 = vmatpush.msrb.mxu1 %v958_v61  ;;  %v1259_v60 = vld [vmem:[#allocation6 + $0x3b0] sm:$0xff]  ;;  %v1406_v61 = vld [vmem:[#allocation6 + $0x438] sm:$0xff] }
  0x8b   : > { %1124 = vmatpush.msra.mxu2 %v1121_v0  ;;  %1270 = vmatpush.msra.mxu3 %v1267_v1  ;;  %v3986_v0 = vld [vmem:[%s3868_s26 + $0x9e] sm:$0xff] }
  0x8c   : > { %1415 = vmatpush.msra.mxu0 %v1414_v2  ;;  %1563 = vmatpush.msra.mxu1 %v1562_v3  ;;  %v1554_v1 = vld [vmem:[#allocation6 + $0x4b8] sm:$0xff]  ;;  %v1112_v2 = vld [vmem:[#allocation6 + $0x328] sm:$0xff] }
  0x8d   : > { %331 = vmatmul.f32.gmra.mxu2 %v3943_v4  ;;  %1271 = vmatpush.msra.mxu3 %v1266_v7  ;;  %v1258_v3 = vld [vmem:[#allocation6 + $0x3a8] sm:$0xff] }
  0x8e   : > { %445 = vmatmul.f32.gmra.mxu3 %v3946_v5  ;;  %1125 = vmatpush.msra.mxu2 %v1120_v6  ;;  %v1405_v6 = vld [vmem:[#allocation6 + $0x430] sm:$0xff] }
  0x8f   : > { %1416 = vmatpush.msra.mxu0 %v1413_v8  ;;  %1564 = vmatpush.msra.mxu1 %v1561_v11  ;;  %v3992_v7 = vld [vmem:[%s3868_s26 + $0xae] sm:$0xff] }
  0x90   : > { %1126 = vmatpush.msra.mxu2 %v1119_v16  ;;  %1272 = vmatpush.msra.mxu3 %v1265_v17  ;;  %v1553_v8 = vld [vmem:[#allocation6 + $0x4b0] sm:$0xff]  ;;  %v1404_v11 = vld [vmem:[#allocation6 + $0x428] sm:$0xff] }
  0x91   : > { %307 = vmatmul.f32.gmra.mxu0 %v3061_v9  ;;  %421 = vmatmul.f32.gmra.mxu1 %v3952_v10  ;;  %v3998_v16 = vld [vmem:[%s3868_s26 + $0xb6] sm:$0xff]  ;;  %v1552_v17 = vld [vmem:[#allocation6 + $0x4a8] sm:$0xff] }
  0x92   : > { %1417 = vmatpush.msra.mxu0 %v1412_v18  ;;  %1565 = vmatpush.msra.mxu1 %v1560_v21  ;;  %v1110_v18 = vld [vmem:[#allocation6 + $0x318] sm:$0xff] }
  0x93   : > { %1127 = vmatpush.msra.mxu2 %v1118_v23  ;;  %1273 = vmatpush.msra.mxu3 %v1264_v24  ;;  %v1403_v23 = vld [vmem:[#allocation6 + $0x420] sm:$0xff] }
  0x94   : > { %1418 = vmatpush.msra.mxu0 %v1411_v25  ;;  %1566 = vmatpush.msra.mxu1 %v1559_v27  ;;  %v1551_v27 = vld [vmem:[#allocation6 + $0x4a0] sm:$0xff] }
  0x95   : > { %334 = vmatmul.f32.gmra.mxu2 %v3956_v12  ;;  %1274 = vmatpush.msra.mxu3 %v1263_v34 }
  0x96   : > { %448 = vmatmul.f32.gmra.mxu3 %v3959_v13  ;;  %1128 = vmatpush.msra.mxu2 %v1117_v29 }
  0x97   : > { %1419 = vmatpush.msra.mxu0 %v1410_v35  ;;  %1567 = vmatpush.msra.mxu1 %v1558_v37  ;;  %v4022_v35 = vld [vmem:[%s3868_s26 + $0xce] sm:$0xff]  ;;  %v1402_v37 = vld [vmem:[#allocation6 + $0x418] sm:$0xff] }
  0x98   : > { %1129 = vmatpush.msra.mxu2 %v1116_v39 }
  0x99   : > { %310 = vmatmul.f32.gmra.mxu0 %v3062_v19  ;;  %424 = vmatmul.f32.gmra.mxu1 %v3078_v20 }
  0x9a   : > { %1568 = vmatpush.msra.mxu1 %v1557_v43  ;;  %1130 = vmatpush.msra.mxu2 %v1115_v45  ;;  %v4035_v45 = vld [vmem:[%s3868_s26 + $0xde] sm:$0xff] }
  0x9c   : > { %1569 = vmatpush.msra.mxu1 %v1556_v53  ;;  %1131 = vmatpush.msra.mxu2 %v1114_v54 }
  0x9d   : > { %549 = vmatmul.f32.vlgmr.msrb.gmra.mxu2 %v3087_v22  ;;  %v4009_v22 = vld [vmem:[%s3868_s26 + $0xc6] sm:$0xff] }
  0x9e   : > { %698 = vmatmul.f32.vlgmr.msrb.gmra.mxu3 %v3919_v40  ;;  %v1262_v40 = vld [vmem:[#allocation6 + $0x3c8] sm:$0xff] }
  0x9f   : > { %1275 = vmatpush.msra.mxu3 %v1262_v40 }
  0xa1   : > { %844 = vmatmul.f32.vlgmr.msrb.gmra.mxu0 %v3922_v41  ;;  %990 = vmatmul.f32.vlgmr.msrb.gmra.mxu1 %v3137_v26  ;;  %v1409_v41 = vld [vmem:[#allocation6 + $0x450] sm:$0xff] }
  0xa2   : > { %1420 = vmatpush.msra.mxu0 %v1409_v41  ;;  %1276 = vmatpush.msra.mxu3 %v1261_v48  ;;  %v1550_v41 = vld [vmem:[#allocation6 + $0x498] sm:$0xff]  ;;  %v1254_v48 = vld [vmem:[#allocation6 + $0x388] sm:$0xff] }
  0xa4   : > { %1421 = vmatpush.msra.mxu0 %v1408_v49  ;;  %1277 = vmatpush.msra.mxu3 %v1260_v55  ;;  %v1401_v49 = vld [vmem:[#allocation6 + $0x410] sm:$0xff] }
  0xa5   : > { %552 = vmatmul.f32.gmra.mxu2 %v3088_v28  ;;  %v1109_v28 = vld [vmem:[#allocation6 + $0x310] sm:$0xff] }
  0xa6   : > { %701 = vmatmul.f32.gmra.mxu3 %v3935_v58  ;;  %1422 = vmatpush.msra.mxu0 %v1407_v56  ;;  %v1555_v58 = vld [vmem:[#allocation6 + $0x4c0] sm:$0xff]  ;;  %v1549_v55 = vld [vmem:[#allocation6 + $0x490] sm:$0xff] }
  0xa7   : > { %1570 = vmatpush.msra.mxu1 %v1555_v58  ;;  %1278 = vmatpush.msra.mxu3 %v1259_v60  ;;  %v1107_v56 = vld [vmem:[#allocation6 + $0x300] sm:$0xff] }
  0xa8   : > { %1423 = vmatpush.msra.mxu0 %v1406_v61  ;;  %v4048_v60 = vld [vmem:[%s3868_s26 + $0xe6] sm:$0xff] }
  0xa9   : > { %847 = vmatmul.f32.gmra.mxu0 %v3938_v59  ;;  %993 = vmatmul.f32.gmra.mxu1 %v3138_v36  ;;  %v1113_v59 = vld [vmem:[#allocation6 + $0x330] sm:$0xff]  ;;  %v1253_v61 = vld [vmem:[#allocation6 + $0x380] sm:$0xff] }
  0xaa   : > { %1132 = vmatpush.msra.mxu2 %v1113_v59  ;;  %1571 = vmatpush.msra.mxu1 %v1554_v1  ;;  %v1400_v1 = vld [vmem:[#allocation6 + $0x408] sm:$0xff] }
  0xab   : > { %1279 = vmatpush.msra.mxu3 %v1258_v3  ;;  %1424 = vmatpush.msra.mxu0 %v1405_v6 }
  0xac   : > { %1133 = vmatpush.msra.mxu2 %v1112_v2  ;;  %1572 = vmatpush.msra.mxu1 %v1553_v8  ;;  %v1548_v8 = vld [vmem:[#allocation6 + $0x488] sm:$0xff] }
  0xad   : > { %555 = vmatmul.f32.gmra.mxu2 %v3089_v38  ;;  %1425 = vmatpush.msra.mxu0 %v1404_v11  ;;  %v1399_v11 = vld [vmem:[#allocation6 + $0x400] sm:$0xff] }
  0xae   : > { %704 = vmatmul.f32.gmra.mxu3 %v3061_v9  ;;  %v1111_v9 = vld [vmem:[#allocation6 + $0x320] sm:$0xff]  ;;  %1573 = vmatpush.msra.mxu1 %v1552_v17 }
  0xaf   : > { %1134 = vmatpush.msra.mxu2 %v1111_v9  ;;  %1426 = vmatpush.msra.mxu0 %v1403_v23  ;;  %v4055_v9 = vld [vmem:[%s3868_s26 + $0xf2] sm:$0xff] }
  0xb0   : > { %1574 = vmatpush.msra.mxu1 %v1551_v27  ;;  %v4067_v23 = vld [vmem:[%s3868_s26 + $0xf6] sm:$0xff] }
  0xb1   : > { %850 = vmatmul.f32.gmra.mxu0 %v3952_v10  ;;  %996 = vmatmul.f32.gmra.mxu1 %v3139_v42  ;;  %v1257_v10 = vld [vmem:[#allocation6 + $0x3a0] sm:$0xff] }
  0xb2   : > { %1280 = vmatpush.msra.mxu3 %v1257_v10  ;;  %1135 = vmatpush.msra.mxu2 %v1110_v18  ;;  %v1708_v10 = vld [vmem:[#allocation6 + $0x578] sm:$0xff] }
  0xb3   : > { %1427 = vmatpush.msra.mxu0 %v1402_v37  ;;  %1575 = vmatpush.msra.mxu1 %v1550_v41  ;;  %v4074_v37 = vld [vmem:[%s3868_s26 + $0xfa] sm:$0xff] }
  0xb4   : > { %1136 = vmatpush.msra.mxu2 %v1109_v28 }
  0xb5   : > { %558 = vmatmul.f32.gmra.mxu2 %v3090_v44  ;;  %1428 = vmatpush.msra.mxu0 %v1401_v49  ;;  %v1853_v49 = vld [vmem:[#allocation6 + $0x5f0] sm:$0xff] }
  0xb6   : > { %707 = vmatmul.f32.gmra.mxu3 %v3062_v19  ;;  %v1256_v19 = vld [vmem:[#allocation6 + $0x398] sm:$0xff]  ;;  %1576 = vmatpush.msra.mxu1 %v1549_v55 }
  0xb7   : > { %1281 = vmatpush.msra.mxu3 %v1256_v19  ;;  %1429 = vmatpush.msra.mxu0 %v1400_v1  ;;  %v4064_v19 = vld [vmem:[%s3868_s26 + $0xf4] sm:$0xff]  ;;  %v4093_v1 = vld [vmem:[%s3868_s26 + $0x10a] sm:$0xff] }
  0xb8   : > { %1577 = vmatpush.msra.mxu1 %v1548_v8 }
  0xb9   : > { %853 = vmatmul.f32.gmra.mxu0 %v3078_v20  ;;  %999 = vmatmul.f32.gmra.mxu1 %v3140_v52 }
  0xba   : > { %1430 = vmatpush.msra.mxu0 %v1399_v11  ;;  %v4105_v11 = vld [vmem:[%s3868_s26 + $0x10e] sm:$0xff] }
  0xbd   : > { %561 = vmatmul.f32.gmra.mxu2 %v3137_v26 }
  0xbe   : > { %710 = vmatmul.f32.gmra.mxu3 %v3871_v32 }
  0xc1   : > { %856 = vmatmul.f32.gmra.mxu0 %v3874_v33  ;;  %1002 = vmatmul.f32.gmra.mxu1 %v3980_v57 }
  0xc5   : > { %564 = vmatmul.f32.gmra.mxu2 %v3138_v36  ;;  %v1255_v36 = vld [vmem:[#allocation6 + $0x390] sm:$0xff] }
  0xc6   : > { %713 = vmatmul.f32.gmra.mxu3 %v3881_v46 }
  0xc7   : > { %1282 = vmatpush.msra.mxu3 %v1255_v36  ;;  %v1547_v36 = vld [vmem:[#allocation6 + $0x480] sm:$0xff] }
  0xc8   : > { %1578 = vmatpush.msra.mxu1 %v1547_v36 }
  0xc9   : > { %859 = vmatmul.f32.gmra.mxu0 %v3884_v47  ;;  %1005 = vmatmul.f32.gmra.mxu1 %v3986_v0 }
  0xca   : > { %1283 = vmatpush.msra.mxu3 %v1254_v48  ;;  %v4086_v48 = vld [vmem:[%s3868_s26 + $0xfe] sm:$0xff] }
  0xcc   : > { %1284 = vmatpush.msra.mxu3 %v1253_v61  ;;  %v2146_v61 = vld [vmem:[#allocation6 + $0x6f8] sm:$0xff] }
  0xcd   : > { %567 = vmatmul.f32.gmra.mxu2 %v3139_v42  ;;  %v1108_v42 = vld [vmem:[#allocation6 + $0x308] sm:$0xff]  ;;  %2147 = vmatpush.msrb.mxu1 %v2146_v61 }
  0xce   : > { %716 = vmatmul.f32.gmra.mxu3 %v3891_v62  ;;  %1137 = vmatpush.msra.mxu2 %v1108_v42  ;;  %v4083_v42 = vld [vmem:[%s3868_s26 + $0xfc] sm:$0xff] }
  0xd0   : > { %1138 = vmatpush.msra.mxu2 %v1107_v56 }
  0xd1   : > { %862 = vmatmul.f32.gmra.mxu0 %v3894_v63  ;;  %1008 = vmatmul.f32.gmra.mxu1 %v3992_v7 }
  0xd2   : > { %1709 = vmatpush.msrb.mxu2 %v1708_v10  ;;  %v4102_v10 = vld [vmem:[%s3868_s26 + $0x10c] sm:$0xff] }
  0xd5   : > { %570 = vmatmul.f32.gmra.mxu2 %v3140_v52 }
  0xd6   : > { %719 = vmatmul.f32.gmra.mxu3 %v3901_v14 }
  0xd9   : > { %865 = vmatmul.f32.gmra.mxu0 %v3904_v15  ;;  %1011 = vmatmul.f32.gmra.mxu1 %v3998_v16 }
  0xdd   : > { %573 = vmatmul.f32.gmra.mxu2 %v3980_v57  ;;  %v4004_v20 = vpop.f32.mrf.mxu0 }
  0xde   : > { %722 = vmatmul.f32.gmra.mxu3 %v3911_v30  ;;  %v4006_v21 = vpop.f32.mrf.mxu1 }
  0xe0   : > { %v314_v24 = vpop.f32.mrf.mxu2 }
  0xe1   : > { %v428_v25 = vpop.f32.mrf.mxu3  ;;  %868 = vmatmul.f32.gmra.mxu0 %v3914_v31  ;;  %1014 = vmatmul.f32.gmra.mxu1 %v4009_v22 }
  0xe2   : > { %v4011_v26 = vadd.f32 %v428_v25, %v314_v24  ;;  %v1854_v24 = vld [vmem:[#allocation6 + $0x5f8] sm:$0xff] }
  0xe3   : > { %1855 = vmatpush.msrb.mxu3 %v1854_v24  ;;  %v1852_v24 = vld [vmem:[#allocation6 + $0x5e8] sm:$0xff] }
  0xe5   : > { %576 = vmatmul.f32.gmra.mxu2 %v3986_v0  ;;  %1856 = vmatpush.msrb.mxu3 %v1853_v49  ;;  %v2145_v49 = vld [vmem:[#allocation6 + $0x6f0] sm:$0xff] }
  0xe6   : > { %725 = vmatmul.f32.gmra.mxu3 %v3927_v50  ;;  %v4017_v29 = vpop.f32.mrf.mxu0  ;;  %v4019_v34 = vpop.f32.mrf.mxu1  ;;  %2148 = vmatpush.msrb.mxu1 %v2145_v49 }
  0xe7   : > { %1857 = vmatpush.msrb.mxu3 %v1852_v24  ;;  %v4124_v24 = vld [vmem:[%s3868_s26 + $0x116] sm:$0xff] }
  0xe8   : > { %v317_v38 = vpop.f32.mrf.mxu2  ;;  %4752 = vst [vmem:[#allocation25_spill] sm:$0xff] %v4124_v24 }
  0xe9   : > { %v431_v39 = vpop.f32.mrf.mxu3  ;;  %871 = vmatmul.f32.gmra.mxu0 %v3930_v51  ;;  %1017 = vmatmul.f32.gmra.mxu1 %v4022_v35 }
  0xea   : > { %v4024_v40 = vadd.f32 %v431_v39, %v317_v38  ;;  %v1707_v38 = vld [vmem:[#allocation6 + $0x570] sm:$0xff] }
  0xeb   : > { %1710 = vmatpush.msrb.mxu2 %v1707_v38 }
  0xed   : > { %579 = vmatmul.f32.gmra.mxu2 %v3992_v7 }
  0xee   : > { %728 = vmatmul.f32.gmra.mxu3 %v3943_v4  ;;  %v4030_v43 = vpop.f32.mrf.mxu0  ;;  %v4032_v44 = vpop.f32.mrf.mxu1 }
  0xf0   : > { %v320_v52 = vpop.f32.mrf.mxu2 }
  0xf1   : > { %v434_v53 = vpop.f32.mrf.mxu3  ;;  %874 = vmatmul.f32.gmra.mxu0 %v3946_v5  ;;  %1020 = vmatmul.f32.gmra.mxu1 %v4035_v45 }
  0xf2   : > { %v4037_v54 = vadd.f32 %v434_v53, %v320_v52  ;;  %v2000_v52 = vld [vmem:[#allocation6 + $0x678] sm:$0xff] }
  0xf3   : > { %2001 = vmatpush.msrb.mxu0 %v2000_v52  ;;  %v4112_v52 = vld [vmem:[%s3868_s26 + $0x112] sm:$0xff] }
  0xf4   : > { %4750 = vst [vmem:[#allocation23_spill] sm:$0xff] %v4112_v52 }
  0xf5   : > { %582 = vmatmul.f32.gmra.mxu2 %v3998_v16 }
  0xf6   : > { %731 = vmatmul.f32.gmra.mxu3 %v3956_v12  ;;  %v4043_v58 = vpop.f32.mrf.mxu0  ;;  %v4045_v59 = vpop.f32.mrf.mxu1 }
  0xf8   : > { %v323_v2 = vpop.f32.mrf.mxu2 }
  0xf9   : > { %v437_v3 = vpop.f32.mrf.mxu3  ;;  %877 = vmatmul.f32.gmra.mxu0 %v3959_v13  ;;  %1023 = vmatmul.f32.gmra.mxu1 %v4048_v60 }
  0xfa   : > { %v4050_v6 = vadd.f32 %v437_v3, %v323_v2  ;;  %v1706_v2 = vld [vmem:[#allocation6 + $0x568] sm:$0xff] }
  0xfb   : > { %1711 = vmatpush.msrb.mxu2 %v1706_v2  ;;  %v4121_v2 = vld [vmem:[%s3868_s26 + $0x114] sm:$0xff] }
  0xfc   : > { %4746 = vst [vmem:[#allocation19_spill] sm:$0xff] %v4050_v6 }
  0xfd   : > { %585 = vmatmul.f32.gmra.mxu2 %v4009_v22  ;;  %4751 = vst [vmem:[#allocation24_spill] sm:$0xff] %v4121_v2 }
  0xfe   : > { %734 = vmatmul.f32.gmra.mxu3 %v4055_v9  ;;  %v4059_v17 = vpop.f32.mrf.mxu0  ;;  %v4061_v18 = vpop.f32.mrf.mxu1 }
 0x100   : > { %v326_v25 = vpop.f32.mrf.mxu2 }
 0x101   : > { %v440_v27 = vpop.f32.mrf.mxu3  ;;  %880 = vmatmul.f32.gmra.mxu0 %v4064_v19  ;;  %1026 = vmatmul.f32.gmra.mxu1 %v4067_v23 }
 0x102   : > { %v4069_v28 = vadd.f32 %v440_v27, %v326_v25  ;;  %v1999_v25 = vld [vmem:[#allocation6 + $0x670] sm:$0xff] }
 0x103   : > { %2002 = vmatpush.msrb.mxu0 %v1999_v25  ;;  %v1851_v25 = vld [vmem:[#allocation6 + $0x5e0] sm:$0xff] }
 0x104   : > { %4747 = vst [vmem:[#allocation20_spill] sm:$0xff] %v4069_v28  ;;  %1858 = vmatpush.msrb.mxu3 %v1851_v25  ;;  %v468_v25 = vadd.f32 %v4006_v21, %v4004_v20  ;;  %v1703_v20 = vld [vmem:[#allocation6 + $0x550] sm:$0xff] }
 0x105   : > { %588 = vmatmul.f32.gmra.mxu2 %v4022_v35 }
 0x106   : > { %737 = vmatmul.f32.gmra.mxu3 %v4074_v37  ;;  %v4078_v39 = vpop.f32.mrf.mxu0  ;;  %v4080_v41 = vpop.f32.mrf.mxu1 }
 0x108   : > { %v329_v53 = vpop.f32.mrf.mxu2 }
 0x109   : > { %v443_v55 = vpop.f32.mrf.mxu3  ;;  %883 = vmatmul.f32.gmra.mxu0 %v4083_v42  ;;  %1029 = vmatmul.f32.gmra.mxu1 %v4086_v48 }
 0x10a   : > { %v4088_v56 = vadd.f32 %v443_v55, %v329_v53  ;;  %v1705_v53 = vld [vmem:[#allocation6 + $0x560] sm:$0xff] }
 0x10b   : > { %1712 = vmatpush.msrb.mxu2 %v1705_v53  ;;  %v1704_v53 = vld [vmem:[#allocation6 + $0x558] sm:$0xff] }
 0x10c   : > { %4748 = vst [vmem:[#allocation21_spill] sm:$0xff] %v4088_v56  ;;  %v2144_v56 = vld [vmem:[#allocation6 + $0x6e8] sm:$0xff] }
 0x10d   : > { %591 = vmatmul.f32.gmra.mxu2 %v4035_v45  ;;  %2149 = vmatpush.msrb.mxu1 %v2144_v56 }
 0x10e   : > { %740 = vmatmul.f32.gmra.mxu3 %v4093_v1  ;;  %v4097_v3 = vpop.f32.mrf.mxu0  ;;  %v4099_v8 = vpop.f32.mrf.mxu1  ;;  %1713 = vmatpush.msrb.mxu2 %v1704_v53 }
 0x110   : > { %v332_v27 = vpop.f32.mrf.mxu2  ;;  %1714 = vmatpush.msrb.mxu2 %v1703_v20 }
 0x111   : > { %v446_v36 = vpop.f32.mrf.mxu3  ;;  %886 = vmatmul.f32.gmra.mxu0 %v4102_v10  ;;  %1032 = vmatmul.f32.gmra.mxu1 %v4105_v11 }
 0x112   : > { %v4107_v38 = vadd.f32 %v446_v36, %v332_v27  ;;  %v1998_v27 = vld [vmem:[#allocation6 + $0x668] sm:$0xff] }
 0x113   : > { %2003 = vmatpush.msrb.mxu0 %v1998_v27  ;;  %v1997_v27 = vld [vmem:[#allocation6 + $0x660] sm:$0xff] }
 0x114   : > { %4749 = vst [vmem:[#allocation22_spill] sm:$0xff] %v4107_v38 }
 0x115   : > { %594 = vmatmul.f32.gmra.mxu2 %v4048_v60  ;;  %2004 = vmatpush.msrb.mxu0 %v1997_v27 }
 0x116   : > { %743 = vmatmul.f32.gmra.mxu3 %v4112_v52  ;;  %v4116_v55 = vpop.f32.mrf.mxu0  ;;  %v4118_v61 = vpop.f32.mrf.mxu1  ;;  %v1530_v52 = vld [vmem:[%s3868_s26] sm:$0xff] }
 0x118   : > { %v335_v36 = vpop.f32.mrf.mxu2 }
 0x119   : > { %v449_v38 = vpop.f32.mrf.mxu3  ;;  %889 = vmatmul.f32.gmra.mxu0 %v4121_v2  ;;  %1035 = vmatmul.f32.gmra.mxu1 %v4124_v24  ;;  %v4139_v2 = vld [vmem:[%s3868_s26 + $0x8] sm:$0xff] }
 0x11a   : > { %v4126_v49 = vadd.f32 %v449_v38, %v335_v36  ;;  %v1850_v38 = vld [vmem:[#allocation6 + $0x5d8] sm:$0xff] }
 0x11b   : > { %1859 = vmatpush.msrb.mxu3 %v1850_v38 }
 0x11c   : > { %4753 = vst [vmem:[#allocation26_spill] sm:$0xff] %v4126_v49 }
 0x11d   : > { %1139 = vmatmul.f32.vlgmr.msra.gmra.mxu2 %v3871_v32  ;;  %v2143_v32 = vld [vmem:[#allocation6 + $0x6e0] sm:$0xff] }
 0x11e   : > { %1285 = vmatmul.f32.vlgmr.msra.gmra.mxu3 %v3874_v33  ;;  %v845_v28 = vpop.f32.mrf.mxu0  ;;  %v991_v6 = vpop.f32.mrf.mxu1  ;;  %2150 = vmatpush.msrb.mxu1 %v2143_v32 }
 0x120   : > { %v550_v36 = vpop.f32.mrf.mxu2 }
 0x121   : > { %v699_v49 = vpop.f32.mrf.mxu3  ;;  %v614_v56 = vadd.f32 %v550_v36, %v468_v25  ;;  %1431 = vmatmul.f32.vlgmr.msra.gmra.mxu0 %v3980_v57  ;;  %1579 = vmatmul.f32.vlgmr.msra.gmra.mxu1 %v1530_v52  ;;  %v469_v25 = vadd.f32 %v4019_v34, %v4017_v29  ;;  %v1849_v57 = vld [vmem:[#allocation6 + $0x5d0] sm:$0xff]  ;;  %v1996_v52 = vld [vmem:[#allocation6 + $0x658] sm:$0xff]  ;;  %v1702_v29 = vld [vmem:[#allocation6 + $0x548] sm:$0xff] }
 0x122   : > { %1860 = vmatpush.msrb.mxu3 %v1849_v57  ;;  %2005 = vmatpush.msrb.mxu0 %v1996_v52  ;;  %v4158_v52 = vld [vmem:[%s3868_s26 + $0x20] sm:$0xff] }
 0x123   : > { %v763_v33 = vadd.f32 %v699_v49, %v614_v56  ;;  %1715 = vmatpush.msrb.mxu2 %v1702_v29  ;;  %v470_v56 = vadd.f32 %v4032_v44, %v4030_v43  ;;  %v1701_v43 = vld [vmem:[#allocation6 + $0x540] sm:$0xff] }
 0x125   : > { %v909_v24 = vadd.f32 %v845_v28, %v763_v33  ;;  %1142 = vmatmul.f32.gmra.mxu2 %v3881_v46  ;;  %v1995_v33 = vld [vmem:[#allocation6 + $0x650] sm:$0xff] }
 0x126   : > { %1288 = vmatmul.f32.gmra.mxu3 %v3884_v47  ;;  %v848_v21 = vpop.f32.mrf.mxu0  ;;  %v994_v53 = vpop.f32.mrf.mxu1  ;;  %v2142_v47 = vld [vmem:[#allocation6 + $0x6d8] sm:$0xff]  ;;  %2006 = vmatpush.msrb.mxu0 %v1995_v33 }
 0x127   : > { %v4143_v38 = vadd.f32 %v991_v6, %v909_v24  ;;  %2151 = vmatpush.msrb.mxu1 %v2142_v47  ;;  %v1532_v24 = vld [vmem:[%s3868_s26 + $0x18] sm:$0xff]  ;;  %1716 = vmatpush.msrb.mxu2 %v1701_v43 }
 0x128   : > { %v553_v27 = vpop.f32.mrf.mxu2 }
 0x129   : > { %v702_v28 = vpop.f32.mrf.mxu3  ;;  %v615_v46 = vadd.f32 %v553_v27, %v469_v25  ;;  %1434 = vmatmul.f32.gmra.mxu0 %v3986_v0  ;;  %1582 = vmatmul.f32.gmra.mxu1 %v4139_v2  ;;  %v1848_v0 = vld [vmem:[#allocation6 + $0x5c8] sm:$0xff]  ;;  %v471_v27 = vadd.f32 %v4045_v59, %v4043_v58  ;;  %v1700_v58 = vld [vmem:[#allocation6 + $0x538] sm:$0xff] }
 0x12a   : > { %1861 = vmatpush.msrb.mxu3 %v1848_v0  ;;  %1717 = vmatpush.msrb.mxu2 %v1700_v58  ;;  %v1993_v0 = vld [vmem:[#allocation6 + $0x640] sm:$0xff] }
 0x12b   : > { %v764_v49 = vadd.f32 %v702_v28, %v615_v46  ;;  %v1994_v46 = vld [vmem:[#allocation6 + $0x648] sm:$0xff] }
 0x12c   : > { %2007 = vmatpush.msrb.mxu0 %v1994_v46 }
 0x12d   : > { %v910_v36 = vadd.f32 %v848_v21, %v764_v49  ;;  %1145 = vmatmul.f32.gmra.mxu2 %v3891_v62 }
 0x12e   : > { %1291 = vmatmul.f32.gmra.mxu3 %v3894_v63  ;;  %v851_v34 = vpop.f32.mrf.mxu0  ;;  %v997_v6 = vpop.f32.mrf.mxu1  ;;  %v2141_v63 = vld [vmem:[#allocation6 + $0x6d0] sm:$0xff]  ;;  %2008 = vmatpush.msrb.mxu0 %v1993_v0 }
 0x12f   : > { %v4152_v32 = vadd.f32 %v994_v53, %v910_v36  ;;  %2152 = vmatpush.msrb.mxu1 %v2141_v63 }
 0x130   : > { %v556_v20 = vpop.f32.mrf.mxu2 }
 0x131   : > { %v705_v25 = vpop.f32.mrf.mxu3  ;;  %v616_v62 = vadd.f32 %v556_v20, %v470_v56  ;;  %1437 = vmatmul.f32.gmra.mxu0 %v3992_v7  ;;  %1585 = vmatmul.f32.gmra.mxu1 %v1532_v24  ;;  %v1847_v7 = vld [vmem:[#allocation6 + $0x5c0] sm:$0xff]  ;;  %v472_v24 = vadd.f32 %v4061_v18, %v4059_v17  ;;  %v1699_v17 = vld [vmem:[#allocation6 + $0x530] sm:$0xff] }
 0x132   : > { %1862 = vmatpush.msrb.mxu3 %v1847_v7  ;;  %1718 = vmatpush.msrb.mxu2 %v1699_v17  ;;  %v4207_v17 = vld [vmem:[%s3868_s26 + $0x60] sm:$0xff] }
 0x133   : > { %v765_v21 = vadd.f32 %v705_v25, %v616_v62 }
 0x135   : > { %v911_v57 = vadd.f32 %v851_v34, %v765_v21  ;;  %1148 = vmatmul.f32.gmra.mxu2 %v3901_v14  ;;  %v4177_v21 = vld [vmem:[%s3868_s26 + $0x38] sm:$0xff] }
 0x136   : > { %1294 = vmatmul.f32.gmra.mxu3 %v3904_v15  ;;  %v854_v44 = vpop.f32.mrf.mxu0  ;;  %v1000_v53 = vpop.f32.mrf.mxu1  ;;  %v2140_v15 = vld [vmem:[#allocation6 + $0x6c8] sm:$0xff] }
 0x137   : > { %v4162_v28 = vadd.f32 %v997_v6, %v911_v57  ;;  %2153 = vmatpush.msrb.mxu1 %v2140_v15  ;;  %v1534_v6 = vld [vmem:[%s3868_s26 + $0x30] sm:$0xff]  ;;  %v473_v57 = vadd.f32 %v4080_v41, %v4078_v39  ;;  %v1698_v39 = vld [vmem:[#allocation6 + $0x528] sm:$0xff] }
 0x138   : > { %v559_v47 = vpop.f32.mrf.mxu2  ;;  %1719 = vmatpush.msrb.mxu2 %v1698_v39 }
 0x139   : > { %v708_v49 = vpop.f32.mrf.mxu3  ;;  %v617_v14 = vadd.f32 %v559_v47, %v471_v27  ;;  %1440 = vmatmul.f32.gmra.mxu0 %v3998_v16  ;;  %1588 = vmatmul.f32.gmra.mxu1 %v4158_v52  ;;  %v1846_v16 = vld [vmem:[#allocation6 + $0x5b8] sm:$0xff] }
 0x13a   : > { %1863 = vmatpush.msrb.mxu3 %v1846_v16  ;;  %v475_v16 = vadd.f32 %v4118_v61, %v4116_v55  ;;  %v1696_v55 = vld [vmem:[#allocation6 + $0x518] sm:$0xff] }
 0x13b   : > { %v766_v36 = vadd.f32 %v708_v49, %v617_v14  ;;  %v1536_v49 = vld [vmem:[%s3868_s26 + $0x48] sm:$0xff]  ;;  %v474_v14 = vadd.f32 %v4099_v8, %v4097_v3  ;;  %v1697_v3 = vld [vmem:[#allocation6 + $0x520] sm:$0xff] }
 0x13c   : > { %1720 = vmatpush.msrb.mxu2 %v1697_v3  ;;  %v4754_v3 = vld [vmem:[#allocation23_spill] sm:$0xff] }
 0x13d   : > { %v912_v29 = vadd.f32 %v854_v44, %v766_v36  ;;  %1151 = vmatmul.f32.gmra.mxu2 %v3911_v30  ;;  %v1992_v44 = vld [vmem:[#allocation6 + $0x638] sm:$0xff]  ;;  %v1991_v36 = vld [vmem:[#allocation6 + $0x630] sm:$0xff] }
 0x13e   : > { %1297 = vmatmul.f32.gmra.mxu3 %v3914_v31  ;;  %v857_v59 = vpop.f32.mrf.mxu0  ;;  %v1003_v34 = vpop.f32.mrf.mxu1  ;;  %v2139_v31 = vld [vmem:[#allocation6 + $0x6c0] sm:$0xff]  ;;  %2009 = vmatpush.msrb.mxu0 %v1992_v44 }
 0x13f   : > { %v4171_v56 = vadd.f32 %v1000_v53, %v912_v29  ;;  %2154 = vmatpush.msrb.mxu1 %v2139_v31  ;;  %1721 = vmatpush.msrb.mxu2 %v1696_v55  ;;  %v2132_v55 = vld [vmem:[#allocation6 + $0x688] sm:$0xff] }
 0x140   : > { %v562_v33 = vpop.f32.mrf.mxu2  ;;  %2010 = vmatpush.msrb.mxu0 %v1991_v36 }
 0x141   : > { %v711_v20 = vpop.f32.mrf.mxu3  ;;  %v618_v30 = vadd.f32 %v562_v33, %v472_v24  ;;  %1443 = vmatmul.f32.gmra.mxu0 %v4009_v22  ;;  %1591 = vmatmul.f32.gmra.mxu1 %v1534_v6  ;;  %v1845_v22 = vld [vmem:[#allocation6 + $0x5b0] sm:$0xff]  ;;  %v1990_v33 = vld [vmem:[#allocation6 + $0x628] sm:$0xff] }
 0x142   : > { %1864 = vmatpush.msrb.mxu3 %v1845_v22  ;;  %v4196_v24 = vld [vmem:[%s3868_s26 + $0x50] sm:$0xff]  ;;  %2011 = vmatpush.msrb.mxu0 %v1990_v33  ;;  %v4237_v33 = vld [vmem:[%s3868_s26 + $0x80] sm:$0xff] }
 0x143   : > { %v767_v25 = vadd.f32 %v711_v20, %v618_v30 }
 0x145   : > { %v913_v62 = vadd.f32 %v857_v59, %v767_v25  ;;  %1154 = vmatmul.f32.gmra.mxu2 %v3927_v50 }
 0x146   : > { %1300 = vmatmul.f32.gmra.mxu3 %v3930_v51  ;;  %v860_v18 = vpop.f32.mrf.mxu0  ;;  %v1006_v63 = vpop.f32.mrf.mxu1  ;;  %v2138_v51 = vld [vmem:[#allocation6 + $0x6b8] sm:$0xff] }
 0x147   : > { %v4181_v43 = vadd.f32 %v1003_v34, %v913_v62  ;;  %2155 = vmatpush.msrb.mxu1 %v2138_v51 }
 0x148   : > { %v565_v53 = vpop.f32.mrf.mxu2 }
 0x149   : > { %v714_v27 = vpop.f32.mrf.mxu3  ;;  %v619_v50 = vadd.f32 %v565_v53, %v473_v57  ;;  %1446 = vmatmul.f32.gmra.mxu0 %v4022_v35  ;;  %1594 = vmatmul.f32.gmra.mxu1 %v4177_v21  ;;  %v1844_v35 = vld [vmem:[#allocation6 + $0x5a8] sm:$0xff] }
 0x14a   : > { %1865 = vmatpush.msrb.mxu3 %v1844_v35 }
 0x14b   : > { %v768_v7 = vadd.f32 %v714_v27, %v619_v50  ;;  %v1695_v27 = vld [vmem:[#allocation6 + $0x510] sm:$0xff] }
 0x14c   : > { %1722 = vmatpush.msrb.mxu2 %v1695_v27  ;;  %v1985_v27 = vld [vmem:[#allocation6 + $0x600] sm:$0xff] }
 0x14d   : > { %v914_v46 = vadd.f32 %v860_v18, %v768_v7  ;;  %1157 = vmatmul.f32.gmra.mxu2 %v3943_v4  ;;  %v4217_v7 = vld [vmem:[%s3868_s26 + $0x68] sm:$0xff] }
 0x14e   : > { %1303 = vmatmul.f32.gmra.mxu3 %v3946_v5  ;;  %v863_v41 = vpop.f32.mrf.mxu0  ;;  %v1009_v47 = vpop.f32.mrf.mxu1  ;;  %v2137_v5 = vld [vmem:[#allocation6 + $0x6b0] sm:$0xff] }
 0x14f   : > { %v4190_v15 = vadd.f32 %v1006_v63, %v914_v46  ;;  %2156 = vmatpush.msrb.mxu1 %v2137_v5  ;;  %v1842_v63 = vld [vmem:[#allocation6 + $0x598] sm:$0xff] }
 0x150   : > { %v568_v29 = vpop.f32.mrf.mxu2 }
 0x151   : > { %v717_v58 = vpop.f32.mrf.mxu3  ;;  %v620_v4 = vadd.f32 %v568_v29, %v474_v14  ;;  %1449 = vmatmul.f32.gmra.mxu0 %v4035_v45  ;;  %1597 = vmatmul.f32.gmra.mxu1 %v1536_v49  ;;  %v1843_v45 = vld [vmem:[#allocation6 + $0x5a0] sm:$0xff]  ;;  %v1694_v14 = vld [vmem:[#allocation6 + $0x508] sm:$0xff]  ;;  %v4227_v29 = vld [vmem:[%s3868_s26 + $0x78] sm:$0xff] }
 0x152   : > { %1866 = vmatpush.msrb.mxu3 %v1843_v45  ;;  %1723 = vmatpush.msrb.mxu2 %v1694_v14  ;;  %v2291_v14 = vld [vmem:[#allocation6 + $0x770] sm:$0xff] }
 0x153   : > { %v769_v59 = vadd.f32 %v717_v58, %v620_v4 }
 0x154   : > { %1867 = vmatpush.msrb.mxu3 %v1842_v63 }
 0x155   : > { %v915_v34 = vadd.f32 %v863_v41, %v769_v59  ;;  %1160 = vmatmul.f32.gmra.mxu2 %v3956_v12 }
 0x156   : > { %1306 = vmatmul.f32.gmra.mxu3 %v3959_v13  ;;  %v866_v8 = vpop.f32.mrf.mxu0  ;;  %v1012_v6 = vpop.f32.mrf.mxu1  ;;  %v2136_v13 = vld [vmem:[#allocation6 + $0x6a8] sm:$0xff] }
 0x157   : > { %v4200_v0 = vadd.f32 %v1009_v47, %v915_v34  ;;  %2157 = vmatpush.msrb.mxu1 %v2136_v13  ;;  %v4756_v13 = vld [vmem:[#allocation19_spill] sm:$0xff] }
 0x158   : > { %v571_v20 = vpop.f32.mrf.mxu2 }
 0x159   : > { %v720_v30 = vpop.f32.mrf.mxu3  ;;  %v621_v12 = vadd.f32 %v571_v20, %v475_v16  ;;  %1452 = vmatmul.f32.gmra.mxu0 %v4048_v60  ;;  %1600 = vmatmul.f32.gmra.mxu1 %v4196_v24  ;;  %v1989_v60 = vld [vmem:[#allocation6 + $0x620] sm:$0xff]  ;;  %v1986_v20 = vld [vmem:[#allocation6 + $0x608] sm:$0xff] }
 0x15a   : > { %2012 = vmatpush.msrb.mxu0 %v1989_v60 }
 0x15b   : > { %v770_v31 = vadd.f32 %v720_v30, %v621_v12 }
 0x15d   : > { %v916_v25 = vadd.f32 %v866_v8, %v770_v31  ;;  %1163 = vmatmul.f32.gmra.mxu2 %v4055_v9  ;;  %v2135_v9 = vld [vmem:[#allocation6 + $0x6a0] sm:$0xff]  ;;  %v4755_v8 = vld [vmem:[#allocation24_spill] sm:$0xff] }
 0x15e   : > { %1309 = vmatmul.f32.gmra.mxu3 %v4064_v19  ;;  %v869_v61 = vpop.f32.mrf.mxu0  ;;  %v1015_v62 = vpop.f32.mrf.mxu1  ;;  %2158 = vmatpush.msrb.mxu1 %v2135_v9  ;;  %v3199_v9 = vld [vmem:[%s3868_s26 + $0x126] sm:$0xff] }
 0x15f   : > { %v4209_v18 = vadd.f32 %v1012_v6, %v916_v25  ;;  %v1693_v6 = vld [vmem:[#allocation6 + $0x500] sm:$0xff]  ;;  %v4757_v25 = vld [vmem:[#allocation25_spill] sm:$0xff] }
 0x160   : > { %v574_v57 = vpop.f32.mrf.mxu2  ;;  %1724 = vmatpush.msrb.mxu2 %v1693_v6  ;;  %v3169_v6 = vld [vmem:[%s3868_s26 + $0x13a] sm:$0xff] }
 0x161   : > { %v723_v22 = vpop.f32.mrf.mxu3  ;;  %v622_v44 = vadd.f32 %v574_v57, %v4011_v26  ;;  %1455 = vmatmul.f32.gmra.mxu0 %v4067_v23  ;;  %1603 = vmatmul.f32.gmra.mxu1 %v4207_v17  ;;  %v1841_v26 = vld [vmem:[#allocation6 + $0x590] sm:$0xff]  ;;  %v1988_v23 = vld [vmem:[#allocation6 + $0x618] sm:$0xff] }
 0x162   : > { %1868 = vmatpush.msrb.mxu3 %v1841_v26  ;;  %2013 = vmatpush.msrb.mxu0 %v1988_v23  ;;  %v2292_v57 = vld [vmem:[#allocation6 + $0x778] sm:$0xff]  ;;  %v4758_v23 = vld [vmem:[#allocation20_spill] sm:$0xff] }
 0x163   : > { %v771_v19 = vadd.f32 %v723_v22, %v622_v44  ;;  %2293 = vmatpush.msra.mxu2 %v2292_v57 }
 0x165   : > { %v917_v53 = vadd.f32 %v869_v61, %v771_v19  ;;  %1166 = vmatmul.f32.gmra.mxu2 %v4074_v37  ;;  %v2134_v37 = vld [vmem:[#allocation6 + $0x698] sm:$0xff]  ;;  %v3167_v61 = vld [vmem:[%s3868_s26 + $0x122] sm:$0xff]  ;;  %v4248_v19 = vld [vmem:[%s3868_s26 + $0x90] sm:$0xff] }
 0x166   : > { %1312 = vmatmul.f32.gmra.mxu3 %v4083_v42  ;;  %v872_v50 = vpop.f32.mrf.mxu0  ;;  %v1018_v51 = vpop.f32.mrf.mxu1  ;;  %2159 = vmatpush.msrb.mxu1 %v2134_v37  ;;  %v3184_v37 = vld [vmem:[%s3868_s26 + $0x12c] sm:$0xff] }
 0x167   : > { %v4219_v46 = vadd.f32 %v1015_v62, %v917_v53  ;;  %v3183_v62 = vld [vmem:[%s3868_s26 + $0x124] sm:$0xff]  ;;  %2294 = vmatpush.msra.mxu2 %v2291_v14 }
 0x168   : > { %v577_v39 = vpop.f32.mrf.mxu2 }
 0x169   : > { %v726_v41 = vpop.f32.mrf.mxu3  ;;  %v623_v47 = vadd.f32 %v577_v39, %v4024_v40  ;;  %1458 = vmatmul.f32.gmra.mxu0 %v4086_v48  ;;  %1606 = vmatmul.f32.gmra.mxu1 %v4217_v7  ;;  %v1840_v40 = vld [vmem:[#allocation6 + $0x588] sm:$0xff]  ;;  %v1987_v48 = vld [vmem:[#allocation6 + $0x610] sm:$0xff] }
 0x16a   : > { %1869 = vmatpush.msrb.mxu3 %v1840_v40  ;;  %2014 = vmatpush.msrb.mxu0 %v1987_v48  ;;  %v3200_v40 = vld [vmem:[%s3868_s26 + $0x12e] sm:$0xff]  ;;  %v4258_v48 = vld [vmem:[%s3868_s26 + $0x98] sm:$0xff] }
 0x16b   : > { %v772_v42 = vadd.f32 %v726_v41, %v623_v47  ;;  %v2131_v41 = vld [vmem:[#allocation6 + $0x680] sm:$0xff]  ;;  %v3168_v47 = vld [vmem:[%s3868_s26 + $0x12a] sm:$0xff] }
 0x16c   : > { %2015 = vmatpush.msrb.mxu0 %v1986_v20  ;;  %v2290_v20 = vld [vmem:[#allocation6 + $0x768] sm:$0xff] }
 0x16d   : > { %v918_v49 = vadd.f32 %v872_v50, %v772_v42  ;;  %1169 = vmatmul.f32.gmra.mxu2 %v4093_v1  ;;  %v2133_v1 = vld [vmem:[#allocation6 + $0x690] sm:$0xff]  ;;  %v2441_v50 = vld [vmem:[#allocation6 + $0x7f8] sm:$0xff] }
 0x16e   : > { %1315 = vmatmul.f32.gmra.mxu3 %v4102_v10  ;;  %v875_v35 = vpop.f32.mrf.mxu0  ;;  %v1021_v36 = vpop.f32.mrf.mxu1  ;;  %2160 = vmatpush.msrb.mxu1 %v2133_v1 }
 0x16f   : > { %v4229_v58 = vadd.f32 %v1018_v51, %v918_v49  ;;  %2016 = vmatpush.msrb.mxu0 %v1985_v27  ;;  %2295 = vmatpush.msra.mxu2 %v2290_v20 }
 0x170   : > { %v580_v4 = vpop.f32.mrf.mxu2  ;;  %2161 = vmatpush.msrb.mxu1 %v2132_v55  ;;  %v2439_v55 = vld [vmem:[#allocation6 + $0x7e8] sm:$0xff] }
 0x171   : > { %v729_v5 = vpop.f32.mrf.mxu3  ;;  %v624_v59 = vadd.f32 %v580_v4, %v4037_v54  ;;  %1461 = vmatmul.f32.gmra.mxu0 %v4105_v11  ;;  %1609 = vmatmul.f32.gmra.mxu1 %v4227_v29  ;;  %v1839_v11 = vld [vmem:[#allocation6 + $0x580] sm:$0xff] }
 0x172   : > { %1870 = vmatpush.msrb.mxu3 %v1839_v11  ;;  %2162 = vmatpush.msrb.mxu1 %v2131_v41  ;;  %v4278_v41 = vld [vmem:[%s3868_s26 + $0xb0] sm:$0xff] }
 0x173   : > { %v773_v10 = vadd.f32 %v729_v5, %v624_v59  ;;  %v2440_v5 = vld [vmem:[#allocation6 + $0x7f0] sm:$0xff]  ;;  %v2587_v59 = vld [vmem:[#allocation6 + $0x878] sm:$0xff] }
 0x174   : > { %2442 = vmatpush.msra.mxu3 %v2441_v50  ;;  %2588 = vmatpush.msra.mxu0 %v2587_v59 }
 0x175   : > { %v919_v34 = vadd.f32 %v875_v35, %v773_v10  ;;  %1172 = vmatmul.f32.gmra.mxu2 %v4754_v3 }
 0x176   : > { %1318 = vmatmul.f32.gmra.mxu3 %v4755_v8  ;;  %v878_v16 = vpop.f32.mrf.mxu0  ;;  %v1024_v45 = vpop.f32.mrf.mxu1  ;;  %v2733_v8 = vld [vmem:[#allocation6 + $0x8f8] sm:$0xff] }
 0x177   : > { %v4239_v54 = vadd.f32 %v1021_v36, %v919_v34  ;;  %2443 = vmatpush.msra.mxu3 %v2440_v5  ;;  %v4759_v34 = vld [vmem:[#allocation21_spill] sm:$0xff]  ;;  %2734 = vmatpush.msra.mxu1 %v2733_v8  ;;  %v1676_v5 = vld [vmem:[%s3868_s26 + $0x4] sm:$0xff] }
 0x178   : > { %v583_v30 = vpop.f32.mrf.mxu2  ;;  %v4287_v8 = vld [vmem:[%s3868_s26 + $0x64] sm:$0xff] }
 0x179   : > { %v732_v12 = vpop.f32.mrf.mxu3  ;;  %v625_v31 = vadd.f32 %v583_v30, %v4756_v13  ;;  %1464 = vmatmul.f32.gmra.mxu0 %v4757_v25  ;;  %1612 = vmatmul.f32.gmra.mxu1 %v4237_v33  ;;  %v3201_v13 = vld [vmem:[%s3868_s26 + $0x13e] sm:$0xff] }
 0x17a   : > { %2444 = vmatpush.msra.mxu3 %v2439_v55 }
 0x17b   : > { %v774_v63 = vadd.f32 %v732_v12, %v625_v31  ;;  %v4268_v31 = vld [vmem:[%s3868_s26 + $0xa8] sm:$0xff] }
 0x17d   : > { %v920_v60 = vadd.f32 %v878_v16, %v774_v63  ;;  %1175 = vmatmul.f32.gmra.mxu2 %v3167_v61  ;;  %v3185_v16 = vld [vmem:[%s3868_s26 + $0x13c] sm:$0xff]  ;;  %v2586_v61 = vld [vmem:[#allocation6 + $0x870] sm:$0xff] }
 0x17e   : > { %1321 = vmatmul.f32.gmra.mxu3 %v3183_v62  ;;  %v881_v22 = vpop.f32.mrf.mxu0  ;;  %v1027_v44 = vpop.f32.mrf.mxu1  ;;  %2589 = vmatpush.msra.mxu0 %v2586_v61 }
 0x17f   : > { %v4250_v53 = vadd.f32 %v1024_v45, %v920_v60  ;;  %v4760_v60 = vld [vmem:[#allocation22_spill] sm:$0xff] }
 0x180   : > { %v586_v51 = vpop.f32.mrf.mxu2 }
 0x181   : > { %v735_v26 = vpop.f32.mrf.mxu3  ;;  %v626_v39 = vadd.f32 %v586_v51, %v4758_v23  ;;  %1467 = vmatmul.f32.gmra.mxu0 %v3199_v9  ;;  %1615 = vmatmul.f32.gmra.mxu1 %v4248_v19  ;;  %v3186_v9 = vld [vmem:[%s3868_s26 + $0x144] sm:$0xff] }
 0x182   : > { %v2289_v51 = vld [vmem:[#allocation6 + $0x760] sm:$0xff] }
 0x183   : > { %v775_v42 = vadd.f32 %v735_v26, %v626_v39  ;;  %v3202_v39 = vld [vmem:[%s3868_s26 + $0x146] sm:$0xff]  ;;  %2296 = vmatpush.msra.mxu2 %v2289_v51  ;;  %v1678_v51 = vld [vmem:[%s3868_s26 + $0x1c] sm:$0xff] }
 0x185   : > { %v921_v49 = vadd.f32 %v881_v22, %v775_v42  ;;  %1178 = vmatmul.f32.gmra.mxu2 %v3168_v47  ;;  %v2732_v22 = vld [vmem:[#allocation6 + $0x8f0] sm:$0xff]  ;;  %v2585_v42 = vld [vmem:[#allocation6 + $0x868] sm:$0xff] }
 0x186   : > { %1324 = vmatmul.f32.gmra.mxu3 %v3184_v37  ;;  %v884_v35 = vpop.f32.mrf.mxu0  ;;  %v1030_v36 = vpop.f32.mrf.mxu1  ;;  %2735 = vmatpush.msra.mxu1 %v2732_v22  ;;  %v2438_v37 = vld [vmem:[#allocation6 + $0x7e0] sm:$0xff]  ;;  %v2583_v22 = vld [vmem:[#allocation6 + $0x858] sm:$0xff] }
 0x187   : > { %v4260_v4 = vadd.f32 %v1027_v44, %v921_v49  ;;  %v3170_v44 = vld [vmem:[%s3868_s26 + $0x142] sm:$0xff]  ;;  %2445 = vmatpush.msra.mxu3 %v2438_v37  ;;  %2590 = vmatpush.msra.mxu0 %v2585_v42 }
 0x188   : > { %v589_v1 = vpop.f32.mrf.mxu2 }
 0x189   : > { %v738_v10 = vpop.f32.mrf.mxu3  ;;  %v627_v3 = vadd.f32 %v589_v1, %v4759_v34  ;;  %1470 = vmatmul.f32.gmra.mxu0 %v3200_v40  ;;  %1618 = vmatmul.f32.gmra.mxu1 %v4258_v48  ;;  %v2731_v40 = vld [vmem:[#allocation6 + $0x8e8] sm:$0xff] }
 0x18a   : > { %2736 = vmatpush.msra.mxu1 %v2731_v40 }
 0x18b   : > { %v776_v45 = vadd.f32 %v738_v10, %v627_v3  ;;  %v2288_v10 = vld [vmem:[#allocation6 + $0x758] sm:$0xff] }
 0x18c   : > { %2297 = vmatpush.msra.mxu2 %v2288_v10 }
 0x18d   : > { %v922_v11 = vadd.f32 %v884_v35, %v776_v45  ;;  %1181 = vmatmul.f32.gmra.mxu2 %v3169_v6  ;;  %v4761_v35 = vld [vmem:[#allocation26_spill] sm:$0xff] }
 0x18e   : > { %1327 = vmatmul.f32.gmra.mxu3 %v3185_v16  ;;  %v887_v30 = vpop.f32.mrf.mxu0  ;;  %v1033_v12 = vpop.f32.mrf.mxu1  ;;  %v2437_v16 = vld [vmem:[#allocation6 + $0x7d8] sm:$0xff]  ;;  %v2584_v45 = vld [vmem:[#allocation6 + $0x860] sm:$0xff] }
 0x18f   : > { %v4270_v25 = vadd.f32 %v1030_v36, %v922_v11  ;;  %2446 = vmatpush.msra.mxu3 %v2437_v16  ;;  %2591 = vmatpush.msra.mxu0 %v2584_v45 }
 0x190   : > { %v592_v62 = vpop.f32.mrf.mxu2 }
 0x191   : > { %v741_v63 = vpop.f32.mrf.mxu3  ;;  %v628_v57 = vadd.f32 %v592_v62, %v4760_v60  ;;  %1473 = vmatmul.f32.gmra.mxu0 %v3201_v13  ;;  %1621 = vmatmul.f32.gmra.mxu1 %v4268_v31  ;;  %v1823_v13 = vld [vmem:[%s3868_s26 + $0x10] sm:$0xff] }
 0x192   : > { %v2287_v62 = vld [vmem:[#allocation6 + $0x750] sm:$0xff]  ;;  %2592 = vmatpush.msra.mxu0 %v2583_v22 }
 0x193   : > { %v777_v27 = vadd.f32 %v741_v63, %v628_v57  ;;  %v4297_v57 = vld [vmem:[%s3868_s26 + $0x6c] sm:$0xff]  ;;  %2298 = vmatpush.msra.mxu2 %v2287_v62  ;;  %v4327_v22 = vld [vmem:[%s3868_s26 + $0x94] sm:$0xff] }
 0x195   : > { %v923_v50 = vadd.f32 %v887_v30, %v777_v27  ;;  %1184 = vmatmul.f32.gmra.mxu2 %v3170_v44 }
 0x196   : > { %1330 = vmatmul.f32.gmra.mxu3 %v3186_v9  ;;  %v890_v26 = vpop.f32.mrf.mxu0  ;;  %v1036_v23 = vpop.f32.mrf.mxu1 }
 0x197   : > { %v4280_v47 = vadd.f32 %v1033_v12, %v923_v50  ;;  %v1677_v12 = vld [vmem:[%s3868_s26 + $0xc] sm:$0xff]  ;;  %v2729_v50 = vld [vmem:[#allocation6 + $0x8d8] sm:$0xff] }
 0x198   : > { %v595_v49 = vpop.f32.mrf.mxu2 }
 0x199   : > { %v744_v14 = vpop.f32.mrf.mxu3  ;;  %v629_v36 = vadd.f32 %v595_v49, %v4761_v35  ;;  %1476 = vmatmul.f32.gmra.mxu0 %v3202_v39  ;;  %1624 = vmatmul.f32.gmra.mxu1 %v4278_v41  ;;  %v2286_v39 = vld [vmem:[#allocation6 + $0x748] sm:$0xff]  ;;  %v4307_v49 = vld [vmem:[%s3868_s26 + $0x7c] sm:$0xff]  ;;  %v2582_v35 = vld [vmem:[#allocation6 + $0x850] sm:$0xff] }
 0x19a   : > { %2299 = vmatpush.msra.mxu2 %v2286_v39  ;;  %2593 = vmatpush.msra.mxu0 %v2582_v35 }
 0x19b   : > { %v778_v59 = vadd.f32 %v744_v14, %v629_v36  ;;  %v2435_v14 = vld [vmem:[#allocation6 + $0x7c8] sm:$0xff] }
 0x19d   : > { %v924_v1 = vadd.f32 %v890_v26, %v778_v59  ;;  %1725 = vmatmul.f32.vlgmr.msrb.gmra.mxu2 %v1676_v5  ;;  %v1679_v59 = vld [vmem:[%s3868_s26 + $0x24] sm:$0xff] }
 0x19e   : > { %1871 = vmatmul.f32.vlgmr.msrb.gmra.mxu3 %v4139_v2  ;;  %v1432_v34 = vpop.f32.mrf.mxu0  ;;  %v1580_v3 = vpop.f32.mrf.mxu1  ;;  %v2730_v2 = vld [vmem:[#allocation6 + $0x8e0] sm:$0xff] }
 0x19f   : > { %v4289_v6 = vadd.f32 %v1036_v23, %v924_v1  ;;  %2737 = vmatpush.msra.mxu1 %v2730_v2  ;;  %v1825_v1 = vld [vmem:[%s3868_s26 + $0x28] sm:$0xff] }
 0x1a0   : > { %v1140_v11 = vpop.f32.mrf.mxu2 }
 0x1a1   : > { %v1286_v20 = vpop.f32.mrf.mxu3  ;;  %v1204_v30 = vadd.f32 %v1140_v11, %v4143_v38  ;;  %2017 = vmatmul.f32.vlgmr.msrb.gmra.mxu0 %v4207_v17  ;;  %2163 = vmatmul.f32.vlgmr.msrb.gmra.mxu1 %v4287_v8  ;;  %v2436_v17 = vld [vmem:[#allocation6 + $0x7d0] sm:$0xff]  ;;  %v4317_v11 = vld [vmem:[%s3868_s26 + $0x84] sm:$0xff] }
 0x1a2   : > { %2447 = vmatpush.msra.mxu3 %v2436_v17  ;;  %2738 = vmatpush.msra.mxu1 %v2729_v50 }
 0x1a3   : > { %v1350_v55 = vadd.f32 %v1286_v20, %v1204_v30  ;;  %v2581_v20 = vld [vmem:[#allocation6 + $0x848] sm:$0xff] }
 0x1a4   : > { %2448 = vmatpush.msra.mxu3 %v2435_v14  ;;  %2594 = vmatpush.msra.mxu0 %v2581_v20  ;;  %v4347_v20 = vld [vmem:[%s3868_s26 + $0xac] sm:$0xff] }
 0x1a5   : > { %v1496_v61 = vadd.f32 %v1432_v34, %v1350_v55  ;;  %1728 = vmatmul.f32.gmra.mxu2 %v1677_v12  ;;  %v1680_v55 = vld [vmem:[%s3868_s26 + $0x34] sm:$0xff] }
 0x1a6   : > { %1874 = vmatmul.f32.gmra.mxu3 %v1823_v13  ;;  %v1435_v63 = vpop.f32.mrf.mxu0  ;;  %v1583_v60 = vpop.f32.mrf.mxu1  ;;  %v2727_v13 = vld [vmem:[#allocation6 + $0x8c8] sm:$0xff] }
 0x1a7   : > { %v4299_v38 = vadd.f32 %v1580_v3, %v1496_v61  ;;  %v2285_v3 = vld [vmem:[#allocation6 + $0x740] sm:$0xff] }
 0x1a8   : > { %v1143_v44 = vpop.f32.mrf.mxu2  ;;  %2300 = vmatpush.msra.mxu2 %v2285_v3 }
 0x1a9   : > { %v1289_v9 = vpop.f32.mrf.mxu3  ;;  %v1205_v27 = vadd.f32 %v1143_v44, %v4152_v32  ;;  %2020 = vmatmul.f32.gmra.mxu0 %v4217_v7  ;;  %2166 = vmatmul.f32.gmra.mxu1 %v4297_v57  ;;  %v2433_v44 = vld [vmem:[#allocation6 + $0x7b8] sm:$0xff] }
 0x1ab   : > { %v1351_v26 = vadd.f32 %v1289_v9, %v1205_v27  ;;  %v2580_v9 = vld [vmem:[#allocation6 + $0x840] sm:$0xff] }
 0x1ac   : > { %2595 = vmatpush.msra.mxu0 %v2580_v9 }
 0x1ad   : > { %v1497_v23 = vadd.f32 %v1435_v63, %v1351_v26  ;;  %1731 = vmatmul.f32.gmra.mxu2 %v1678_v51  ;;  %v2284_v63 = vld [vmem:[#allocation6 + $0x738] sm:$0xff] }
 0x1ae   : > { %1877 = vmatmul.f32.gmra.mxu3 %v4158_v52  ;;  %v1438_v37 = vpop.f32.mrf.mxu0  ;;  %v1586_v42 = vpop.f32.mrf.mxu1  ;;  %v2728_v52 = vld [vmem:[#allocation6 + $0x8d0] sm:$0xff]  ;;  %2301 = vmatpush.msra.mxu2 %v2284_v63  ;;  %v1681_v26 = vld [vmem:[%s3868_s26 + $0x3c] sm:$0xff] }
 0x1af   : > { %v4309_v32 = vadd.f32 %v1583_v60, %v1497_v23  ;;  %2739 = vmatpush.msra.mxu1 %v2728_v52  ;;  %v1827_v23 = vld [vmem:[%s3868_s26 + $0x40] sm:$0xff] }
 0x1b0   : > { %v1146_v36 = vpop.f32.mrf.mxu2 }
 0x1b1   : > { %v1292_v40 = vpop.f32.mrf.mxu3  ;;  %v1206_v5 = vadd.f32 %v1146_v36, %v4162_v28  ;;  %2023 = vmatmul.f32.gmra.mxu0 %v4227_v29  ;;  %2169 = vmatmul.f32.gmra.mxu1 %v4307_v49  ;;  %v2434_v29 = vld [vmem:[#allocation6 + $0x7c0] sm:$0xff] }
 0x1b2   : > { %2449 = vmatpush.msra.mxu3 %v2434_v29  ;;  %2740 = vmatpush.msra.mxu1 %v2727_v13  ;;  %v4337_v36 = vld [vmem:[%s3868_s26 + $0x9c] sm:$0xff] }
 0x1b3   : > { %v1352_v10 = vadd.f32 %v1292_v40, %v1206_v5  ;;  %v2579_v40 = vld [vmem:[#allocation6 + $0x838] sm:$0xff] }
 0x1b4   : > { %2450 = vmatpush.msra.mxu3 %v2433_v44  ;;  %2596 = vmatpush.msra.mxu0 %v2579_v40  ;;  %v4370_v40 = vld [vmem:[%s3868_s26 + $0xc4] sm:$0xff] }
 0x1b5   : > { %v1498_v34 = vadd.f32 %v1438_v37, %v1352_v10  ;;  %1734 = vmatmul.f32.gmra.mxu2 %v1679_v59  ;;  %v1682_v10 = vld [vmem:[%s3868_s26 + $0x4c] sm:$0xff] }
 0x1b6   : > { %1880 = vmatmul.f32.gmra.mxu3 %v1825_v1  ;;  %v1441_v16 = vpop.f32.mrf.mxu0  ;;  %v1589_v45 = vpop.f32.mrf.mxu1  ;;  %v2725_v1 = vld [vmem:[#allocation6 + $0x8b8] sm:$0xff] }
 0x1b7   : > { %v4319_v28 = vadd.f32 %v1586_v42, %v1498_v34  ;;  %v2283_v42 = vld [vmem:[#allocation6 + $0x730] sm:$0xff] }
 0x1b8   : > { %v1149_v30 = vpop.f32.mrf.mxu2  ;;  %2302 = vmatpush.msra.mxu2 %v2283_v42  ;;  %v2280_v42 = vld [vmem:[#allocation6 + $0x718] sm:$0xff] }
 0x1b9   : > { %v1295_v2 = vpop.f32.mrf.mxu3  ;;  %v1207_v12 = vadd.f32 %v1149_v30, %v4171_v56  ;;  %2026 = vmatmul.f32.gmra.mxu0 %v4237_v33  ;;  %2172 = vmatmul.f32.gmra.mxu1 %v4317_v11  ;;  %v2431_v30 = vld [vmem:[#allocation6 + $0x7a8] sm:$0xff] }
 0x1bb   : > { %v1353_v61 = vadd.f32 %v1295_v2, %v1207_v12  ;;  %v2578_v2 = vld [vmem:[#allocation6 + $0x830] sm:$0xff] }
 0x1bc   : > { %2597 = vmatpush.msra.mxu0 %v2578_v2  ;;  %v4383_v2 = vld [vmem:[%s3868_s26 + $0xc8] sm:$0xff] }
 0x1bd   : > { %v1499_v62 = vadd.f32 %v1441_v16, %v1353_v61  ;;  %1737 = vmatmul.f32.gmra.mxu2 %v1680_v55  ;;  %v2282_v16 = vld [vmem:[#allocation6 + $0x728] sm:$0xff]  ;;  %v1683_v61 = vld [vmem:[%s3868_s26 + $0x54] sm:$0xff] }
 0x1be   : > { %1883 = vmatmul.f32.gmra.mxu3 %v4177_v21  ;;  %v1444_v60 = vpop.f32.mrf.mxu0  ;;  %v1592_v17 = vpop.f32.mrf.mxu1  ;;  %v2726_v21 = vld [vmem:[#allocation6 + $0x8c0] sm:$0xff]  ;;  %2303 = vmatpush.msra.mxu2 %v2282_v16 }
 0x1bf   : > { %v4329_v56 = vadd.f32 %v1589_v45, %v1499_v62  ;;  %2741 = vmatpush.msra.mxu1 %v2726_v21  ;;  %v1829_v62 = vld [vmem:[%s3868_s26 + $0x58] sm:$0xff] }
 0x1c0   : > { %v1152_v27 = vpop.f32.mrf.mxu2 }
 0x1c1   : > { %v1298_v50 = vpop.f32.mrf.mxu3  ;;  %v1208_v51 = vadd.f32 %v1152_v27, %v4181_v43  ;;  %2029 = vmatmul.f32.gmra.mxu0 %v4248_v19  ;;  %2175 = vmatmul.f32.gmra.mxu1 %v4327_v22  ;;  %v2432_v19 = vld [vmem:[#allocation6 + $0x7b0] sm:$0xff] }
 0x1c2   : > { %2451 = vmatpush.msra.mxu3 %v2432_v19  ;;  %2742 = vmatpush.msra.mxu1 %v2725_v1  ;;  %v4357_v27 = vld [vmem:[%s3868_s26 + $0xb4] sm:$0xff]  ;;  %v4367_v19 = vld [vmem:[%s3868_s26 + $0xc0] sm:$0xff] }
 0x1c3   : > { %v1354_v39 = vadd.f32 %v1298_v50, %v1208_v51 }
 0x1c4   : > { %2452 = vmatpush.msra.mxu3 %v2431_v30 }
 0x1c5   : > { %v1500_v37 = vadd.f32 %v1444_v60, %v1354_v39  ;;  %1740 = vmatmul.f32.gmra.mxu2 %v1681_v26 }
 0x1c6   : > { %1886 = vmatmul.f32.gmra.mxu3 %v1827_v23  ;;  %v1447_v14 = vpop.f32.mrf.mxu0  ;;  %v1595_v35 = vpop.f32.mrf.mxu1  ;;  %v2723_v23 = vld [vmem:[#allocation6 + $0x8a8] sm:$0xff] }
 0x1c7   : > { %v4339_v43 = vadd.f32 %v1592_v17, %v1500_v37  ;;  %v2281_v17 = vld [vmem:[#allocation6 + $0x720] sm:$0xff] }
 0x1c8   : > { %v1155_v5 = vpop.f32.mrf.mxu2  ;;  %2304 = vmatpush.msra.mxu2 %v2281_v17  ;;  %v2278_v17 = vld [vmem:[#allocation6 + $0x708] sm:$0xff] }
 0x1c9   : > { %v1301_v52 = vpop.f32.mrf.mxu3  ;;  %v1209_v59 = vadd.f32 %v1155_v5, %v4190_v15  ;;  %2032 = vmatmul.f32.gmra.mxu0 %v4258_v48  ;;  %2178 = vmatmul.f32.gmra.mxu1 %v4337_v36  ;;  %v2429_v5 = vld [vmem:[#allocation6 + $0x798] sm:$0xff] }
 0x1ca   : > { %2305 = vmatpush.msra.mxu2 %v2280_v42 }
 0x1cb   : > { %v1355_v34 = vadd.f32 %v1301_v52, %v1209_v59  ;;  %v2576_v52 = vld [vmem:[#allocation6 + $0x820] sm:$0xff] }
 0x1cd   : > { %v1501_v3 = vadd.f32 %v1447_v14, %v1355_v34  ;;  %1743 = vmatmul.f32.gmra.mxu2 %v1682_v10  ;;  %v2722_v10 = vld [vmem:[#allocation6 + $0x8a0] sm:$0xff]  ;;  %v4378_v34 = vld [vmem:[%s3868_s26 + $0x70] sm:$0xff] }
 0x1ce   : > { %1889 = vmatmul.f32.gmra.mxu3 %v4196_v24  ;;  %v1450_v45 = vpop.f32.mrf.mxu0  ;;  %v1598_v29 = vpop.f32.mrf.mxu1  ;;  %v2724_v24 = vld [vmem:[#allocation6 + $0x8b0] sm:$0xff] }
 0x1cf   : > { %v4349_v15 = vadd.f32 %v1595_v35, %v1501_v3  ;;  %2743 = vmatpush.msra.mxu1 %v2724_v24 }
 0x1d0   : > { %v1158_v12 = vpop.f32.mrf.mxu2 }
 0x1d1   : > { %v1304_v13 = vpop.f32.mrf.mxu3  ;;  %v1210_v55 = vadd.f32 %v1158_v12, %v4200_v0  ;;  %2035 = vmatmul.f32.gmra.mxu0 %v4268_v31  ;;  %2181 = vmatmul.f32.gmra.mxu1 %v4347_v20  ;;  %v2430_v0 = vld [vmem:[#allocation6 + $0x7a0] sm:$0xff]  ;;  %v2577_v31 = vld [vmem:[#allocation6 + $0x828] sm:$0xff] }
 0x1d2   : > { %2453 = vmatpush.msra.mxu3 %v2430_v0  ;;  %2598 = vmatpush.msra.mxu0 %v2577_v31  ;;  %v4396_v0 = vld [vmem:[%s3868_s26 + $0xd8] sm:$0xff] }
 0x1d3   : > { %v1356_v63 = vadd.f32 %v1304_v13, %v1210_v55  ;;  %2744 = vmatpush.msra.mxu1 %v2723_v23  ;;  %v2428_v13 = vld [vmem:[#allocation6 + $0x790] sm:$0xff]  ;;  %v2575_v55 = vld [vmem:[#allocation6 + $0x818] sm:$0xff] }
 0x1d4   : > { %2454 = vmatpush.msra.mxu3 %v2429_v5  ;;  %2599 = vmatpush.msra.mxu0 %v2576_v52  ;;  %v4399_v31 = vld [vmem:[%s3868_s26 + $0xdc] sm:$0xff] }
 0x1d5   : > { %v1502_v60 = vadd.f32 %v1450_v45, %v1356_v63  ;;  %1746 = vmatmul.f32.gmra.mxu2 %v1683_v61  ;;  %2745 = vmatpush.msra.mxu1 %v2722_v10  ;;  %v2279_v45 = vld [vmem:[#allocation6 + $0x710] sm:$0xff]  ;;  %v2573_v10 = vld [vmem:[#allocation6 + $0x808] sm:$0xff] }
 0x1d6   : > { %1892 = vmatmul.f32.gmra.mxu3 %v1829_v62  ;;  %v1453_v44 = vpop.f32.mrf.mxu0  ;;  %v1601_v9 = vpop.f32.mrf.mxu1  ;;  %2306 = vmatpush.msra.mxu2 %v2279_v45  ;;  %v2721_v62 = vld [vmem:[#allocation6 + $0x898] sm:$0xff]  ;;  %v2719_v45 = vld [vmem:[#allocation6 + $0x888] sm:$0xff] }
 0x1d7   : > { %v4359_v50 = vadd.f32 %v1598_v29, %v1502_v60  ;;  %2455 = vmatpush.msra.mxu3 %v2428_v13  ;;  %2600 = vmatpush.msra.mxu0 %v2575_v55 }
 0x1d8   : > { %v1161_v51 = vpop.f32.mrf.mxu2  ;;  %2746 = vmatpush.msra.mxu1 %v2721_v62  ;;  %2307 = vmatpush.msra.mxu2 %v2278_v17  ;;  %v4436_v17 = vld [vmem:[%s3868_s26 + $0xa0] sm:$0xff] }
 0x1d9   : > { %v1307_v21 = vpop.f32.mrf.mxu3  ;;  %v1211_v26 = vadd.f32 %v1161_v51, %v4209_v18  ;;  %2038 = vmatmul.f32.gmra.mxu0 %v4278_v41  ;;  %2184 = vmatmul.f32.gmra.mxu1 %v4357_v27  ;;  %v2427_v51 = vld [vmem:[#allocation6 + $0x788] sm:$0xff] }
 0x1da   : > { %2456 = vmatpush.msra.mxu3 %v2427_v51 }
 0x1db   : > { %v1357_v39 = vadd.f32 %v1307_v21, %v1211_v26  ;;  %v2574_v21 = vld [vmem:[#allocation6 + $0x810] sm:$0xff] }
 0x1dc   : > { %2601 = vmatpush.msra.mxu0 %v2574_v21 }
 0x1dd   : > { %v1503_v37 = vadd.f32 %v1453_v44, %v1357_v39  ;;  %1749 = vmatmul.f32.gmra.mxu2 %v4287_v8  ;;  %v2720_v39 = vld [vmem:[#allocation6 + $0x890] sm:$0xff] }
 0x1de   : > { %1895 = vmatmul.f32.gmra.mxu3 %v4217_v7  ;;  %v1456_v14 = vpop.f32.mrf.mxu0  ;;  %v1604_v35 = vpop.f32.mrf.mxu1  ;;  %2747 = vmatpush.msra.mxu1 %v2720_v39 }
 0x1df   : > { %v4372_v18 = vadd.f32 %v1601_v9, %v1503_v37  ;;  %v4407_v37 = vld [vmem:[%s3868_s26 + $0x88] sm:$0xff]  ;;  %2602 = vmatpush.msra.mxu0 %v2573_v10 }
 0x1e0   : > { %v1164_v59 = vpop.f32.mrf.mxu2  ;;  %2748 = vmatpush.msra.mxu1 %v2719_v45 }
 0x1e1   : > { %v1310_v1 = vpop.f32.mrf.mxu3  ;;  %v1212_v8 = vadd.f32 %v1164_v59, %v4219_v46  ;;  %2041 = vmatmul.f32.gmra.mxu0 %v4367_v19  ;;  %2187 = vmatmul.f32.gmra.mxu1 %v4370_v40  ;;  %v4386_v46 = vld [vmem:[%s3868_s26 + $0xcc] sm:$0xff]  ;;  %v4412_v59 = vld [vmem:[%s3868_s26 + $0xe0] sm:$0xff] }
 0x1e3   : > { %v1358_v3 = vadd.f32 %v1310_v1, %v1212_v8  ;;  %v2426_v8 = vld [vmem:[#allocation6 + $0x780] sm:$0xff] }
 0x1e4   : > { %2457 = vmatpush.msra.mxu3 %v2426_v8  ;;  %v4457_v8 = vld [vmem:[%s3868_s26 + $0x10c] sm:$0xff] }
 0x1e5   : > { %v1504_v16 = vadd.f32 %v1456_v14, %v1358_v3  ;;  %1752 = vmatmul.f32.gmra.mxu2 %v4297_v57 }
 0x1e6   : > { %1898 = vmatmul.f32.gmra.mxu3 %v4378_v34  ;;  %v1459_v29 = vpop.f32.mrf.mxu0  ;;  %v1607_v30 = vpop.f32.mrf.mxu1 }
 0x1e7   : > { %v4388_v12 = vadd.f32 %v1604_v35, %v1504_v16  ;;  %v2277_v35 = vld [vmem:[#allocation6 + $0x700] sm:$0xff] }
 0x1e8   : > { %v1167_v24 = vpop.f32.mrf.mxu2  ;;  %2308 = vmatpush.msra.mxu2 %v2277_v35 }
 0x1e9   : > { %v1313_v61 = vpop.f32.mrf.mxu3  ;;  %v1213_v57 = vadd.f32 %v1167_v24, %v4229_v58  ;;  %2044 = vmatmul.f32.gmra.mxu0 %v4383_v2  ;;  %2190 = vmatmul.f32.gmra.mxu1 %v4386_v46  ;;  %v4425_v24 = vld [vmem:[%s3868_s26 + $0xf0] sm:$0xff] }
 0x1eb   : > { %v1359_v63 = vadd.f32 %v1313_v61, %v1213_v57  ;;  %v4428_v61 = vld [vmem:[%s3868_s26 + $0xf4] sm:$0xff]  ;;  %v2572_v57 = vld [vmem:[#allocation6 + $0x800] sm:$0xff] }
 0x1ec   : > { %2603 = vmatpush.msra.mxu0 %v2572_v57 }
 0x1ed   : > { %v1505_v60 = vadd.f32 %v1459_v29, %v1359_v63  ;;  %1755 = vmatmul.f32.gmra.mxu2 %v4307_v49 }
 0x1ee   : > { %1901 = vmatmul.f32.gmra.mxu3 %v4237_v33  ;;  %v1462_v44 = vpop.f32.mrf.mxu0  ;;  %v1610_v9 = vpop.f32.mrf.mxu1 }
 0x1ef   : > { %v4401_v58 = vadd.f32 %v1607_v30, %v1505_v60 }
 0x1f0   : > { %v1170_v26 = vpop.f32.mrf.mxu2 }
 0x1f1   : > { %v1316_v23 = vpop.f32.mrf.mxu3  ;;  %v1214_v49 = vadd.f32 %v1170_v26, %v4239_v54  ;;  %2047 = vmatmul.f32.gmra.mxu0 %v4396_v0  ;;  %2193 = vmatmul.f32.gmra.mxu1 %v4399_v31  ;;  %v4415_v54 = vld [vmem:[%s3868_s26 + $0xe4] sm:$0xff]  ;;  %v4441_v26 = vld [vmem:[%s3868_s26 + $0xf8] sm:$0xff] }
 0x1f3   : > { %v1360_v42 = vadd.f32 %v1316_v23, %v1214_v49 }
 0x1f5   : > { %v1506_v14 = vadd.f32 %v1462_v44, %v1360_v42  ;;  %1758 = vmatmul.f32.gmra.mxu2 %v4317_v11 }
 0x1f6   : > { %1904 = vmatmul.f32.gmra.mxu3 %v4407_v37  ;;  %v1465_v5 = vpop.f32.mrf.mxu0  ;;  %v1613_v52 = vpop.f32.mrf.mxu1 }
 0x1f7   : > { %v4417_v1 = vadd.f32 %v1610_v9, %v1506_v14 }
 0x1f8   : > { %v1173_v3 = vpop.f32.mrf.mxu2 }
 0x1f9   : > { %v1319_v16 = vpop.f32.mrf.mxu3  ;;  %v1215_v11 = vadd.f32 %v1173_v3, %v4250_v53  ;;  %2050 = vmatmul.f32.gmra.mxu0 %v4412_v59  ;;  %2196 = vmatmul.f32.gmra.mxu1 %v4415_v54 }
 0x1fb   : > { %v1361_v29 = vadd.f32 %v1319_v16, %v1215_v11 }
 0x1fd   : > { %v1507_v30 = vadd.f32 %v1465_v5, %v1361_v29  ;;  %1761 = vmatmul.f32.gmra.mxu2 %v4327_v22  ;;  %v2718_v22 = vld [vmem:[#allocation6 + $0x880] sm:$0xff] }
 0x1fe   : > { %1907 = vmatmul.f32.gmra.mxu3 %v4258_v48  ;;  %v1468_v13 = vpop.f32.mrf.mxu0  ;;  %v1616_v55 = vpop.f32.mrf.mxu1  ;;  %2749 = vmatpush.msra.mxu1 %v2718_v22 }
 0x1ff   : > { %v4430_v53 = vadd.f32 %v1613_v52, %v1507_v30  ;;  %v4454_v52 = vld [vmem:[%s3868_s26 + $0x108] sm:$0xff] }
 0x200   : > { %v1176_v62 = vpop.f32.mrf.mxu2 }
 0x201   : > { %v1322_v63 = vpop.f32.mrf.mxu3  ;;  %v1216_v60 = vadd.f32 %v1176_v62, %v4260_v4  ;;  %2053 = vmatmul.f32.gmra.mxu0 %v4425_v24  ;;  %2199 = vmatmul.f32.gmra.mxu1 %v4428_v61  ;;  %v4444_v4 = vld [vmem:[%s3868_s26 + $0xfc] sm:$0xff] }
 0x203   : > { %v1362_v44 = vadd.f32 %v1322_v63, %v1216_v60 }
 0x205   : > { %v1508_v9 = vadd.f32 %v1468_v13, %v1362_v44  ;;  %1764 = vmatmul.f32.gmra.mxu2 %v4337_v36  ;;  %v4470_v13 = vld [vmem:[%s3868_s26 + $0x110] sm:$0xff] }
 0x206   : > { %1910 = vmatmul.f32.gmra.mxu3 %v4436_v17  ;;  %v1471_v51 = vpop.f32.mrf.mxu0  ;;  %v1619_v21 = vpop.f32.mrf.mxu1 }
 0x207   : > { %v4446_v23 = vadd.f32 %v1616_v55, %v1508_v9  ;;  %v4473_v55 = vld [vmem:[%s3868_s26 + $0x114] sm:$0xff] }
 0x208   : > { %v1179_v49 = vpop.f32.mrf.mxu2 }
 0x209   : > { %v1325_v39 = vpop.f32.mrf.mxu3  ;;  %v1217_v42 = vadd.f32 %v1179_v49, %v4270_v25  ;;  %2056 = vmatmul.f32.gmra.mxu0 %v4441_v26  ;;  %2202 = vmatmul.f32.gmra.mxu1 %v4444_v4 }
 0x20b   : > { %v1363_v36 = vadd.f32 %v1325_v39, %v1217_v42  ;;  %v4490_v42 = vld [vmem:[%s3868_s26 + $0xd0] sm:$0xff] }
 0x20d   : > { %v1509_v14 = vadd.f32 %v1471_v51, %v1363_v36  ;;  %1767 = vmatmul.f32.gmra.mxu2 %v4347_v20  ;;  %v4465_v20 = vld [vmem:[%s3868_s26 + $0xb8] sm:$0xff] }
 0x20e   : > { %1913 = vmatmul.f32.gmra.mxu3 %v4278_v41  ;;  %v1474_v35 = vpop.f32.mrf.mxu0  ;;  %v1622_v5 = vpop.f32.mrf.mxu1 }
 0x20f   : > { %v4459_v25 = vadd.f32 %v1619_v21, %v1509_v14 }
 0x210   : > { %v1182_v10 = vpop.f32.mrf.mxu2 }
 0x211   : > { %v1328_v3 = vpop.f32.mrf.mxu3  ;;  %v1218_v16 = vadd.f32 %v1182_v10, %v4280_v47  ;;  %2059 = vmatmul.f32.gmra.mxu0 %v4454_v52  ;;  %2205 = vmatmul.f32.gmra.mxu1 %v4457_v8 }
 0x213   : > { %v1364_v11 = vadd.f32 %v1328_v3, %v1218_v16 }
 0x215   : > { %v1510_v45 = vadd.f32 %v1474_v35, %v1364_v11  ;;  %1770 = vmatmul.f32.gmra.mxu2 %v4357_v27 }
 0x216   : > { %1916 = vmatmul.f32.gmra.mxu3 %v4465_v20  ;;  %v1477_v29 = vpop.f32.mrf.mxu0  ;;  %v1625_v30 = vpop.f32.mrf.mxu1 }
 0x217   : > { %v4475_v57 = vadd.f32 %v1622_v5, %v1510_v45 }
 0x218   : > { %v1185_v47 = vpop.f32.mrf.mxu2 }
 0x219   : > { %v1331_v62 = vpop.f32.mrf.mxu3  ;;  %v1219_v63 = vadd.f32 %v1185_v47, %v4289_v6  ;;  %2062 = vmatmul.f32.gmra.mxu0 %v4470_v13  ;;  %2208 = vmatmul.f32.gmra.mxu1 %v4473_v55 }
 0x21b   : > { %v1365_v60 = vadd.f32 %v1331_v62, %v1219_v63 }
 0x21d   : > { %v1511_v27 = vadd.f32 %v1477_v29, %v1365_v60  ;;  %2309 = vmatmul.f32.vlgmr.msra.gmra.mxu2 %v4217_v7  ;;  %v4507_v29 = vld [vmem:[%s3868_s26 + $0xe8] sm:$0xff] }
 0x21e   : > { %2458 = vmatmul.f32.vlgmr.msra.gmra.mxu3 %v4367_v19  ;;  %v2018_v22 = vpop.f32.mrf.mxu0  ;;  %v2164_v44 = vpop.f32.mrf.mxu1 }
 0x21f   : > { %v4482_v9 = vadd.f32 %v1625_v30, %v1511_v27 }
 0x220   : > { %v1726_v51 = vpop.f32.mrf.mxu2 }
 0x221   : > { %v1872_v21 = vpop.f32.mrf.mxu3  ;;  %v1790_v49 = vadd.f32 %v1726_v51, %v4299_v38  ;;  %2604 = vmatmul.f32.vlgmr.msra.gmra.mxu0 %v4370_v40  ;;  %2750 = vmatmul.f32.vlgmr.msra.gmra.mxu1 %v4383_v2 }
 0x223   : > { %v1936_v6 = vadd.f32 %v1872_v21, %v1790_v49  ;;  %v4524_v21 = vld [vmem:[%s3868_s26 + $0x100] sm:$0xff] }
 0x225   : > { %v2082_v39 = vadd.f32 %v2018_v22, %v1936_v6  ;;  %2312 = vmatmul.f32.gmra.mxu2 %v4378_v34 }
 0x226   : > { %2461 = vmatmul.f32.gmra.mxu3 %v4383_v2  ;;  %v2021_v7 = vpop.f32.mrf.mxu0  ;;  %v2167_v19 = vpop.f32.mrf.mxu1 }
 0x227   : > { %v4492_v36 = vadd.f32 %v2164_v44, %v2082_v39 }
 0x228   : > { %v1729_v14 = vpop.f32.mrf.mxu2 }
 0x229   : > { %v1875_v35 = vpop.f32.mrf.mxu3  ;;  %v1791_v38 = vadd.f32 %v1729_v14, %v4309_v32  ;;  %2607 = vmatmul.f32.gmra.mxu0 %v4386_v46  ;;  %2753 = vmatmul.f32.gmra.mxu1 %v4490_v42 }
 0x22b   : > { %v1937_v40 = vadd.f32 %v1875_v35, %v1791_v38 }
 0x22d   : > { %v2083_v5 = vadd.f32 %v2021_v7, %v1937_v40  ;;  %2315 = vmatmul.f32.gmra.mxu2 %v4237_v33 }
 0x22e   : > { %2464 = vmatmul.f32.gmra.mxu3 %v4396_v0  ;;  %v2024_v34 = vpop.f32.mrf.mxu0  ;;  %v2170_v10 = vpop.f32.mrf.mxu1 }
 0x22f   : > { %v4499_v3 = vadd.f32 %v2167_v19, %v2083_v5  ;;  %v4541_v5 = vld [vmem:[%s3868_s26 + $0x118] sm:$0xff] }
 0x230   : > { %v1732_v16 = vpop.f32.mrf.mxu2 }
 0x231   : > { %v1878_v11 = vpop.f32.mrf.mxu3  ;;  %v1792_v45 = vadd.f32 %v1732_v16, %v4319_v28  ;;  %2610 = vmatmul.f32.gmra.mxu0 %v4399_v31  ;;  %2756 = vmatmul.f32.gmra.mxu1 %v4412_v59  ;;  %v3262_v16 = vld [vmem:[%s3868_s26 + $0x120] sm:$0xff] }
 0x233   : > { %v1938_v32 = vadd.f32 %v1878_v11, %v1792_v45 }
 0x235   : > { %v2084_v46 = vadd.f32 %v2024_v34, %v1938_v32  ;;  %2318 = vmatmul.f32.gmra.mxu2 %v4407_v37 }
 0x236   : > { %2467 = vmatmul.f32.gmra.mxu3 %v4412_v59  ;;  %v2027_v33 = vpop.f32.mrf.mxu0  ;;  %v2173_v0 = vpop.f32.mrf.mxu1 }
 0x237   : > { %v4509_v30 = vadd.f32 %v2170_v10, %v2084_v46  ;;  %v3278_v46 = vld [vmem:[%s3868_s26 + $0x124] sm:$0xff] }
 0x238   : > { %v1735_v47 = vpop.f32.mrf.mxu2 }
 0x239   : > { %v1881_v62 = vpop.f32.mrf.mxu3  ;;  %v1793_v28 = vadd.f32 %v1735_v47, %v4329_v56  ;;  %2613 = vmatmul.f32.gmra.mxu0 %v4415_v54  ;;  %2759 = vmatmul.f32.gmra.mxu1 %v4507_v29 }
 0x23b   : > { %v1939_v31 = vadd.f32 %v1881_v62, %v1793_v28 }
 0x23d   : > { %v2085_v63 = vadd.f32 %v2027_v33, %v1939_v31  ;;  %2321 = vmatmul.f32.gmra.mxu2 %v4258_v48 }
 0x23e   : > { %2470 = vmatmul.f32.gmra.mxu3 %v4425_v24  ;;  %v2030_v37 = vpop.f32.mrf.mxu0  ;;  %v2176_v60 = vpop.f32.mrf.mxu1 }
 0x23f   : > { %v4516_v27 = vadd.f32 %v2173_v0, %v2085_v63  ;;  %v3279_v63 = vld [vmem:[%s3868_s26 + $0x12c] sm:$0xff] }
 0x240   : > { %v1738_v22 = vpop.f32.mrf.mxu2 }
 0x241   : > { %v1884_v44 = vpop.f32.mrf.mxu3  ;;  %v1794_v51 = vadd.f32 %v1738_v22, %v4339_v43  ;;  %2616 = vmatmul.f32.gmra.mxu0 %v4428_v61  ;;  %2762 = vmatmul.f32.gmra.mxu1 %v4441_v26 }
 0x243   : > { %v1940_v56 = vadd.f32 %v1884_v44, %v1794_v51  ;;  %v3264_v51 = vld [vmem:[%s3868_s26 + $0x138] sm:$0xff] }
 0x245   : > { %v2086_v54 = vadd.f32 %v2030_v37, %v1940_v56  ;;  %2324 = vmatmul.f32.gmra.mxu2 %v4436_v17  ;;  %v3295_v37 = vld [vmem:[%s3868_s26 + $0x130] sm:$0xff] }
 0x246   : > { %2473 = vmatmul.f32.gmra.mxu3 %v4441_v26  ;;  %v2033_v48 = vpop.f32.mrf.mxu0  ;;  %v2179_v24 = vpop.f32.mrf.mxu1 }
 0x247   : > { %v4526_v49 = vadd.f32 %v2176_v60, %v2086_v54 }
 0x248   : > { %v1741_v6 = vpop.f32.mrf.mxu2 }
 0x249   : > { %v1887_v39 = vpop.f32.mrf.mxu3  ;;  %v1795_v43 = vadd.f32 %v1741_v6, %v4349_v15  ;;  %2619 = vmatmul.f32.gmra.mxu0 %v4444_v4  ;;  %2765 = vmatmul.f32.gmra.mxu1 %v4524_v21 }
 0x24b   : > { %v1941_v61 = vadd.f32 %v1887_v39, %v1795_v43 }
 0x24d   : > { %v2087_v7 = vadd.f32 %v2033_v48, %v1941_v61  ;;  %2327 = vmatmul.f32.gmra.mxu2 %v4278_v41  ;;  %v3265_v61 = vld [vmem:[%s3868_s26 + $0x140] sm:$0xff] }
 0x24e   : > { %2476 = vmatmul.f32.gmra.mxu3 %v4454_v52  ;;  %v2036_v17 = vpop.f32.mrf.mxu0  ;;  %v2182_v19 = vpop.f32.mrf.mxu1 }
 0x24f   : > { %v4533_v14 = vadd.f32 %v2179_v24, %v2087_v7  ;;  %v3280_v24 = vld [vmem:[%s3868_s26 + $0x13c] sm:$0xff] }
 0x250   : > { %v1744_v35 = vpop.f32.mrf.mxu2 }
 0x251   : > { %v1890_v38 = vpop.f32.mrf.mxu3  ;;  %v1796_v40 = vadd.f32 %v1744_v35, %v4359_v50  ;;  %2622 = vmatmul.f32.gmra.mxu0 %v4457_v8  ;;  %2768 = vmatmul.f32.gmra.mxu1 %v4470_v13  ;;  %v3281_v35 = vld [vmem:[%s3868_s26 + $0x144] sm:$0xff] }
 0x253   : > { %v1942_v15 = vadd.f32 %v1890_v38, %v1796_v40  ;;  %v3297_v38 = vld [vmem:[%s3868_s26 + $0x148] sm:$0xff] }
 0x255   : > { %v2088_v4 = vadd.f32 %v2036_v17, %v1942_v15  ;;  %2330 = vmatmul.f32.gmra.mxu2 %v4465_v20 }
 0x256   : > { %2479 = vmatmul.f32.gmra.mxu3 %v4470_v13  ;;  %v2039_v41 = vpop.f32.mrf.mxu0  ;;  %v2185_v52 = vpop.f32.mrf.mxu1 }
 0x257   : > { %v4543_v34 = vadd.f32 %v2182_v19, %v2088_v4 }
 0x258   : > { %v1747_v10 = vpop.f32.mrf.mxu2 }
 0x259   : > { %v1893_v50 = vpop.f32.mrf.mxu3  ;;  %v1797_v8 = vadd.f32 %v1747_v10, %v4372_v18  ;;  %2625 = vmatmul.f32.gmra.mxu0 %v4473_v55  ;;  %2771 = vmatmul.f32.gmra.mxu1 %v4541_v5  ;;  %v3263_v18 = vld [vmem:[%s3868_s26 + $0x128] sm:$0xff] }
 0x25b   : > { %v1943_v20 = vadd.f32 %v1893_v50, %v1797_v8  ;;  %v3282_v8 = vld [vmem:[%s3868_s26 + $0x154] sm:$0xff] }
 0x25d   : > { %v2089_v11 = vadd.f32 %v2039_v41, %v1943_v20  ;;  %2333 = vmatmul.f32.gmra.mxu2 %v4383_v2  ;;  %v3266_v41 = vld [vmem:[%s3868_s26 + $0x150] sm:$0xff] }
 0x25e   : > { %2482 = vmatmul.f32.gmra.mxu3 %v3262_v16  ;;  %v2042_v45 = vpop.f32.mrf.mxu0  ;;  %v2188_v32 = vpop.f32.mrf.mxu1 }
 0x25f   : > { %v4551_v33 = vadd.f32 %v2185_v52, %v2089_v11 }
 0x260   : > { %v1750_v0 = vpop.f32.mrf.mxu2 }
 0x261   : > { %v1896_v47 = vpop.f32.mrf.mxu3  ;;  %v1798_v55 = vadd.f32 %v1750_v0, %v4388_v12  ;;  %2628 = vmatmul.f32.gmra.mxu0 %v3278_v46  ;;  %2774 = vmatmul.f32.gmra.mxu1 %v3263_v18 }
 0x263   : > { %v1944_v62 = vadd.f32 %v1896_v47, %v1798_v55  ;;  %v3283_v47 = vld [vmem:[%s3868_s26 + $0x15c] sm:$0xff] }
 0x265   : > { %v2090_v28 = vadd.f32 %v2042_v45, %v1944_v62  ;;  %2336 = vmatmul.f32.gmra.mxu2 %v4490_v42  ;;  %v3267_v45 = vld [vmem:[%s3868_s26 + $0x158] sm:$0xff] }
 0x266   : > { %2485 = vmatmul.f32.gmra.mxu3 %v3263_v18  ;;  %v2045_v2 = vpop.f32.mrf.mxu0  ;;  %v2191_v31 = vpop.f32.mrf.mxu1  ;;  %v3299_v18 = vld [vmem:[%s3868_s26 + $0x160] sm:$0xff] }
 0x267   : > { %v4558_v60 = vadd.f32 %v2188_v32, %v2090_v28 }
 0x268   : > { %v1753_v22 = vpop.f32.mrf.mxu2 }
 0x269   : > { %v1899_v44 = vpop.f32.mrf.mxu3  ;;  %v1799_v12 = vadd.f32 %v1753_v22, %v4401_v58  ;;  %2631 = vmatmul.f32.gmra.mxu0 %v3279_v63  ;;  %2777 = vmatmul.f32.gmra.mxu1 %v3295_v37  ;;  %v3284_v22 = vld [vmem:[%s3868_s26 + $0x16c] sm:$0xff] }
 0x26b   : > { %v1945_v56 = vadd.f32 %v1899_v44, %v1799_v12 }
 0x26d   : > { %v2091_v54 = vadd.f32 %v2045_v2, %v1945_v56  ;;  %2339 = vmatmul.f32.gmra.mxu2 %v4412_v59  ;;  %v3268_v2 = vld [vmem:[%s3868_s26 + $0x168] sm:$0xff]  ;;  %v3269_v56 = vld [vmem:[%s3868_s26 + $0x170] sm:$0xff] }
 0x26e   : > { %2488 = vmatmul.f32.gmra.mxu3 %v3264_v51  ;;  %v2048_v42 = vpop.f32.mrf.mxu0  ;;  %v2194_v48 = vpop.f32.mrf.mxu1 }
 0x26f   : > { %v4564_v6 = vadd.f32 %v2191_v31, %v2091_v54 }
 0x270   : > { %v1756_v39 = vpop.f32.mrf.mxu2 }
 0x271   : > { %v1902_v43 = vpop.f32.mrf.mxu3  ;;  %v1800_v58 = vadd.f32 %v1756_v39, %v4417_v1  ;;  %2634 = vmatmul.f32.gmra.mxu0 %v3280_v24  ;;  %2780 = vmatmul.f32.gmra.mxu1 %v3265_v61  ;;  %v3285_v24 = vld [vmem:[%s3868_s26 + $0x174] sm:$0xff] }
 0x272   : > { %v3301_v39 = vld [vmem:[%s3868_s26 + $0x178] sm:$0xff] }
 0x273   : > { %v1946_v7 = vadd.f32 %v1902_v43, %v1800_v58 }
 0x275   : > { %v2092_v17 = vadd.f32 %v2048_v42, %v1946_v7  ;;  %2342 = vmatmul.f32.gmra.mxu2 %v4507_v29 }
 0x276   : > { %2491 = vmatmul.f32.gmra.mxu3 %v3265_v61  ;;  %v2051_v59 = vpop.f32.mrf.mxu0  ;;  %v2197_v19 = vpop.f32.mrf.mxu1 }
 0x277   : > { %v4571_v40 = vadd.f32 %v2194_v48, %v2092_v17 }
 0x278   : > { %v1759_v15 = vpop.f32.mrf.mxu2 }
 0x279   : > { %v1905_v4 = vpop.f32.mrf.mxu3  ;;  %v1801_v1 = vadd.f32 %v1759_v15, %v4430_v53  ;;  %2637 = vmatmul.f32.gmra.mxu0 %v3281_v35  ;;  %2783 = vmatmul.f32.gmra.mxu1 %v3297_v38 }
 0x27b   : > { %v1947_v52 = vadd.f32 %v1905_v4, %v1801_v1 }
 0x27d   : > { %v2093_v10 = vadd.f32 %v2051_v59, %v1947_v52  ;;  %2345 = vmatmul.f32.gmra.mxu2 %v4441_v26 }
 0x27e   : > { %2494 = vmatmul.f32.gmra.mxu3 %v3266_v41  ;;  %v2054_v29 = vpop.f32.mrf.mxu0  ;;  %v2200_v50 = vpop.f32.mrf.mxu1  ;;  %v4606_v41 = vld [vmem:[#allocation8] ss:$0 sm:$0xff] }
 0x27f   : > { %v4577_v16 = vadd.f32 %v2197_v19, %v2093_v10 }
 0x280   : > { %v1762_v20 = vpop.f32.mrf.mxu2 }
 0x281   : > { %v1908_v11 = vpop.f32.mrf.mxu3  ;;  %v1802_v53 = vadd.f32 %v1762_v20, %v4446_v23  ;;  %2640 = vmatmul.f32.gmra.mxu0 %v3282_v8  ;;  %2786 = vmatmul.f32.gmra.mxu1 %v3267_v45 }
 0x283   : > { %v1948_v32 = vadd.f32 %v1908_v11, %v1802_v53 }
 0x285   : > { %v2094_v46 = vadd.f32 %v2054_v29, %v1948_v32  ;;  %2348 = vmatmul.f32.gmra.mxu2 %v4524_v21 }
 0x286   : > { %2497 = vmatmul.f32.gmra.mxu3 %v3267_v45  ;;  %v2057_v26 = vpop.f32.mrf.mxu0  ;;  %v2203_v0 = vpop.f32.mrf.mxu1 }
 0x287   : > { %v4584_v55 = vadd.f32 %v2200_v50, %v2094_v46 }
 0x288   : > { %v1765_v62 = vpop.f32.mrf.mxu2 }
 0x289   : > { %v1911_v28 = vpop.f32.mrf.mxu3  ;;  %v1803_v23 = vadd.f32 %v1765_v62, %v4459_v25  ;;  %2643 = vmatmul.f32.gmra.mxu0 %v3283_v47  ;;  %2789 = vmatmul.f32.gmra.mxu1 %v3299_v18 }
 0x28b   : > { %v1949_v31 = vadd.f32 %v1911_v28, %v1803_v23 }
 0x28d   : > { %v2095_v63 = vadd.f32 %v2057_v26, %v1949_v31  ;;  %2351 = vmatmul.f32.gmra.mxu2 %v4470_v13 }
 0x28e   : > { %2500 = vmatmul.f32.gmra.mxu3 %v3268_v2  ;;  %v2060_v21 = vpop.f32.mrf.mxu0  ;;  %v2206_v37 = vpop.f32.mrf.mxu1 }
 0x28f   : > { %v4590_v44 = vadd.f32 %v2203_v0, %v2095_v63 }
 0x290   : > { %v1768_v12 = vpop.f32.mrf.mxu2 }
 0x291   : > { %v1914_v51 = vpop.f32.mrf.mxu3  ;;  %v1804_v25 = vadd.f32 %v1768_v12, %v4475_v57  ;;  %2646 = vmatmul.f32.gmra.mxu0 %v3284_v22  ;;  %2792 = vmatmul.f32.gmra.mxu1 %v3269_v56 }
 0x293   : > { %v1950_v54 = vadd.f32 %v1914_v51, %v1804_v25 }
 0x295   : > { %v2096_v42 = vadd.f32 %v2060_v21, %v1950_v54  ;;  %2354 = vmatmul.f32.gmra.mxu2 %v4541_v5 }
 0x296   : > { %2503 = vmatmul.f32.gmra.mxu3 %v3269_v56  ;;  %v2063_v13 = vpop.f32.mrf.mxu0  ;;  %v2209_v48 = vpop.f32.mrf.mxu1 }
 0x297   : > { %v4597_v43 = vadd.f32 %v2206_v37, %v2096_v42 }
 0x298   : > { %v1771_v61 = vpop.f32.mrf.mxu2 }
 0x299   : > { %v1917_v58 = vpop.f32.mrf.mxu3  ;;  %v1805_v7 = vadd.f32 %v1771_v61, %v4482_v9  ;;  %2649 = vmatmul.f32.gmra.mxu0 %v3285_v24  ;;  %2795 = vmatmul.f32.gmra.mxu1 %v3301_v39 }
 0x29b   : > { %v1951_v57 = vadd.f32 %v1917_v58, %v1805_v7 }
 0x29d   : > { %v2097_v17 = vadd.f32 %v2063_v13, %v1951_v57 }
 0x29e   : > { %v2605_v59 = vpop.f32.mrf.mxu0  ;;  %v2751_v19 = vpop.f32.mrf.mxu1 }
 0x29f   : > { %v4600_v5 = vadd.f32 %v2209_v48, %v2097_v17 }
 0x2a0   : > { %v2310_v35 = vpop.f32.mrf.mxu2 }
 0x2a1   : > { %v2459_v38 = vpop.f32.mrf.mxu3  ;;  %v2374_v15 = vadd.f32 %v2310_v35, %v4492_v36 }
 0x2a3   : > { %v2523_v4 = vadd.f32 %v2459_v38, %v2374_v15 }
 0x2a5   : > { %v2669_v1 = vadd.f32 %v2605_v59, %v2523_v4 }
 0x2a6   : > { %v2608_v9 = vpop.f32.mrf.mxu0  ;;  %v2754_v52 = vpop.f32.mrf.mxu1 }
 0x2a7   : > { %v2815_v10 = vadd.f32 %v2751_v19, %v2669_v1 }
 0x2a8   : > { %v2313_v29 = vpop.f32.mrf.mxu2 }
 0x2a9   : > { %v2462_v50 = vpop.f32.mrf.mxu3  ;;  %v2867_v8 = vadd.f32 %v4606_v41, %v2815_v10  ;;  %v2375_v20 = vadd.f32 %v2313_v29, %v4499_v3 }
 0x2ab   : > { %2883 = vst [vmem:[%s4610_s29] sm:$0xff] %v2867_v8  ;;  %v2524_v36 = vadd.f32 %v2462_v50, %v2375_v20 }
 0x2ad   : > { %v2670_v11 = vadd.f32 %v2608_v9, %v2524_v36 }
 0x2ae   : > { %v2611_v45 = vpop.f32.mrf.mxu0  ;;  %v2757_v53 = vpop.f32.mrf.mxu1 }
 0x2af   : > { %v2816_v32 = vadd.f32 %v2754_v52, %v2670_v11 }
 0x2b0   : > { %v2316_v46 = vpop.f32.mrf.mxu2 }
 0x2b1   : > { %v2465_v26 = vpop.f32.mrf.mxu3  ;;  %v2868_v0 = vadd.f32 %v4606_v41, %v2816_v32  ;;  %v2376_v47 = vadd.f32 %v2316_v46, %v4509_v30 }
 0x2b3   : > { %2884 = vst [vmem:[%s4610_s29 + $0x8] sm:$0xff] %v2868_v0  ;;  %v2525_v18 = vadd.f32 %v2465_v26, %v2376_v47 }
 0x2b5   : > { %v2671_v3 = vadd.f32 %v2611_v45, %v2525_v18 }
 0x2b6   : > { %v2614_v62 = vpop.f32.mrf.mxu0  ;;  %v2760_v28 = vpop.f32.mrf.mxu1 }
 0x2b7   : > { %v2817_v23 = vadd.f32 %v2757_v53, %v2671_v3 }
 0x2b8   : > { %v2319_v2 = vpop.f32.mrf.mxu2 }
 0x2b9   : > { %v2468_v31 = vpop.f32.mrf.mxu3  ;;  %v2869_v63 = vadd.f32 %v4606_v41, %v2817_v23  ;;  %v2377_v21 = vadd.f32 %v2319_v2, %v4516_v27 }
 0x2bb   : > { %2885 = vst [vmem:[%s4610_s29 + $0x10] sm:$0xff] %v2869_v63  ;;  %v2526_v37 = vadd.f32 %v2468_v31, %v2377_v21 }
 0x2bd   : > { %v2672_v22 = vadd.f32 %v2614_v62, %v2526_v37 }
 0x2be   : > { %v2617_v12 = vpop.f32.mrf.mxu0  ;;  %v2763_v51 = vpop.f32.mrf.mxu1 }
 0x2bf   : > { %v2818_v30 = vadd.f32 %v2760_v28, %v2672_v22 }
 0x2c0   : > { %v2322_v56 = vpop.f32.mrf.mxu2 }
 0x2c1   : > { %v2471_v25 = vpop.f32.mrf.mxu3  ;;  %v2870_v54 = vadd.f32 %v4606_v41, %v2818_v30  ;;  %v2378_v42 = vadd.f32 %v2322_v56, %v4526_v49 }
 0x2c3   : > { %2886 = vst [vmem:[%s4610_s29 + $0x18] sm:$0xff] %v2870_v54  ;;  %v2527_v13 = vadd.f32 %v2471_v25, %v2378_v42 }
 0x2c5   : > { %v2673_v48 = vadd.f32 %v2617_v12, %v2527_v13 }
 0x2c6   : > { %v2620_v24 = vpop.f32.mrf.mxu0  ;;  %v2766_v39 = vpop.f32.mrf.mxu1 }
 0x2c7   : > { %v2819_v27 = vadd.f32 %v2763_v51, %v2673_v48 }
 0x2c8   : > { %v2325_v61 = vpop.f32.mrf.mxu2 }
 0x2c9   : > { %v2474_v58 = vpop.f32.mrf.mxu3  ;;  %v2871_v7 = vadd.f32 %v4606_v41, %v2819_v27  ;;  %v2379_v57 = vadd.f32 %v2325_v61, %v4533_v14 }
 0x2cb   : > { %2887 = vst [vmem:[%s4610_s29 + $0x20] sm:$0xff] %v2871_v7  ;;  %v2528_v17 = vadd.f32 %v2474_v58, %v2379_v57 }
 0x2cd   : > { %v2674_v59 = vadd.f32 %v2620_v24, %v2528_v17 }
 0x2ce   : > { %v2623_v19 = vpop.f32.mrf.mxu0  ;;  %v2769_v35 = vpop.f32.mrf.mxu1 }
 0x2cf   : > { %v2820_v49 = vadd.f32 %v2766_v39, %v2674_v59 }
 0x2d0   : > { %v2328_v38 = vpop.f32.mrf.mxu2 }
 0x2d1   : > { %v2477_v15 = vpop.f32.mrf.mxu3  ;;  %v2872_v4 = vadd.f32 %v4606_v41, %v2820_v49  ;;  %v2380_v1 = vadd.f32 %v2328_v38, %v4543_v34 }
 0x2d3   : > { %2888 = vst [vmem:[%s4610_s29 + $0x28] sm:$0xff] %v2872_v4  ;;  %v2529_v9 = vadd.f32 %v2477_v15, %v2380_v1 }
 0x2d5   : > { %v2675_v52 = vadd.f32 %v2623_v19, %v2529_v9 }
 0x2d6   : > { %v2626_v10 = vpop.f32.mrf.mxu0  ;;  %v2772_v29 = vpop.f32.mrf.mxu1 }
 0x2d7   : > { %v2821_v14 = vadd.f32 %v2769_v35, %v2675_v52 }
 0x2d8   : > { %v2331_v50 = vpop.f32.mrf.mxu2 }
 0x2d9   : > { %v2480_v8 = vpop.f32.mrf.mxu3  ;;  %v2873_v20 = vadd.f32 %v4606_v41, %v2821_v14  ;;  %v2381_v36 = vadd.f32 %v2331_v50, %v4551_v33 }
 0x2db   : > { %2889 = vst [vmem:[%s4610_s29 + $0x30] sm:$0xff] %v2873_v20  ;;  %v2530_v11 = vadd.f32 %v2480_v8, %v2381_v36 }
 0x2dd   : > { %v2676_v45 = vadd.f32 %v2626_v10, %v2530_v11 }
 0x2de   : > { %v2629_v53 = vpop.f32.mrf.mxu0  ;;  %v2775_v32 = vpop.f32.mrf.mxu1 }
 0x2df   : > { %v2822_v34 = vadd.f32 %v2772_v29, %v2676_v45 }
 0x2e0   : > { %v2334_v46 = vpop.f32.mrf.mxu2 }
 0x2e1   : > { %v2483_v26 = vpop.f32.mrf.mxu3  ;;  %v2874_v0 = vadd.f32 %v4606_v41, %v2822_v34  ;;  %v2382_v47 = vadd.f32 %v2334_v46, %v4558_v60 }
 0x2e3   : > { %2890 = vst [vmem:[%s4610_s29 + $0x38] sm:$0xff] %v2874_v0  ;;  %v2531_v18 = vadd.f32 %v2483_v26, %v2382_v47 }
 0x2e5   : > { %v2677_v3 = vadd.f32 %v2629_v53, %v2531_v18 }
 0x2e6   : > { %v2632_v62 = vpop.f32.mrf.mxu0  ;;  %v2778_v28 = vpop.f32.mrf.mxu1 }
 0x2e7   : > { %v2823_v33 = vadd.f32 %v2775_v32, %v2677_v3 }
 0x2e8   : > { %v2337_v23 = vpop.f32.mrf.mxu2 }
 0x2e9   : > { %v2486_v2 = vpop.f32.mrf.mxu3  ;;  %v2875_v31 = vadd.f32 %v4606_v41, %v2823_v33  ;;  %v2383_v63 = vadd.f32 %v2337_v23, %v4564_v6 }
 0x2eb   : > { %2891 = vst [vmem:[%s4610_s29 + $0x40] sm:$0xff] %v2875_v31  ;;  %v2532_v21 = vadd.f32 %v2486_v2, %v2383_v63 }
 0x2ed   : > { %v2678_v37 = vadd.f32 %v2632_v62, %v2532_v21 }
 0x2ee   : > { %v2635_v22 = vpop.f32.mrf.mxu0  ;;  %v2781_v12 = vpop.f32.mrf.mxu1 }
 0x2ef   : > { %v2824_v60 = vadd.f32 %v2778_v28, %v2678_v37 }
 0x2f0   : > { %v2340_v51 = vpop.f32.mrf.mxu2 }
 0x2f1   : > { %v2489_v30 = vpop.f32.mrf.mxu3  ;;  %v2876_v56 = vadd.f32 %v4606_v41, %v2824_v60  ;;  %v2384_v25 = vadd.f32 %v2340_v51, %v4571_v40 }
 0x2f3   : > { %2892 = vst [vmem:[%s4610_s29 + $0x48] sm:$0xff] %v2876_v56  ;;  %v2533_v54 = vadd.f32 %v2489_v30, %v2384_v25 }
 0x2f5   : > { %v2679_v42 = vadd.f32 %v2635_v22, %v2533_v54 }
 0x2f6   : > { %v2638_v13 = vpop.f32.mrf.mxu0  ;;  %v2784_v48 = vpop.f32.mrf.mxu1 }
 0x2f7   : > { %v2825_v6 = vadd.f32 %v2781_v12, %v2679_v42 }
 0x2f8   : > { %v2343_v24 = vpop.f32.mrf.mxu2 }
 0x2f9   : > { %v2492_v39 = vpop.f32.mrf.mxu3  ;;  %v2877_v27 = vadd.f32 %v4606_v41, %v2825_v6  ;;  %v2385_v61 = vadd.f32 %v2343_v24, %v4577_v16 }
 0x2fb   : > { %2893 = vst [vmem:[%s4610_s29 + $0x50] sm:$0xff] %v2877_v27  ;;  %v2534_v58 = vadd.f32 %v2492_v39, %v2385_v61 }
 0x2fd   : > { %v2680_v7 = vadd.f32 %v2638_v13, %v2534_v58 }
 0x2fe   : > { %v2641_v57 = vpop.f32.mrf.mxu0  ;;  %v2787_v17 = vpop.f32.mrf.mxu1 }
 0x2ff   : > { %v2826_v40 = vadd.f32 %v2784_v48, %v2680_v7 }
 0x300   : > { %v2346_v59 = vpop.f32.mrf.mxu2 }
 0x301   : > { %v2495_v19 = vpop.f32.mrf.mxu3  ;;  %v2878_v35 = vadd.f32 %v4606_v41, %v2826_v40  ;;  %v2386_v49 = vadd.f32 %v2346_v59, %v4584_v55 }
 0x303   : > { %2894 = vst [vmem:[%s4610_s29 + $0x58] sm:$0xff] %v2878_v35  ;;  %v2535_v38 = vadd.f32 %v2495_v19, %v2386_v49 }
 0x305   : > { %v2681_v15 = vadd.f32 %v2641_v57, %v2535_v38 }
 0x306   : > { %v2644_v4 = vpop.f32.mrf.mxu0  ;;  %v2790_v16 = vpop.f32.mrf.mxu1 }
 0x307   : > { %v2827_v1 = vadd.f32 %v2787_v17, %v2681_v15 }
 0x308   : > { %v2349_v9 = vpop.f32.mrf.mxu2 }
 0x309   : > { %v2498_v52 = vpop.f32.mrf.mxu3  ;;  %v2879_v10 = vadd.f32 %v4606_v41, %v2827_v1  ;;  %v2387_v29 = vadd.f32 %v2349_v9, %v4590_v44 }
 0x30b   : > { %2895 = vst [vmem:[%s4610_s29 + $0x60] sm:$0xff] %v2879_v10  ;;  %v2536_v14 = vadd.f32 %v2498_v52, %v2387_v29 }
 0x30d   : > { %v2682_v50 = vadd.f32 %v2644_v4, %v2536_v14 }
 0x30e   : > { %v2647_v55 = vpop.f32.mrf.mxu0  ;;  %v2793_v53 = vpop.f32.mrf.mxu1 }
 0x30f   : > { %v2828_v8 = vadd.f32 %v2790_v16, %v2682_v50 }
 0x310   : > { %v2352_v20 = vpop.f32.mrf.mxu2 }
 0x311   : > { %v2501_v36 = vpop.f32.mrf.mxu3  ;;  %v2880_v11 = vadd.f32 %v4606_v41, %v2828_v8  ;;  %v2388_v45 = vadd.f32 %v2352_v20, %v4597_v43 }
 0x313   : > { %2896 = vst [vmem:[%s4610_s29 + $0x68] sm:$0xff] %v2880_v11  ;;  %v2537_v32 = vadd.f32 %v2501_v36, %v2388_v45 }
 0x315   : > { %v2683_v44 = vadd.f32 %v2647_v55, %v2537_v32 }
 0x316   : > { %v2650_v43 = vpop.f32.mrf.mxu0  ;;  %v2796_v3 = vpop.f32.mrf.mxu1 }
 0x317   : > { %v2829_v34 = vadd.f32 %v2793_v53, %v2683_v44 }
 0x318   : > { %v2355_v46 = vpop.f32.mrf.mxu2 }
 0x319   : > { %v2504_v26 = vpop.f32.mrf.mxu3  ;;  %v2881_v0 = vadd.f32 %v4606_v41, %v2829_v34  ;;  %v2389_v47 = vadd.f32 %v2355_v46, %v4600_v5 }
 0x31b   : > { %2897 = vst [vmem:[%s4610_s29 + $0x70] sm:$0xff] %v2881_v0  ;;  %v2538_v18 = vadd.f32 %v2504_v26, %v2389_v47 }
 0x31d   : > { %v2684_v62 = vadd.f32 %v2650_v43, %v2538_v18 }
 0x31f   : > { %v2830_v28 = vadd.f32 %v2796_v3, %v2684_v62 }
 0x321   : > { %v2882_v33 = vadd.f32 %v4606_v41, %v2830_v28 }
 0x323   : > { %2898 = vst [vmem:[%s4610_s29 + $0x78] sm:$0xff] %v2882_v33 }
 0x324   : > { %3588 = shalt.err (!%p3585_p5)
}
 0x325   : > { %s3693_s27 = smov 128   ;;  %s3694_s28 = smov 8  }
 0x326   : > { %3353 = dma.vmem_to_hbm [thread:$0]  (%p3785_p6), %s2915_s23, 2048, %s2917_s24, %s2900_s5, %s3693_s27, %s3693_s27, %s3694_s28  }
 0x327 PF: > { %s4763_s29 = sld [smem:[#allocation13_spill]]  ;;  %p3375_p7 = scmp.ge.s32.totalorder %s3687_s22, 2 }
 0x329   : > { %p3367_p8 = pnand %p3375_p7, %p3791_p10 }
 0x32b   : > { %p3368_p9 = pneg %p3367_p8 }
 0x32d   : > { %s2931_s4 = sand.u32 1, %s4763_s29  }
 0x32e   : > { %s2932_s6 = scalar_lea.sflag [#allocation5], %s2931_s4 }
 0x32f   : > { %3642 = dma.done.wait (%p3368_p9), %s2932_s6, 2048  }
 0x330   : > { %3644 = vsyncadd (%p3368_p9), %s2932_s6, 4294965248  ;;  %s20_s22 = sadd.s32 1, %s3687_s22   ;;  %s4765_s7 = smov %s3836_s15 }
 0x331   : > { %p17_p12 = scmp.ge.s32.totalorder %s20_s22, 6   ;;  %s4766_s18 = sld [smem:[#allocation14_spill]] }
 0x332   : > { %s4767_s20 = sld [smem:[#allocation17_spill]]  ;;  %s4769_s12 = smov %s3651_s13 }
 0x333   : > { %s4768_s8 = sld [smem:[#allocation18_spill]]  ;;  %s4770_s13 = smov %s3655_s14 }
 0x334   : > { %s4771_s14 = smov %s3839_s1  ;;  %s4772_s15 = smov %s3663_s16 }
 0x335   : > { %s4773_s16 = smov %s3667_s17  ;;  %s4774_s17 = smov %s4765_s7 }
 0x336   : > { %s4775_s19 = smov %s3683_s21  ;;  %19 = sbr.rel (!%p17_p12) target bundleno = 13 (0xd), region = 107 }
 0x339   : > { %s4776_s21 = smov %s4768_s8 }
 0x33b   :  { %2938 = vsyncpa [#allocation4], 1 }
 0x33c   :  { %2940 = vsyncpa [#allocation4 + $0x1], 1 }
 0x33d   :  { %2941 = vsyncpa [#allocation7], 1 }
 0x33e   :  { %2942 = vsyncpa [#allocation5], 1 }
 0x33f   :  { %2944 = vsyncpa [#allocation5 + $0x1], 1 }

</bundles_post_ra>
